<compile_context>
chip_gen: v6e
topology: v6e:2x2x1
jax: 0.10.0
libtpu: 0.0.40
codegen_flags: <defaults>
</compile_context>

<pallas_src>
import math
from functools import partial

import jax
import jax.numpy as jnp
from jax import lax
from jax.experimental import pallas as pl
from jax.experimental.pallas import tpu as pltpu


def _encoder_kernel(face_ref, wq_ref, bq_ref, wkv_ref, bkv_ref, wo_ref, bo_ref,
                    w1_ref, b1_ref, w2_ref, b2_ref, out_ref, *, N, K, mxu_dtype):
    b_blk, S, D = face_ref.shape
    f32 = jnp.float32
    rows_n = b_blk * N

    # ---- loop-invariant loads (weights already stored at MXU operand dtype) --
    wq = wq_ref[...]
    wkv = wkv_ref[...]
    wo = wo_ref[...]
    w1 = w1_ref[...]
    w2 = w2_ref[...]
    F = w1.shape[1]
    # Biases stay (1, D)/(1, F): let the add broadcast, do NOT materialize
    # (rows_n, D)/(rows_n, F) copies.
    bq = bq_ref[...]
    bkv = bkv_ref[...]
    bo = bo_ref[...]
    b1 = b1_ref[...]
    b2 = b2_ref[...]

    # ---- fused K/V projection: one (b_blk*S, D) x (D, 2D) matmul, hoisted ----
    face2d = face_ref[...].reshape(b_blk * S, D).astype(mxu_dtype)
    kv = jnp.dot(face2d, wkv, preferred_element_type=f32) + bkv
    k3c = kv[:, :D].reshape(b_blk, S, D).astype(mxu_dtype)
    v3c = kv[:, D:].reshape(b_blk, S, D).astype(mxu_dtype)
    # Hoist the transpose: present K as (b, D, S) once, outside the K loop.
    kT = jnp.swapaxes(k3c, 1, 2)

    scale = 1.0 / math.sqrt(D)
    score_dims = (((2,), (1,)), ((0,), (0,)))  # (b,N,D) x (b,D,S) -> (b,N,S)
    attn_dims = (((2,), (1,)), ((0,), (0,)))   # (b,N,S) x (b,S,D) -> (b,N,D)

    def body(_, w):
        q = jnp.dot(w.astype(mxu_dtype), wq, preferred_element_type=f32) + bq
        q3 = q.reshape(b_blk, N, D).astype(mxu_dtype)
        scores = lax.dot_general(q3, kT, dimension_numbers=score_dims,
                                 preferred_element_type=f32) * scale
        scores = scores - jnp.max(scores, axis=-1, keepdims=True)
        p = jnp.exp(scores)
        # Approx reciprocal goes to the EUP slot; small systematic softmax
        # deviation (covered by the test tolerance).
        p = p * pl.reciprocal(jnp.sum(p, axis=-1, keepdims=True), approx=True)
        attn = lax.dot_general(p.astype(mxu_dtype), v3c,
                               dimension_numbers=attn_dims,
                               preferred_element_type=f32)
        o = jnp.dot(attn.reshape(rows_n, D).astype(mxu_dtype), wo,
                    preferred_element_type=f32) + bo
        h = jnp.dot(o.astype(mxu_dtype), w1, preferred_element_type=f32) + b1
        # TODO(synk): PyTorch nn.GELU defaults to the exact erf form; tanh
        # approximation kept (matches the pure-JAX reference below).
        h = jax.nn.gelu(h, approximate=True)
        h = jnp.dot(h.astype(mxu_dtype), w2, preferred_element_type=f32) + b2
        return w + h                      # weights += block(face, weights)

    w = lax.fori_loop(0, K, body, jnp.zeros((rows_n, D), f32), unroll=True)
    out_ref[...] = w.reshape(b_blk, N, D).astype(out_ref.dtype)


def visual_transformer_encoder(face, params, *, N, K, b_blk=None,
                               mxu_dtype=jnp.float32,
                               single_buffer_weights=True):
    """face: (batch, S, embed_dim) -> (batch, N, embed_dim)."""
    batch, S, D = face.shape
    F = params["w1"].shape[1]

    if b_blk is None:
        # Single grid step by default: v5e/v6e have one TensorCore, so a 2-step
        # grid is pure serialization and halves matmul row occupancy.
        # On v7x pass b_blk = batch // 2 to use both TensorCores.
        b_blk = batch
    assert batch % b_blk == 0, "batch must be divisible by the batch block"
    n_blocks = batch // b_blk

    # Store weight matrices at MXU operand precision (bf16 halves weight DMA
    # bytes / VMEM residency); biases stay f32 (added to f32 accumulators).
    cast_w = lambda x: x.astype(mxu_dtype)
    wq = cast_w(params["wq"])
    wkv = cast_w(jnp.concatenate([params["wk"], params["wv"]], axis=1))
    bkv = jnp.concatenate([params["bk"], params["bv"]], axis=1)
    wo = cast_w(params["wo"])
    w1 = cast_w(params["w1"])
    w2 = cast_w(params["w2"])
    args = (face, wq, params["bq"], wkv, bkv, wo, params["bo"],
            w1, params["b1"], w2, params["b2"])

    a_item = jnp.dtype(face.dtype).itemsize
    w_item = jnp.dtype(mxu_dtype).itemsize
    cost = pl.CostEstimate(
        flops=int(batch * (4 * S * D * D
                           + K * (4 * N * D * D + 4 * N * S * D + 4 * N * D * F))),
        transcendentals=int(batch * K * N * (S + F)),
        bytes_accessed=int(batch * (S + N) * D * a_item
                           + (4 * D * D + 2 * D * F) * w_item
                           + (5 * D + F) * 4),
    )
    kernel = partial(_encoder_kernel, N=N, K=K, mxu_dtype=mxu_dtype)

    def build(single_buffer):
        pipeline_mode = pl.Buffered(1) if single_buffer else None

        def const(shape):
            # Constant-index weight block: fetched once; single-buffer it.
            return pl.BlockSpec(shape, lambda b: tuple(0 for _ in shape),
                                pipeline_mode=pipeline_mode)

        in_specs = [
            pl.BlockSpec((b_blk, S, D), lambda b: (b, 0, 0)),   # face
            const((D, D)), const((1, D)),                        # Wq, bq
            const((D, 2 * D)), const((1, 2 * D)),                # Wkv, bkv (fused)
            const((D, D)), const((1, D)),                        # Wo, bo
            const((D, F)), const((1, F)),                        # W1, b1
            const((F, D)), const((1, D)),                        # W2, b2
        ]
        return pl.pallas_call(
            kernel,
            out_shape=jax.ShapeDtypeStruct((batch, N, D), face.dtype),
            grid_spec=pltpu.PrefetchScalarGridSpec(
                num_scalar_prefetch=0,
                grid=(n_blocks,),
                in_specs=in_specs,
                out_specs=pl.BlockSpec((b_blk, N, D), lambda b: (b, 0, 0)),
            ),
            compiler_params=pltpu.CompilerParams(
                dimension_semantics=("parallel",)),
            cost_estimate=cost,
        )

    if single_buffer_weights:
        try:
            return build(True)(*args)
        except Exception:
            # pl.Buffered(1) not accepted by this jax/libtpu combination:
            # fall back to default double-buffered weight specs (perf-only).
            pass
    return build(False)(*args)


def init_params(key, embed_dim, ffn_dim):
    keys = jax.random.split(key, 6)
    s = 1.0 / math.sqrt(embed_dim)
    return {
        "wq": jax.random.normal(keys[0], (embed_dim, embed_dim), jnp.float32) * s,
        "wk": jax.random.normal(keys[1], (embed_dim, embed_dim), jnp.float32) * s,
        "wv": jax.random.normal(keys[2], (embed_dim, embed_dim), jnp.float32) * s,
        "wo": jax.random.normal(keys[3], (embed_dim, embed_dim), jnp.float32) * s,
        "w1": jax.random.normal(keys[4], (embed_dim, ffn_dim), jnp.float32) * s,
        "w2": jax.random.normal(keys[5], (ffn_dim, embed_dim), jnp.float32)
              * (1.0 / math.sqrt(ffn_dim)),
        "bq": jnp.zeros((1, embed_dim), jnp.float32),
        "bk": jnp.zeros((1, embed_dim), jnp.float32),
        "bv": jnp.zeros((1, embed_dim), jnp.float32),
        "bo": jnp.zeros((1, embed_dim), jnp.float32),
        "b1": jnp.zeros((1, ffn_dim), jnp.float32),
        "b2": jnp.zeros((1, embed_dim), jnp.float32),
    }


def reference(face, params, *, N, K):
    """Pure-JAX reference implementing the same forward (for verification)."""
    batch, S, D = face.shape
    scale = 1.0 / math.sqrt(D)
    kk = face @ params["wk"] + params["bk"]
    vv = face @ params["wv"] + params["bv"]
    w = jnp.zeros((batch, N, D), face.dtype)
    for _ in range(K):
        q = w @ params["wq"] + params["bq"]
        sc = jnp.einsum("bnd,bsd->bns", q, kk) * scale
        p = jax.nn.softmax(sc, axis=-1)
        attn = jnp.einsum("bns,bsd->bnd", p, vv)
        o = attn @ params["wo"] + params["bo"]
        h = jax.nn.gelu(o @ params["w1"] + params["b1"], approximate=True)
        h = h @ params["w2"] + params["b2"]
        w = w + h
    return w


if __name__ == "__main__":
    batch, S, embed_dim, N, K, ffn_dim = 4, 16, 128, 8, 3, 256

    key = jax.random.PRNGKey(0)
    k_face, k_params = jax.random.split(key)
    face = jax.random.normal(k_face, (batch, S, embed_dim), jnp.float32)
    params = init_params(k_params, embed_dim, ffn_dim)

    ref = reference(face, params, N=N, K=K)

    # f32 MXU path (only divergence from the reference is the approx reciprocal).
    out = visual_transformer_encoder(face, params, N=N, K=K)
    out = jax.block_until_ready(out)
    assert out.shape == (batch, N, embed_dim), out.shape
    assert jnp.allclose(out, ref, atol=5e-3, rtol=5e-3), \
        float(jnp.max(jnp.abs(out - ref)))

    # bf16 weights + bf16 MXU operands (v6e/v7x fast path), f32 accumulation.
    out_bf16 = visual_transformer_encoder(face, params, N=N, K=K,
                                          mxu_dtype=jnp.bfloat16)
    out_bf16 = jax.block_until_ready(out_bf16)
    assert jnp.allclose(out_bf16, ref, atol=1e-1, rtol=1e-1), \
        float(jnp.max(jnp.abs(out_bf16 - ref)))

    print("KERNEL_OK")
</pallas_src>

<mosaic_0001>
module attributes {stable_mosaic.version = 11 : i64} {
  func.func @_encoder_kernel(%arg0: i32, %arg1: memref<4x16x128xf32, #tpu.memory_space<vmem>>, %arg2: memref<128x128xf32, #tpu.memory_space<vmem>>, %arg3: memref<1x128xf32, #tpu.memory_space<vmem>>, %arg4: memref<128x256xf32, #tpu.memory_space<vmem>>, %arg5: memref<1x256xf32, #tpu.memory_space<vmem>>, %arg6: memref<128x128xf32, #tpu.memory_space<vmem>>, %arg7: memref<1x128xf32, #tpu.memory_space<vmem>>, %arg8: memref<128x256xf32, #tpu.memory_space<vmem>>, %arg9: memref<1x256xf32, #tpu.memory_space<vmem>>, %arg10: memref<256x128xf32, #tpu.memory_space<vmem>>, %arg11: memref<1x128xf32, #tpu.memory_space<vmem>>, %arg12: memref<4x8x128xf32, #tpu.memory_space<vmem>>) attributes {dimension_semantics = [#tpu.dimension_semantics<parallel>], iteration_bounds = array<i64: 1>, scalar_prefetch = 0 : i64, scratch_operands = 0 : i64, tpu.core_type = #tpu.core_type<tc>, window_params = [{transform_indices = @transform_0, window_bounds = array<i64: 4, 16, 128>}, {pipeline_mode = #tpu.pipeline_mode<synchronous>, transform_indices = @transform_1, window_bounds = array<i64: 128, 128>}, {pipeline_mode = #tpu.pipeline_mode<synchronous>, transform_indices = @transform_2, window_bounds = array<i64: 1, 128>}, {pipeline_mode = #tpu.pipeline_mode<synchronous>, transform_indices = @transform_3, window_bounds = array<i64: 128, 256>}, {pipeline_mode = #tpu.pipeline_mode<synchronous>, transform_indices = @transform_4, window_bounds = array<i64: 1, 256>}, {pipeline_mode = #tpu.pipeline_mode<synchronous>, transform_indices = @transform_5, window_bounds = array<i64: 128, 128>}, {pipeline_mode = #tpu.pipeline_mode<synchronous>, transform_indices = @transform_6, window_bounds = array<i64: 1, 128>}, {pipeline_mode = #tpu.pipeline_mode<synchronous>, transform_indices = @transform_7, window_bounds = array<i64: 128, 256>}, {pipeline_mode = #tpu.pipeline_mode<synchronous>, transform_indices = @transform_8, window_bounds = array<i64: 1, 256>}, {pipeline_mode = #tpu.pipeline_mode<synchronous>, transform_indices = @transform_9, window_bounds = array<i64: 256, 128>}, {pipeline_mode = #tpu.pipeline_mode<synchronous>, transform_indices = @transform_10, window_bounds = array<i64: 1, 128>}, {transform_indices = @transform_11, window_bounds = array<i64: 4, 8, 128>}]} {
    %c0 = arith.constant 0 : index
    %c0_0 = arith.constant 0 : index
    %0 = vector.load %arg2[%c0, %c0_0] : memref<128x128xf32, #tpu.memory_space<vmem>>, vector<128x128xf32>
    %c0_1 = arith.constant 0 : index
    %c0_2 = arith.constant 0 : index
    %1 = vector.load %arg4[%c0_1, %c0_2] : memref<128x256xf32, #tpu.memory_space<vmem>>, vector<128x256xf32>
    %c0_3 = arith.constant 0 : index
    %c0_4 = arith.constant 0 : index
    %2 = vector.load %arg6[%c0_3, %c0_4] : memref<128x128xf32, #tpu.memory_space<vmem>>, vector<128x128xf32>
    %c0_5 = arith.constant 0 : index
    %c0_6 = arith.constant 0 : index
    %3 = vector.load %arg8[%c0_5, %c0_6] : memref<128x256xf32, #tpu.memory_space<vmem>>, vector<128x256xf32>
    %c0_7 = arith.constant 0 : index
    %c0_8 = arith.constant 0 : index
    %4 = vector.load %arg10[%c0_7, %c0_8] : memref<256x128xf32, #tpu.memory_space<vmem>>, vector<256x128xf32>
    %c0_9 = arith.constant 0 : index
    %c0_10 = arith.constant 0 : index
    %5 = vector.load %arg3[%c0_9, %c0_10] : memref<1x128xf32, #tpu.memory_space<vmem>>, vector<1x128xf32>
    %c0_11 = arith.constant 0 : index
    %c0_12 = arith.constant 0 : index
    %6 = vector.load %arg5[%c0_11, %c0_12] : memref<1x256xf32, #tpu.memory_space<vmem>>, vector<1x256xf32>
    %c0_13 = arith.constant 0 : index
    %c0_14 = arith.constant 0 : index
    %7 = vector.load %arg7[%c0_13, %c0_14] : memref<1x128xf32, #tpu.memory_space<vmem>>, vector<1x128xf32>
    %c0_15 = arith.constant 0 : index
    %c0_16 = arith.constant 0 : index
    %8 = vector.load %arg9[%c0_15, %c0_16] : memref<1x256xf32, #tpu.memory_space<vmem>>, vector<1x256xf32>
    %c0_17 = arith.constant 0 : index
    %c0_18 = arith.constant 0 : index
    %9 = vector.load %arg11[%c0_17, %c0_18] : memref<1x128xf32, #tpu.memory_space<vmem>>, vector<1x128xf32>
    %c0_19 = arith.constant 0 : index
    %c0_20 = arith.constant 0 : index
    %c0_21 = arith.constant 0 : index
    %10 = vector.load %arg1[%c0_19, %c0_20, %c0_21] : memref<4x16x128xf32, #tpu.memory_space<vmem>>, vector<4x16x128xf32>
    %11 = vector.shape_cast %10 : vector<4x16x128xf32> to vector<64x128xf32>
    %cst = arith.constant dense<0.000000e+00> : vector<64x256xf32>
    %12 = tpu.matmul %11, %1, %cst {dimension_numbers = #tpu.dot_dimension_numbers<[1], [0], [0], [1], [0, 0, 1, 1], [], []>} : vector<64x128xf32>, vector<128x256xf32>, vector<64x256xf32> -> vector<64x256xf32>
    %13 = vector.broadcast %6 : vector<1x256xf32> to vector<64x256xf32>
    %14 = arith.addf %12, %13 : vector<64x256xf32>
    %15 = vector.extract_strided_slice %14 {offsets = [0, 0], sizes = [64, 128], strides = [1, 1]} : vector<64x256xf32> to vector<64x128xf32>
    %16 = vector.shape_cast %15 : vector<64x128xf32> to vector<4x16x128xf32>
    %17 = vector.extract_strided_slice %14 {offsets = [0, 128], sizes = [64, 128], strides = [1, 1]} : vector<64x256xf32> to vector<64x128xf32>
    %18 = vector.shape_cast %17 : vector<64x128xf32> to vector<4x16x128xf32>
    %19 = tpu.transpose %16, [0, 2, 1] : vector<4x16x128xf32> -> vector<4x128x16xf32>
    %cst_22 = arith.constant 0.000000e+00 : f32
    %20 = vector.broadcast %cst_22 : f32 to vector<32x128xf32>
    %c0_i32 = arith.constant 0 : i32
    %cst_23 = arith.constant dense<0.000000e+00> : vector<32x128xf32>
    %21 = tpu.matmul %20, %0, %cst_23 {dimension_numbers = #tpu.dot_dimension_numbers<[1], [0], [0], [1], [0, 0, 1, 1], [], []>} : vector<32x128xf32>, vector<128x128xf32>, vector<32x128xf32> -> vector<32x128xf32>
    %22 = vector.broadcast %5 : vector<1x128xf32> to vector<32x128xf32>
    %23 = arith.addf %21, %22 : vector<32x128xf32>
    %24 = vector.shape_cast %23 : vector<32x128xf32> to vector<4x8x128xf32>
    %cst_24 = arith.constant dense<0.000000e+00> : vector<4x8x16xf32>
    %25 = tpu.matmul %24, %19, %cst_24 {dimension_numbers = #tpu.dot_dimension_numbers<[2], [1], [1], [2], [0, 0, 0, 1, 1, 2], [0], [0]>} : vector<4x8x128xf32>, vector<4x128x16xf32>, vector<4x8x16xf32> -> vector<4x8x16xf32>
    %cst_25 = arith.constant 0.0883883461 : f32
    %26 = vector.broadcast %cst_25 : f32 to vector<4x8x16xf32>
    %27 = arith.mulf %25, %26 : vector<4x8x16xf32>
    %cst_26 = arith.constant dense<0xFF800000> : vector<4x8xf32>
    %28 = vector.multi_reduction <maximumf>, %27, %cst_26 [2] : vector<4x8x16xf32> to vector<4x8xf32>
    %29 = vector.shape_cast %28 : vector<4x8xf32> to vector<4x8x1xf32>
    %30 = vector.broadcast %29 : vector<4x8x1xf32> to vector<4x8x16xf32>
    %31 = arith.subf %27, %30 : vector<4x8x16xf32>
    %32 = math.exp %31 : vector<4x8x16xf32>
    %cst_27 = arith.constant dense<0.000000e+00> : vector<4x8xf32>
    %33 = vector.multi_reduction <add>, %32, %cst_27 [2] : vector<4x8x16xf32> to vector<4x8xf32>
    %34 = vector.shape_cast %33 : vector<4x8xf32> to vector<4x8x1xf32>
    %35 = tpu.reciprocal %34 {approx = true} : vector<4x8x1xf32> -> vector<4x8x1xf32>
    %36 = vector.broadcast %35 : vector<4x8x1xf32> to vector<4x8x16xf32>
    %37 = arith.mulf %32, %36 : vector<4x8x16xf32>
    %cst_28 = arith.constant dense<0.000000e+00> : vector<4x8x128xf32>
    %38 = tpu.matmul %37, %18, %cst_28 {dimension_numbers = #tpu.dot_dimension_numbers<[2], [1], [1], [2], [0, 0, 0, 1, 1, 2], [0], [0]>} : vector<4x8x16xf32>, vector<4x16x128xf32>, vector<4x8x128xf32> -> vector<4x8x128xf32>
    %39 = vector.shape_cast %38 : vector<4x8x128xf32> to vector<32x128xf32>
    %cst_29 = arith.constant dense<0.000000e+00> : vector<32x128xf32>
    %40 = tpu.matmul %39, %2, %cst_29 {dimension_numbers = #tpu.dot_dimension_numbers<[1], [0], [0], [1], [0, 0, 1, 1], [], []>} : vector<32x128xf32>, vector<128x128xf32>, vector<32x128xf32> -> vector<32x128xf32>
    %41 = vector.broadcast %7 : vector<1x128xf32> to vector<32x128xf32>
    %42 = arith.addf %40, %41 : vector<32x128xf32>
    %cst_30 = arith.constant dense<0.000000e+00> : vector<32x256xf32>
    %43 = tpu.matmul %42, %3, %cst_30 {dimension_numbers = #tpu.dot_dimension_numbers<[1], [0], [0], [1], [0, 0, 1, 1], [], []>} : vector<32x128xf32>, vector<128x256xf32>, vector<32x256xf32> -> vector<32x256xf32>
    %44 = vector.broadcast %8 : vector<1x256xf32> to vector<32x256xf32>
    %45 = arith.addf %43, %44 : vector<32x256xf32>
    %46 = arith.mulf %45, %45 : vector<32x256xf32>
    %47 = arith.mulf %45, %46 : vector<32x256xf32>
    %cst_31 = arith.constant 4.471500e-02 : f32
    %48 = vector.broadcast %cst_31 : f32 to vector<32x256xf32>
    %49 = arith.mulf %48, %47 : vector<32x256xf32>
    %50 = arith.addf %45, %49 : vector<32x256xf32>
    %cst_32 = arith.constant 0.797884583 : f32
    %51 = vector.broadcast %cst_32 : f32 to vector<32x256xf32>
    %52 = arith.mulf %51, %50 : vector<32x256xf32>
    %53 = math.tanh %52 : vector<32x256xf32>
    %cst_33 = arith.constant 1.000000e+00 : f32
    %54 = vector.broadcast %cst_33 : f32 to vector<32x256xf32>
    %55 = arith.addf %54, %53 : vector<32x256xf32>
    %cst_34 = arith.constant 5.000000e-01 : f32
    %56 = vector.broadcast %cst_34 : f32 to vector<32x256xf32>
    %57 = arith.mulf %56, %55 : vector<32x256xf32>
    %58 = arith.mulf %45, %57 : vector<32x256xf32>
    %cst_35 = arith.constant dense<0.000000e+00> : vector<32x128xf32>
    %59 = tpu.matmul %58, %4, %cst_35 {dimension_numbers = #tpu.dot_dimension_numbers<[1], [0], [0], [1], [0, 0, 1, 1], [], []>} : vector<32x256xf32>, vector<256x128xf32>, vector<32x128xf32> -> vector<32x128xf32>
    %60 = vector.broadcast %9 : vector<1x128xf32> to vector<32x128xf32>
    %61 = arith.addf %59, %60 : vector<32x128xf32>
    %62 = arith.addf %20, %61 : vector<32x128xf32>
    %c1_i32 = arith.constant 1 : i32
    %cst_36 = arith.constant dense<0.000000e+00> : vector<32x128xf32>
    %63 = tpu.matmul %62, %0, %cst_36 {dimension_numbers = #tpu.dot_dimension_numbers<[1], [0], [0], [1], [0, 0, 1, 1], [], []>} : vector<32x128xf32>, vector<128x128xf32>, vector<32x128xf32> -> vector<32x128xf32>
    %64 = vector.broadcast %5 : vector<1x128xf32> to vector<32x128xf32>
    %65 = arith.addf %63, %64 : vector<32x128xf32>
    %66 = vector.shape_cast %65 : vector<32x128xf32> to vector<4x8x128xf32>
    %cst_37 = arith.constant dense<0.000000e+00> : vector<4x8x16xf32>
    %67 = tpu.matmul %66, %19, %cst_37 {dimension_numbers = #tpu.dot_dimension_numbers<[2], [1], [1], [2], [0, 0, 0, 1, 1, 2], [0], [0]>} : vector<4x8x128xf32>, vector<4x128x16xf32>, vector<4x8x16xf32> -> vector<4x8x16xf32>
    %cst_38 = arith.constant 0.0883883461 : f32
    %68 = vector.broadcast %cst_38 : f32 to vector<4x8x16xf32>
    %69 = arith.mulf %67, %68 : vector<4x8x16xf32>
    %cst_39 = arith.constant dense<0xFF800000> : vector<4x8xf32>
    %70 = vector.multi_reduction <maximumf>, %69, %cst_39 [2] : vector<4x8x16xf32> to vector<4x8xf32>
    %71 = vector.shape_cast %70 : vector<4x8xf32> to vector<4x8x1xf32>
    %72 = vector.broadcast %71 : vector<4x8x1xf32> to vector<4x8x16xf32>
    %73 = arith.subf %69, %72 : vector<4x8x16xf32>
    %74 = math.exp %73 : vector<4x8x16xf32>
    %cst_40 = arith.constant dense<0.000000e+00> : vector<4x8xf32>
    %75 = vector.multi_reduction <add>, %74, %cst_40 [2] : vector<4x8x16xf32> to vector<4x8xf32>
    %76 = vector.shape_cast %75 : vector<4x8xf32> to vector<4x8x1xf32>
    %77 = tpu.reciprocal %76 {approx = true} : vector<4x8x1xf32> -> vector<4x8x1xf32>
    %78 = vector.broadcast %77 : vector<4x8x1xf32> to vector<4x8x16xf32>
    %79 = arith.mulf %74, %78 : vector<4x8x16xf32>
    %cst_41 = arith.constant dense<0.000000e+00> : vector<4x8x128xf32>
    %80 = tpu.matmul %79, %18, %cst_41 {dimension_numbers = #tpu.dot_dimension_numbers<[2], [1], [1], [2], [0, 0, 0, 1, 1, 2], [0], [0]>} : vector<4x8x16xf32>, vector<4x16x128xf32>, vector<4x8x128xf32> -> vector<4x8x128xf32>
    %81 = vector.shape_cast %80 : vector<4x8x128xf32> to vector<32x128xf32>
    %cst_42 = arith.constant dense<0.000000e+00> : vector<32x128xf32>
    %82 = tpu.matmul %81, %2, %cst_42 {dimension_numbers = #tpu.dot_dimension_numbers<[1], [0], [0], [1], [0, 0, 1, 1], [], []>} : vector<32x128xf32>, vector<128x128xf32>, vector<32x128xf32> -> vector<32x128xf32>
    %83 = vector.broadcast %7 : vector<1x128xf32> to vector<32x128xf32>
    %84 = arith.addf %82, %83 : vector<32x128xf32>
    %cst_43 = arith.constant dense<0.000000e+00> : vector<32x256xf32>
    %85 = tpu.matmul %84, %3, %cst_43 {dimension_numbers = #tpu.dot_dimension_numbers<[1], [0], [0], [1], [0, 0, 1, 1], [], []>} : vector<32x128xf32>, vector<128x256xf32>, vector<32x256xf32> -> vector<32x256xf32>
    %86 = vector.broadcast %8 : vector<1x256xf32> to vector<32x256xf32>
    %87 = arith.addf %85, %86 : vector<32x256xf32>
    %88 = arith.mulf %87, %87 : vector<32x256xf32>
    %89 = arith.mulf %87, %88 : vector<32x256xf32>
    %cst_44 = arith.constant 4.471500e-02 : f32
    %90 = vector.broadcast %cst_44 : f32 to vector<32x256xf32>
    %91 = arith.mulf %90, %89 : vector<32x256xf32>
    %92 = arith.addf %87, %91 : vector<32x256xf32>
    %cst_45 = arith.constant 0.797884583 : f32
    %93 = vector.broadcast %cst_45 : f32 to vector<32x256xf32>
    %94 = arith.mulf %93, %92 : vector<32x256xf32>
    %95 = math.tanh %94 : vector<32x256xf32>
    %cst_46 = arith.constant 1.000000e+00 : f32
    %96 = vector.broadcast %cst_46 : f32 to vector<32x256xf32>
    %97 = arith.addf %96, %95 : vector<32x256xf32>
    %cst_47 = arith.constant 5.000000e-01 : f32
    %98 = vector.broadcast %cst_47 : f32 to vector<32x256xf32>
    %99 = arith.mulf %98, %97 : vector<32x256xf32>
    %100 = arith.mulf %87, %99 : vector<32x256xf32>
    %cst_48 = arith.constant dense<0.000000e+00> : vector<32x128xf32>
    %101 = tpu.matmul %100, %4, %cst_48 {dimension_numbers = #tpu.dot_dimension_numbers<[1], [0], [0], [1], [0, 0, 1, 1], [], []>} : vector<32x256xf32>, vector<256x128xf32>, vector<32x128xf32> -> vector<32x128xf32>
    %102 = vector.broadcast %9 : vector<1x128xf32> to vector<32x128xf32>
    %103 = arith.addf %101, %102 : vector<32x128xf32>
    %104 = arith.addf %62, %103 : vector<32x128xf32>
    %c2_i32 = arith.constant 2 : i32
    %cst_49 = arith.constant dense<0.000000e+00> : vector<32x128xf32>
    %105 = tpu.matmul %104, %0, %cst_49 {dimension_numbers = #tpu.dot_dimension_numbers<[1], [0], [0], [1], [0, 0, 1, 1], [], []>} : vector<32x128xf32>, vector<128x128xf32>, vector<32x128xf32> -> vector<32x128xf32>
    %106 = vector.broadcast %5 : vector<1x128xf32> to vector<32x128xf32>
    %107 = arith.addf %105, %106 : vector<32x128xf32>
    %108 = vector.shape_cast %107 : vector<32x128xf32> to vector<4x8x128xf32>
    %cst_50 = arith.constant dense<0.000000e+00> : vector<4x8x16xf32>
    %109 = tpu.matmul %108, %19, %cst_50 {dimension_numbers = #tpu.dot_dimension_numbers<[2], [1], [1], [2], [0, 0, 0, 1, 1, 2], [0], [0]>} : vector<4x8x128xf32>, vector<4x128x16xf32>, vector<4x8x16xf32> -> vector<4x8x16xf32>
    %cst_51 = arith.constant 0.0883883461 : f32
    %110 = vector.broadcast %cst_51 : f32 to vector<4x8x16xf32>
    %111 = arith.mulf %109, %110 : vector<4x8x16xf32>
    %cst_52 = arith.constant dense<0xFF800000> : vector<4x8xf32>
    %112 = vector.multi_reduction <maximumf>, %111, %cst_52 [2] : vector<4x8x16xf32> to vector<4x8xf32>
    %113 = vector.shape_cast %112 : vector<4x8xf32> to vector<4x8x1xf32>
    %114 = vector.broadcast %113 : vector<4x8x1xf32> to vector<4x8x16xf32>
    %115 = arith.subf %111, %114 : vector<4x8x16xf32>
    %116 = math.exp %115 : vector<4x8x16xf32>
    %cst_53 = arith.constant dense<0.000000e+00> : vector<4x8xf32>
    %117 = vector.multi_reduction <add>, %116, %cst_53 [2] : vector<4x8x16xf32> to vector<4x8xf32>
    %118 = vector.shape_cast %117 : vector<4x8xf32> to vector<4x8x1xf32>
    %119 = tpu.reciprocal %118 {approx = true} : vector<4x8x1xf32> -> vector<4x8x1xf32>
    %120 = vector.broadcast %119 : vector<4x8x1xf32> to vector<4x8x16xf32>
    %121 = arith.mulf %116, %120 : vector<4x8x16xf32>
    %cst_54 = arith.constant dense<0.000000e+00> : vector<4x8x128xf32>
    %122 = tpu.matmul %121, %18, %cst_54 {dimension_numbers = #tpu.dot_dimension_numbers<[2], [1], [1], [2], [0, 0, 0, 1, 1, 2], [0], [0]>} : vector<4x8x16xf32>, vector<4x16x128xf32>, vector<4x8x128xf32> -> vector<4x8x128xf32>
    %123 = vector.shape_cast %122 : vector<4x8x128xf32> to vector<32x128xf32>
    %cst_55 = arith.constant dense<0.000000e+00> : vector<32x128xf32>
    %124 = tpu.matmul %123, %2, %cst_55 {dimension_numbers = #tpu.dot_dimension_numbers<[1], [0], [0], [1], [0, 0, 1, 1], [], []>} : vector<32x128xf32>, vector<128x128xf32>, vector<32x128xf32> -> vector<32x128xf32>
    %125 = vector.broadcast %7 : vector<1x128xf32> to vector<32x128xf32>
    %126 = arith.addf %124, %125 : vector<32x128xf32>
    %cst_56 = arith.constant dense<0.000000e+00> : vector<32x256xf32>
    %127 = tpu.matmul %126, %3, %cst_56 {dimension_numbers = #tpu.dot_dimension_numbers<[1], [0], [0], [1], [0, 0, 1, 1], [], []>} : vector<32x128xf32>, vector<128x256xf32>, vector<32x256xf32> -> vector<32x256xf32>
    %128 = vector.broadcast %8 : vector<1x256xf32> to vector<32x256xf32>
    %129 = arith.addf %127, %128 : vector<32x256xf32>
    %130 = arith.mulf %129, %129 : vector<32x256xf32>
    %131 = arith.mulf %129, %130 : vector<32x256xf32>
    %cst_57 = arith.constant 4.471500e-02 : f32
    %132 = vector.broadcast %cst_57 : f32 to vector<32x256xf32>
    %133 = arith.mulf %132, %131 : vector<32x256xf32>
    %134 = arith.addf %129, %133 : vector<32x256xf32>
    %cst_58 = arith.constant 0.797884583 : f32
    %135 = vector.broadcast %cst_58 : f32 to vector<32x256xf32>
    %136 = arith.mulf %135, %134 : vector<32x256xf32>
    %137 = math.tanh %136 : vector<32x256xf32>
    %cst_59 = arith.constant 1.000000e+00 : f32
    %138 = vector.broadcast %cst_59 : f32 to vector<32x256xf32>
    %139 = arith.addf %138, %137 : vector<32x256xf32>
    %cst_60 = arith.constant 5.000000e-01 : f32
    %140 = vector.broadcast %cst_60 : f32 to vector<32x256xf32>
    %141 = arith.mulf %140, %139 : vector<32x256xf32>
    %142 = arith.mulf %129, %141 : vector<32x256xf32>
    %cst_61 = arith.constant dense<0.000000e+00> : vector<32x128xf32>
    %143 = tpu.matmul %142, %4, %cst_61 {dimension_numbers = #tpu.dot_dimension_numbers<[1], [0], [0], [1], [0, 0, 1, 1], [], []>} : vector<32x256xf32>, vector<256x128xf32>, vector<32x128xf32> -> vector<32x128xf32>
    %144 = vector.broadcast %9 : vector<1x128xf32> to vector<32x128xf32>
    %145 = arith.addf %143, %144 : vector<32x128xf32>
    %146 = arith.addf %104, %145 : vector<32x128xf32>
    %147 = vector.shape_cast %146 : vector<32x128xf32> to vector<4x8x128xf32>
    %c0_62 = arith.constant 0 : index
    %c0_63 = arith.constant 0 : index
    %c0_64 = arith.constant 0 : index
    %148 = vector.load %arg12[%c0_62, %c0_63, %c0_64] : memref<4x8x128xf32, #tpu.memory_space<vmem>>, vector<4x8x128xf32>
    tpu.vector_store %arg12[%c0_62, %c0_63, %c0_64], %147 {strides = array<i32>} : memref<4x8x128xf32, #tpu.memory_space<vmem>>, vector<4x8x128xf32>,
    return
  }
  func.func @transform_0(%arg0: i32) -> (i32, i32, i32) {
    %c0_i32 = arith.constant 0 : i32
    %c0_i32_0 = arith.constant 0 : i32
    %c0_i32_1 = arith.constant 0 : i32
    return %arg0, %c0_i32, %c0_i32_0 : i32, i32, i32
  }
  func.func @transform_1(%arg0: i32) -> (i32, i32) {
    %c0_i32 = arith.constant 0 : i32
    %c0_i32_0 = arith.constant 0 : i32
    %c0_i32_1 = arith.constant 0 : i32
    return %c0_i32, %c0_i32_0 : i32, i32
  }
  func.func @transform_2(%arg0: i32) -> (i32, i32) {
    %c0_i32 = arith.constant 0 : i32
    %c0_i32_0 = arith.constant 0 : i32
    %c0_i32_1 = arith.constant 0 : i32
    return %c0_i32, %c0_i32_0 : i32, i32
  }
  func.func @transform_3(%arg0: i32) -> (i32, i32) {
    %c0_i32 = arith.constant 0 : i32
    %c0_i32_0 = arith.constant 0 : i32
    %c0_i32_1 = arith.constant 0 : i32
    return %c0_i32, %c0_i32_0 : i32, i32
  }
  func.func @transform_4(%arg0: i32) -> (i32, i32) {
    %c0_i32 = arith.constant 0 : i32
    %c0_i32_0 = arith.constant 0 : i32
    %c0_i32_1 = arith.constant 0 : i32
    return %c0_i32, %c0_i32_0 : i32, i32
  }
  func.func @transform_5(%arg0: i32) -> (i32, i32) {
    %c0_i32 = arith.constant 0 : i32
    %c0_i32_0 = arith.constant 0 : i32
    %c0_i32_1 = arith.constant 0 : i32
    return %c0_i32, %c0_i32_0 : i32, i32
  }
  func.func @transform_6(%arg0: i32) -> (i32, i32) {
    %c0_i32 = arith.constant 0 : i32
    %c0_i32_0 = arith.constant 0 : i32
    %c0_i32_1 = arith.constant 0 : i32
    return %c0_i32, %c0_i32_0 : i32, i32
  }
  func.func @transform_7(%arg0: i32) -> (i32, i32) {
    %c0_i32 = arith.constant 0 : i32
    %c0_i32_0 = arith.constant 0 : i32
    %c0_i32_1 = arith.constant 0 : i32
    return %c0_i32, %c0_i32_0 : i32, i32
  }
  func.func @transform_8(%arg0: i32) -> (i32, i32) {
    %c0_i32 = arith.constant 0 : i32
    %c0_i32_0 = arith.constant 0 : i32
    %c0_i32_1 = arith.constant 0 : i32
    return %c0_i32, %c0_i32_0 : i32, i32
  }
  func.func @transform_9(%arg0: i32) -> (i32, i32) {
    %c0_i32 = arith.constant 0 : i32
    %c0_i32_0 = arith.constant 0 : i32
    %c0_i32_1 = arith.constant 0 : i32
    return %c0_i32, %c0_i32_0 : i32, i32
  }
  func.func @transform_10(%arg0: i32) -> (i32, i32) {
    %c0_i32 = arith.constant 0 : i32
    %c0_i32_0 = arith.constant 0 : i32
    %c0_i32_1 = arith.constant 0 : i32
    return %c0_i32, %c0_i32_0 : i32, i32
  }
  func.func @transform_11(%arg0: i32) -> (i32, i32, i32) {
    %c0_i32 = arith.constant 0 : i32
    %c0_i32_0 = arith.constant 0 : i32
    %c0_i32_1 = arith.constant 0 : i32
    return %arg0, %c0_i32, %c0_i32_0 : i32, i32, i32
  }
}

module attributes {stable_mosaic.version = 11 : i64} {
  func.func @_encoder_kernel(%arg0: i32, %arg1: memref<4x16x128xf32, #tpu.memory_space<vmem>>, %arg2: memref<128x128xf32, #tpu.memory_space<vmem>>, %arg3: memref<1x128xf32, #tpu.memory_space<vmem>>, %arg4: memref<128x256xf32, #tpu.memory_space<vmem>>, %arg5: memref<1x256xf32, #tpu.memory_space<vmem>>, %arg6: memref<128x128xf32, #tpu.memory_space<vmem>>, %arg7: memref<1x128xf32, #tpu.memory_space<vmem>>, %arg8: memref<128x256xf32, #tpu.memory_space<vmem>>, %arg9: memref<1x256xf32, #tpu.memory_space<vmem>>, %arg10: memref<256x128xf32, #tpu.memory_space<vmem>>, %arg11: memref<1x128xf32, #tpu.memory_space<vmem>>, %arg12: memref<4x8x128xf32, #tpu.memory_space<vmem>>) attributes {dimension_semantics = [#tpu.dimension_semantics<parallel>], iteration_bounds = array<i64: 1>, scalar_prefetch = 0 : i64, scratch_operands = 0 : i64, tpu.core_type = #tpu.core_type<tc>, window_params = [{transform_indices = @transform_0, window_bounds = array<i64: 4, 16, 128>}, {pipeline_mode = #tpu.pipeline_mode<synchronous>, transform_indices = @transform_1, window_bounds = array<i64: 128, 128>}, {pipeline_mode = #tpu.pipeline_mode<synchronous>, transform_indices = @transform_2, window_bounds = array<i64: 1, 128>}, {pipeline_mode = #tpu.pipeline_mode<synchronous>, transform_indices = @transform_3, window_bounds = array<i64: 128, 256>}, {pipeline_mode = #tpu.pipeline_mode<synchronous>, transform_indices = @transform_4, window_bounds = array<i64: 1, 256>}, {pipeline_mode = #tpu.pipeline_mode<synchronous>, transform_indices = @transform_5, window_bounds = array<i64: 128, 128>}, {pipeline_mode = #tpu.pipeline_mode<synchronous>, transform_indices = @transform_6, window_bounds = array<i64: 1, 128>}, {pipeline_mode = #tpu.pipeline_mode<synchronous>, transform_indices = @transform_7, window_bounds = array<i64: 128, 256>}, {pipeline_mode = #tpu.pipeline_mode<synchronous>, transform_indices = @transform_8, window_bounds = array<i64: 1, 256>}, {pipeline_mode = #tpu.pipeline_mode<synchronous>, transform_indices = @transform_9, window_bounds = array<i64: 256, 128>}, {pipeline_mode = #tpu.pipeline_mode<synchronous>, transform_indices = @transform_10, window_bounds = array<i64: 1, 128>}, {transform_indices = @transform_11, window_bounds = array<i64: 4, 8, 128>}]} {
    %c0 = arith.constant 0 : index
    %c0_0 = arith.constant 0 : index
    %0 = vector.load %arg2[%c0, %c0_0] : memref<128x128xf32, #tpu.memory_space<vmem>>, vector<128x128xf32>
    %c0_1 = arith.constant 0 : index
    %c0_2 = arith.constant 0 : index
    %1 = vector.load %arg4[%c0_1, %c0_2] : memref<128x256xf32, #tpu.memory_space<vmem>>, vector<128x256xf32>
    %c0_3 = arith.constant 0 : index
    %c0_4 = arith.constant 0 : index
    %2 = vector.load %arg6[%c0_3, %c0_4] : memref<128x128xf32, #tpu.memory_space<vmem>>, vector<128x128xf32>
    %c0_5 = arith.constant 0 : index
    %c0_6 = arith.constant 0 : index
    %3 = vector.load %arg8[%c0_5, %c0_6] : memref<128x256xf32, #tpu.memory_space<vmem>>, vector<128x256xf32>
    %c0_7 = arith.constant 0 : index
    %c0_8 = arith.constant 0 : index
    %4 = vector.load %arg10[%c0_7, %c0_8] : memref<256x128xf32, #tpu.memory_space<vmem>>, vector<256x128xf32>
    %c0_9 = arith.constant 0 : index
    %c0_10 = arith.constant 0 : index
    %5 = vector.load %arg3[%c0_9, %c0_10] : memref<1x128xf32, #tpu.memory_space<vmem>>, vector<1x128xf32>
    %c0_11 = arith.constant 0 : index
    %c0_12 = arith.constant 0 : index
    %6 = vector.load %arg5[%c0_11, %c0_12] : memref<1x256xf32, #tpu.memory_space<vmem>>, vector<1x256xf32>
    %c0_13 = arith.constant 0 : index
    %c0_14 = arith.constant 0 : index
    %7 = vector.load %arg7[%c0_13, %c0_14] : memref<1x128xf32, #tpu.memory_space<vmem>>, vector<1x128xf32>
    %c0_15 = arith.constant 0 : index
    %c0_16 = arith.constant 0 : index
    %8 = vector.load %arg9[%c0_15, %c0_16] : memref<1x256xf32, #tpu.memory_space<vmem>>, vector<1x256xf32>
    %c0_17 = arith.constant 0 : index
    %c0_18 = arith.constant 0 : index
    %9 = vector.load %arg11[%c0_17, %c0_18] : memref<1x128xf32, #tpu.memory_space<vmem>>, vector<1x128xf32>
    %c0_19 = arith.constant 0 : index
    %c0_20 = arith.constant 0 : index
    %c0_21 = arith.constant 0 : index
    %10 = vector.load %arg1[%c0_19, %c0_20, %c0_21] : memref<4x16x128xf32, #tpu.memory_space<vmem>>, vector<4x16x128xf32>
    %11 = vector.shape_cast %10 : vector<4x16x128xf32> to vector<64x128xf32>
    %cst = arith.constant dense<0.000000e+00> : vector<64x256xf32>
    %12 = tpu.matmul %11, %1, %cst {dimension_numbers = #tpu.dot_dimension_numbers<[1], [0], [0], [1], [0, 0, 1, 1], [], []>} : vector<64x128xf32>, vector<128x256xf32>, vector<64x256xf32> -> vector<64x256xf32>
    %13 = vector.broadcast %6 : vector<1x256xf32> to vector<64x256xf32>
    %14 = arith.addf %12, %13 : vector<64x256xf32>
    %15 = vector.extract_strided_slice %14 {offsets = [0, 0], sizes = [64, 128], strides = [1, 1]} : vector<64x256xf32> to vector<64x128xf32>
    %16 = vector.shape_cast %15 : vector<64x128xf32> to vector<4x16x128xf32>
    %17 = vector.extract_strided_slice %14 {offsets = [0, 128], sizes = [64, 128], strides = [1, 1]} : vector<64x256xf32> to vector<64x128xf32>
    %18 = vector.shape_cast %17 : vector<64x128xf32> to vector<4x16x128xf32>
    %19 = tpu.transpose %16, [0, 2, 1] : vector<4x16x128xf32> -> vector<4x128x16xf32>
    %cst_22 = arith.constant 0.000000e+00 : f32
    %20 = vector.broadcast %cst_22 : f32 to vector<32x128xf32>
    %c0_i32 = arith.constant 0 : i32
    %cst_23 = arith.constant dense<0.000000e+00> : vector<32x128xf32>
    %21 = tpu.matmul %20, %0, %cst_23 {dimension_numbers = #tpu.dot_dimension_numbers<[1], [0], [0], [1], [0, 0, 1, 1], [], []>} : vector<32x128xf32>, vector<128x128xf32>, vector<32x128xf32> -> vector<32x128xf32>
    %22 = vector.broadcast %5 : vector<1x128xf32> to vector<32x128xf32>
    %23 = arith.addf %21, %22 : vector<32x128xf32>
    %24 = vector.shape_cast %23 : vector<32x128xf32> to vector<4x8x128xf32>
    %cst_24 = arith.constant dense<0.000000e+00> : vector<4x8x16xf32>
    %25 = tpu.matmul %24, %19, %cst_24 {dimension_numbers = #tpu.dot_dimension_numbers<[2], [1], [1], [2], [0, 0, 0, 1, 1, 2], [0], [0]>} : vector<4x8x128xf32>, vector<4x128x16xf32>, vector<4x8x16xf32> -> vector<4x8x16xf32>
    %cst_25 = arith.constant 0.0883883461 : f32
    %26 = vector.broadcast %cst_25 : f32 to vector<4x8x16xf32>
    %27 = arith.mulf %25, %26 : vector<4x8x16xf32>
    %cst_26 = arith.constant dense<0xFF800000> : vector<4x8xf32>
    %28 = vector.multi_reduction <maximumf>, %27, %cst_26 [2] : vector<4x8x16xf32> to vector<4x8xf32>
    %29 = vector.shape_cast %28 : vector<4x8xf32> to vector<4x8x1xf32>
    %30 = vector.broadcast %29 : vector<4x8x1xf32> to vector<4x8x16xf32>
    %31 = arith.subf %27, %30 : vector<4x8x16xf32>
    %32 = math.exp %31 : vector<4x8x16xf32>
    %cst_27 = arith.constant dense<0.000000e+00> : vector<4x8xf32>
    %33 = vector.multi_reduction <add>, %32, %cst_27 [2] : vector<4x8x16xf32> to vector<4x8xf32>
    %34 = vector.shape_cast %33 : vector<4x8xf32> to vector<4x8x1xf32>
    %35 = tpu.reciprocal %34 {approx = true} : vector<4x8x1xf32> -> vector<4x8x1xf32>
    %36 = vector.broadcast %35 : vector<4x8x1xf32> to vector<4x8x16xf32>
    %37 = arith.mulf %32, %36 : vector<4x8x16xf32>
    %cst_28 = arith.constant dense<0.000000e+00> : vector<4x8x128xf32>
    %38 = tpu.matmul %37, %18, %cst_28 {dimension_numbers = #tpu.dot_dimension_numbers<[2], [1], [1], [2], [0, 0, 0, 1, 1, 2], [0], [0]>} : vector<4x8x16xf32>, vector<4x16x128xf32>, vector<4x8x128xf32> -> vector<4x8x128xf32>
    %39 = vector.shape_cast %38 : vector<4x8x128xf32> to vector<32x128xf32>
    %cst_29 = arith.constant dense<0.000000e+00> : vector<32x128xf32>
    %40 = tpu.matmul %39, %2, %cst_29 {dimension_numbers = #tpu.dot_dimension_numbers<[1], [0], [0], [1], [0, 0, 1, 1], [], []>} : vector<32x128xf32>, vector<128x128xf32>, vector<32x128xf32> -> vector<32x128xf32>
    %41 = vector.broadcast %7 : vector<1x128xf32> to vector<32x128xf32>
    %42 = arith.addf %40, %41 : vector<32x128xf32>
    %cst_30 = arith.constant dense<0.000000e+00> : vector<32x256xf32>
    %43 = tpu.matmul %42, %3, %cst_30 {dimension_numbers = #tpu.dot_dimension_numbers<[1], [0], [0], [1], [0, 0, 1, 1], [], []>} : vector<32x128xf32>, vector<128x256xf32>, vector<32x256xf32> -> vector<32x256xf32>
    %44 = vector.broadcast %8 : vector<1x256xf32> to vector<32x256xf32>
    %45 = arith.addf %43, %44 : vector<32x256xf32>
    %46 = arith.mulf %45, %45 : vector<32x256xf32>
    %47 = arith.mulf %45, %46 : vector<32x256xf32>
    %cst_31 = arith.constant 4.471500e-02 : f32
    %48 = vector.broadcast %cst_31 : f32 to vector<32x256xf32>
    %49 = arith.mulf %48, %47 : vector<32x256xf32>
    %50 = arith.addf %45, %49 : vector<32x256xf32>
    %cst_32 = arith.constant 0.797884583 : f32
    %51 = vector.broadcast %cst_32 : f32 to vector<32x256xf32>
    %52 = arith.mulf %51, %50 : vector<32x256xf32>
    %53 = math.tanh %52 : vector<32x256xf32>
    %cst_33 = arith.constant 1.000000e+00 : f32
    %54 = vector.broadcast %cst_33 : f32 to vector<32x256xf32>
    %55 = arith.addf %54, %53 : vector<32x256xf32>
    %cst_34 = arith.constant 5.000000e-01 : f32
    %56 = vector.broadcast %cst_34 : f32 to vector<32x256xf32>
    %57 = arith.mulf %56, %55 : vector<32x256xf32>
    %58 = arith.mulf %45, %57 : vector<32x256xf32>
    %cst_35 = arith.constant dense<0.000000e+00> : vector<32x128xf32>
    %59 = tpu.matmul %58, %4, %cst_35 {dimension_numbers = #tpu.dot_dimension_numbers<[1], [0], [0], [1], [0, 0, 1, 1], [], []>} : vector<32x256xf32>, vector<256x128xf32>, vector<32x128xf32> -> vector<32x128xf32>
    %60 = vector.broadcast %9 : vector<1x128xf32> to vector<32x128xf32>
    %61 = arith.addf %59, %60 : vector<32x128xf32>
    %62 = arith.addf %20, %61 : vector<32x128xf32>
    %c1_i32 = arith.constant 1 : i32
    %cst_36 = arith.constant dense<0.000000e+00> : vector<32x128xf32>
    %63 = tpu.matmul %62, %0, %cst_36 {dimension_numbers = #tpu.dot_dimension_numbers<[1], [0], [0], [1], [0, 0, 1, 1], [], []>} : vector<32x128xf32>, vector<128x128xf32>, vector<32x128xf32> -> vector<32x128xf32>
    %64 = vector.broadcast %5 : vector<1x128xf32> to vector<32x128xf32>
    %65 = arith.addf %63, %64 : vector<32x128xf32>
    %66 = vector.shape_cast %65 : vector<32x128xf32> to vector<4x8x128xf32>
    %cst_37 = arith.constant dense<0.000000e+00> : vector<4x8x16xf32>
    %67 = tpu.matmul %66, %19, %cst_37 {dimension_numbers = #tpu.dot_dimension_numbers<[2], [1], [1], [2], [0, 0, 0, 1, 1, 2], [0], [0]>} : vector<4x8x128xf32>, vector<4x128x16xf32>, vector<4x8x16xf32> -> vector<4x8x16xf32>
    %cst_38 = arith.constant 0.0883883461 : f32
    %68 = vector.broadcast %cst_38 : f32 to vector<4x8x16xf32>
    %69 = arith.mulf %67, %68 : vector<4x8x16xf32>
    %cst_39 = arith.constant dense<0xFF800000> : vector<4x8xf32>
    %70 = vector.multi_reduction <maximumf>, %69, %cst_39 [2] : vector<4x8x16xf32> to vector<4x8xf32>
    %71 = vector.shape_cast %70 : vector<4x8xf32> to vector<4x8x1xf32>
    %72 = vector.broadcast %71 : vector<4x8x1xf32> to vector<4x8x16xf32>
    %73 = arith.subf %69, %72 : vector<4x8x16xf32>
    %74 = math.exp %73 : vector<4x8x16xf32>
    %cst_40 = arith.constant dense<0.000000e+00> : vector<4x8xf32>
    %75 = vector.multi_reduction <add>, %74, %cst_40 [2] : vector<4x8x16xf32> to vector<4x8xf32>
    %76 = vector.shape_cast %75 : vector<4x8xf32> to vector<4x8x1xf32>
    %77 = tpu.reciprocal %76 {approx = true} : vector<4x8x1xf32> -> vector<4x8x1xf32>
    %78 = vector.broadcast %77 : vector<4x8x1xf32> to vector<4x8x16xf32>
    %79 = arith.mulf %74, %78 : vector<4x8x16xf32>
    %cst_41 = arith.constant dense<0.000000e+00> : vector<4x8x128xf32>
    %80 = tpu.matmul %79, %18, %cst_41 {dimension_numbers = #tpu.dot_dimension_numbers<[2], [1], [1], [2], [0, 0, 0, 1, 1, 2], [0], [0]>} : vector<4x8x16xf32>, vector<4x16x128xf32>, vector<4x8x128xf32> -> vector<4x8x128xf32>
    %81 = vector.shape_cast %80 : vector<4x8x128xf32> to vector<32x128xf32>
    %cst_42 = arith.constant dense<0.000000e+00> : vector<32x128xf32>
    %82 = tpu.matmul %81, %2, %cst_42 {dimension_numbers = #tpu.dot_dimension_numbers<[1], [0], [0], [1], [0, 0, 1, 1], [], []>} : vector<32x128xf32>, vector<128x128xf32>, vector<32x128xf32> -> vector<32x128xf32>
    %83 = vector.broadcast %7 : vector<1x128xf32> to vector<32x128xf32>
    %84 = arith.addf %82, %83 : vector<32x128xf32>
    %cst_43 = arith.constant dense<0.000000e+00> : vector<32x256xf32>
    %85 = tpu.matmul %84, %3, %cst_43 {dimension_numbers = #tpu.dot_dimension_numbers<[1], [0], [0], [1], [0, 0, 1, 1], [], []>} : vector<32x128xf32>, vector<128x256xf32>, vector<32x256xf32> -> vector<32x256xf32>
    %86 = vector.broadcast %8 : vector<1x256xf32> to vector<32x256xf32>
    %87 = arith.addf %85, %86 : vector<32x256xf32>
    %88 = arith.mulf %87, %87 : vector<32x256xf32>
    %89 = arith.mulf %87, %88 : vector<32x256xf32>
    %cst_44 = arith.constant 4.471500e-02 : f32
    %90 = vector.broadcast %cst_44 : f32 to vector<32x256xf32>
    %91 = arith.mulf %90, %89 : vector<32x256xf32>
    %92 = arith.addf %87, %91 : vector<32x256xf32>
    %cst_45 = arith.constant 0.797884583 : f32
    %93 = vector.broadcast %cst_45 : f32 to vector<32x256xf32>
    %94 = arith.mulf %93, %92 : vector<32x256xf32>
    %95 = math.tanh %94 : vector<32x256xf32>
    %cst_46 = arith.constant 1.000000e+00 : f32
    %96 = vector.broadcast %cst_46 : f32 to vector<32x256xf32>
    %97 = arith.addf %96, %95 : vector<32x256xf32>
    %cst_47 = arith.constant 5.000000e-01 : f32
    %98 = vector.broadcast %cst_47 : f32 to vector<32x256xf32>
    %99 = arith.mulf %98, %97 : vector<32x256xf32>
    %100 = arith.mulf %87, %99 : vector<32x256xf32>
    %cst_48 = arith.constant dense<0.000000e+00> : vector<32x128xf32>
    %101 = tpu.matmul %100, %4, %cst_48 {dimension_numbers = #tpu.dot_dimension_numbers<[1], [0], [0], [1], [0, 0, 1, 1], [], []>} : vector<32x256xf32>, vector<256x128xf32>, vector<32x128xf32> -> vector<32x128xf32>
    %102 = vector.broadcast %9 : vector<1x128xf32> to vector<32x128xf32>
    %103 = arith.addf %101, %102 : vector<32x128xf32>
    %104 = arith.addf %62, %103 : vector<32x128xf32>
    %c2_i32 = arith.constant 2 : i32
    %cst_49 = arith.constant dense<0.000000e+00> : vector<32x128xf32>
    %105 = tpu.matmul %104, %0, %cst_49 {dimension_numbers = #tpu.dot_dimension_numbers<[1], [0], [0], [1], [0, 0, 1, 1], [], []>} : vector<32x128xf32>, vector<128x128xf32>, vector<32x128xf32> -> vector<32x128xf32>
    %106 = vector.broadcast %5 : vector<1x128xf32> to vector<32x128xf32>
    %107 = arith.addf %105, %106 : vector<32x128xf32>
    %108 = vector.shape_cast %107 : vector<32x128xf32> to vector<4x8x128xf32>
    %cst_50 = arith.constant dense<0.000000e+00> : vector<4x8x16xf32>
    %109 = tpu.matmul %108, %19, %cst_50 {dimension_numbers = #tpu.dot_dimension_numbers<[2], [1], [1], [2], [0, 0, 0, 1, 1, 2], [0], [0]>} : vector<4x8x128xf32>, vector<4x128x16xf32>, vector<4x8x16xf32> -> vector<4x8x16xf32>
    %cst_51 = arith.constant 0.0883883461 : f32
    %110 = vector.broadcast %cst_51 : f32 to vector<4x8x16xf32>
    %111 = arith.mulf %109, %110 : vector<4x8x16xf32>
    %cst_52 = arith.constant dense<0xFF800000> : vector<4x8xf32>
    %112 = vector.multi_reduction <maximumf>, %111, %cst_52 [2] : vector<4x8x16xf32> to vector<4x8xf32>
    %113 = vector.shape_cast %112 : vector<4x8xf32> to vector<4x8x1xf32>
    %114 = vector.broadcast %113 : vector<4x8x1xf32> to vector<4x8x16xf32>
    %115 = arith.subf %111, %114 : vector<4x8x16xf32>
    %116 = math.exp %115 : vector<4x8x16xf32>
    %cst_53 = arith.constant dense<0.000000e+00> : vector<4x8xf32>
    %117 = vector.multi_reduction <add>, %116, %cst_53 [2] : vector<4x8x16xf32> to vector<4x8xf32>
    %118 = vector.shape_cast %117 : vector<4x8xf32> to vector<4x8x1xf32>
    %119 = tpu.reciprocal %118 {approx = true} : vector<4x8x1xf32> -> vector<4x8x1xf32>
    %120 = vector.broadcast %119 : vector<4x8x1xf32> to vector<4x8x16xf32>
    %121 = arith.mulf %116, %120 : vector<4x8x16xf32>
    %cst_54 = arith.constant dense<0.000000e+00> : vector<4x8x128xf32>
    %122 = tpu.matmul %121, %18, %cst_54 {dimension_numbers = #tpu.dot_dimension_numbers<[2], [1], [1], [2], [0, 0, 0, 1, 1, 2], [0], [0]>} : vector<4x8x16xf32>, vector<4x16x128xf32>, vector<4x8x128xf32> -> vector<4x8x128xf32>
    %123 = vector.shape_cast %122 : vector<4x8x128xf32> to vector<32x128xf32>
    %cst_55 = arith.constant dense<0.000000e+00> : vector<32x128xf32>
    %124 = tpu.matmul %123, %2, %cst_55 {dimension_numbers = #tpu.dot_dimension_numbers<[1], [0], [0], [1], [0, 0, 1, 1], [], []>} : vector<32x128xf32>, vector<128x128xf32>, vector<32x128xf32> -> vector<32x128xf32>
    %125 = vector.broadcast %7 : vector<1x128xf32> to vector<32x128xf32>
    %126 = arith.addf %124, %125 : vector<32x128xf32>
    %cst_56 = arith.constant dense<0.000000e+00> : vector<32x256xf32>
    %127 = tpu.matmul %126, %3, %cst_56 {dimension_numbers = #tpu.dot_dimension_numbers<[1], [0], [0], [1], [0, 0, 1, 1], [], []>} : vector<32x128xf32>, vector<128x256xf32>, vector<32x256xf32> -> vector<32x256xf32>
    %128 = vector.broadcast %8 : vector<1x256xf32> to vector<32x256xf32>
    %129 = arith.addf %127, %128 : vector<32x256xf32>
    %130 = arith.mulf %129, %129 : vector<32x256xf32>
    %131 = arith.mulf %129, %130 : vector<32x256xf32>
    %cst_57 = arith.constant 4.471500e-02 : f32
    %132 = vector.broadcast %cst_57 : f32 to vector<32x256xf32>
    %133 = arith.mulf %132, %131 : vector<32x256xf32>
    %134 = arith.addf %129, %133 : vector<32x256xf32>
    %cst_58 = arith.constant 0.797884583 : f32
    %135 = vector.broadcast %cst_58 : f32 to vector<32x256xf32>
    %136 = arith.mulf %135, %134 : vector<32x256xf32>
    %137 = math.tanh %136 : vector<32x256xf32>
    %cst_59 = arith.constant 1.000000e+00 : f32
    %138 = vector.broadcast %cst_59 : f32 to vector<32x256xf32>
    %139 = arith.addf %138, %137 : vector<32x256xf32>
    %cst_60 = arith.constant 5.000000e-01 : f32
    %140 = vector.broadcast %cst_60 : f32 to vector<32x256xf32>
    %141 = arith.mulf %140, %139 : vector<32x256xf32>
    %142 = arith.mulf %129, %141 : vector<32x256xf32>
    %cst_61 = arith.constant dense<0.000000e+00> : vector<32x128xf32>
    %143 = tpu.matmul %142, %4, %cst_61 {dimension_numbers = #tpu.dot_dimension_numbers<[1], [0], [0], [1], [0, 0, 1, 1], [], []>} : vector<32x256xf32>, vector<256x128xf32>, vector<32x128xf32> -> vector<32x128xf32>
    %144 = vector.broadcast %9 : vector<1x128xf32> to vector<32x128xf32>
    %145 = arith.addf %143, %144 : vector<32x128xf32>
    %146 = arith.addf %104, %145 : vector<32x128xf32>
    %147 = vector.shape_cast %146 : vector<32x128xf32> to vector<4x8x128xf32>
    %c0_62 = arith.constant 0 : index
    %c0_63 = arith.constant 0 : index
    %c0_64 = arith.constant 0 : index
    %148 = vector.load %arg12[%c0_62, %c0_63, %c0_64] : memref<4x8x128xf32, #tpu.memory_space<vmem>>, vector<4x8x128xf32>
    tpu.vector_store %arg12[%c0_62, %c0_63, %c0_64], %147 {strides = array<i32>} : memref<4x8x128xf32, #tpu.memory_space<vmem>>, vector<4x8x128xf32>,
    return
  }
  func.func @transform_0(%arg0: i32) -> (i32, i32, i32) {
    %c0_i32 = arith.constant 0 : i32
    %c0_i32_0 = arith.constant 0 : i32
    %c0_i32_1 = arith.constant 0 : i32
    return %arg0, %c0_i32, %c0_i32_0 : i32, i32, i32
  }
  func.func @transform_1(%arg0: i32) -> (i32, i32) {
    %c0_i32 = arith.constant 0 : i32
    %c0_i32_0 = arith.constant 0 : i32
    %c0_i32_1 = arith.constant 0 : i32
    return %c0_i32, %c0_i32_0 : i32, i32
  }
  func.func @transform_2(%arg0: i32) -> (i32, i32) {
    %c0_i32 = arith.constant 0 : i32
    %c0_i32_0 = arith.constant 0 : i32
    %c0_i32_1 = arith.constant 0 : i32
    return %c0_i32, %c0_i32_0 : i32, i32
  }
  func.func @transform_3(%arg0: i32) -> (i32, i32) {
    %c0_i32 = arith.constant 0 : i32
    %c0_i32_0 = arith.constant 0 : i32
    %c0_i32_1 = arith.constant 0 : i32
    return %c0_i32, %c0_i32_0 : i32, i32
  }
  func.func @transform_4(%arg0: i32) -> (i32, i32) {
    %c0_i32 = arith.constant 0 : i32
    %c0_i32_0 = arith.constant 0 : i32
    %c0_i32_1 = arith.constant 0 : i32
    return %c0_i32, %c0_i32_0 : i32, i32
  }
  func.func @transform_5(%arg0: i32) -> (i32, i32) {
    %c0_i32 = arith.constant 0 : i32
    %c0_i32_0 = arith.constant 0 : i32
    %c0_i32_1 = arith.constant 0 : i32
    return %c0_i32, %c0_i32_0 : i32, i32
  }
  func.func @transform_6(%arg0: i32) -> (i32, i32) {
    %c0_i32 = arith.constant 0 : i32
    %c0_i32_0 = arith.constant 0 : i32
    %c0_i32_1 = arith.constant 0 : i32
    return %c0_i32, %c0_i32_0 : i32, i32
  }
  func.func @transform_7(%arg0: i32) -> (i32, i32) {
    %c0_i32 = arith.constant 0 : i32
    %c0_i32_0 = arith.constant 0 : i32
    %c0_i32_1 = arith.constant 0 : i32
    return %c0_i32, %c0_i32_0 : i32, i32
  }
  func.func @transform_8(%arg0: i32) -> (i32, i32) {
    %c0_i32 = arith.constant 0 : i32
    %c0_i32_0 = arith.constant 0 : i32
    %c0_i32_1 = arith.constant 0 : i32
    return %c0_i32, %c0_i32_0 : i32, i32
  }
  func.func @transform_9(%arg0: i32) -> (i32, i32) {
    %c0_i32 = arith.constant 0 : i32
    %c0_i32_0 = arith.constant 0 : i32
    %c0_i32_1 = arith.constant 0 : i32
    return %c0_i32, %c0_i32_0 : i32, i32
  }
  func.func @transform_10(%arg0: i32) -> (i32, i32) {
    %c0_i32 = arith.constant 0 : i32
    %c0_i32_0 = arith.constant 0 : i32
    %c0_i32_1 = arith.constant 0 : i32
    return %c0_i32, %c0_i32_0 : i32, i32
  }
  func.func @transform_11(%arg0: i32) -> (i32, i32, i32) {
    %c0_i32 = arith.constant 0 : i32
    %c0_i32_0 = arith.constant 0 : i32
    %c0_i32_1 = arith.constant 0 : i32
    return %arg0, %c0_i32, %c0_i32_0 : i32, i32, i32
  }
}

</mosaic_0001>

<bundles_post_ra>
// kernel: tpu_custom_call.1
= control target key start
LH: loop header
LB: loop body
LE: loop exit
PB: predicated region body
PF: predicated region fallthrough
CT: control target
= control target key end

     0   :  { %16 = vsyncpa [#allocation3], 0  ;;  %s5726_s0 = inlined_call_operand.hbm [shape: f32[4,16,128], index: 0, kind: input, shape index: {}]   ;;  %s5727_s1 = inlined_call_operand.hbm [shape: f32[128,128], index: 1, kind: input, shape index: {}]   ;;  %s5728_s2 = inlined_call_operand.vmem [shape: f32[1,128], index: 2, kind: input, shape index: {}]   ;;  %s5729_s3 = inlined_call_operand.hbm [shape: f32[128,256], index: 3, kind: input, shape index: {}]   ;;  %s5730_s4 = inlined_call_operand.vmem [shape: f32[1,256], index: 4, kind: input, shape index: {}]   ;;  %s5731_s5 = inlined_call_operand.hbm [shape: f32[128,128], index: 5, kind: input, shape index: {}]   ;;  %s5732_s6 = inlined_call_operand.vmem [shape: f32[1,128], index: 6, kind: input, shape index: {}]   ;;  %s5733_s7 = inlined_call_operand.hbm [shape: f32[128,256], index: 7, kind: input, shape index: {}]   ;;  %s5734_s8 = inlined_call_operand.vmem [shape: f32[1,256], index: 8, kind: input, shape index: {}]   ;;  %s5735_s9 = inlined_call_operand.hbm [shape: f32[256,128], index: 9, kind: input, shape index: {}]   ;;  %s5736_s10 = inlined_call_operand.vmem [shape: f32[1,128], index: 10, kind: input, shape index: {}]   ;;  %s5737_s11 = inlined_call_operand.hbm [shape: f32[4,8,128], index: 11, kind: output, shape index: {}]  }
   0x1   :  { %17 = vsyncpa [#allocation6], 0 }
   0x2   :  { %18 = vsyncpa [#allocation9], 0 }
   0x3   :  { %19 = vsyncpa [#allocation12], 0 }
   0x4   :  { %20 = vsyncpa [#allocation4], 0  ;;  %s4653_s17 = smov [#allocation5]   ;;  %s4654_s19 = smov [#allocation8]  }
   0x5   :  { %s38_s18 = sshll.u32 %s4653_s17, 4  ;;  %s66_s20 = sshll.u32 %s4654_s19, 4  ;;  %s39_s18 = int_to_ptr.vmem [resolvable:$true] %s38_s18  ;;  %s67_s20 = int_to_ptr.vmem [resolvable:$true] %s66_s20 }
   0x6   :  { %s4511_s21 = scalar_lea.vmem %s39_s18, 2048  ;;  %p4516_p1 = scmp.lt.s32.totalorder %s39_s18, %s39_s18 }
   0x7   :  { %p4512_p0 = scmp.ne.s32.totalorder %s39_s18, %s4511_s21  ;;  %p4517_p2 = scmp.lt.s32.totalorder %s4511_s21, %s4511_s21 }
   0x9   :  { %p4518_p3 = por %p4517_p2, %p4516_p1 }
   0xb   :  { %p4519_p4 = pnand %p4518_p3, %p4512_p0 }
   0xd   :  { %4522 = shalt.err (!%p4519_p4)
}
   0xe   :  { %s4655_s22 = smov 128   ;;  %s4656_s23 = smov 8  }
   0xf   :  { %44 = dma.hbm_to_vmem [thread:$0]  %s5727_s1, 2048, %s39_s18, [#allocation6], %s4655_s22, %s4655_s22, %s4656_s23  }
  0x10   :  { %s4531_s26 = scalar_lea.vmem %s67_s20, 2048  ;;  %p4536_p6 = scmp.lt.s32.totalorder %s67_s20, %s67_s20 }
  0x11   :  { %p4532_p5 = scmp.ne.s32.totalorder %s67_s20, %s4531_s26  ;;  %p4537_p7 = scmp.lt.s32.totalorder %s4531_s26, %s4531_s26 }
  0x13   :  { %p4538_p8 = por %p4537_p7, %p4536_p6 }
  0x15   :  { %p4539_p9 = pnand %p4538_p8, %p4532_p5 }
  0x17   :  { %4542 = shalt.err (!%p4539_p9)
}
  0x18   :  { %72 = dma.hbm_to_vmem [thread:$0]  %s5731_s5, 2048, %s67_s20, [#allocation9], %s4655_s22, %s4655_s22, %s4656_s23  }
  0x19   :  { %s4657_s29 = smov [#allocation2]   ;;  %s4658_s12 = smov [#allocation7]  }
  0x1a   :  { %s26_s30 = sshll.u32 %s4657_s29, 4  ;;  %s52_s13 = sshll.u32 %s4658_s12, 4  ;;  %s27_s30 = int_to_ptr.vmem [resolvable:$true] %s26_s30  ;;  %s53_s13 = int_to_ptr.vmem [resolvable:$true] %s52_s13 }
  0x1b   :  { %s4551_s1 = scalar_lea.vmem %s27_s30, 1024  ;;  %p4556_p11 = scmp.lt.s32.totalorder %s27_s30, %s27_s30 }
  0x1c   :  { %p4552_p10 = scmp.ne.s32.totalorder %s27_s30, %s4551_s1  ;;  %p4557_p12 = scmp.lt.s32.totalorder %s4551_s1, %s4551_s1 }
  0x1e   :  { %p4558_p13 = por %p4557_p12, %p4556_p11 }
  0x20   :  { %p4559_p0 = pnand %p4558_p13, %p4552_p10 }
  0x22   :  { %4562 = shalt.err (!%p4559_p0)
}
  0x23   :  { %32 = dma.hbm_to_vmem [thread:$0]  %s5726_s0, 1024, %s27_s30, [#allocation3], %s4655_s22, %s4655_s22, %s4656_s23  }
  0x24   :  { %s4571_s5 = scalar_lea.vmem %s53_s13, 4096  ;;  %p4576_p2 = scmp.lt.s32.totalorder %s53_s13, %s53_s13 }
  0x25   :  { %p4572_p1 = scmp.ne.s32.totalorder %s53_s13, %s4571_s5  ;;  %p4577_p3 = scmp.lt.s32.totalorder %s4571_s5, %s4571_s5 }
  0x27   :  { %p4578_p4 = por %p4577_p3, %p4576_p2 }
  0x29   :  { %p4579_p5 = pnand %p4578_p4, %p4572_p1 }
  0x2b   :  { %4582 = shalt.err (!%p4579_p5)
}
  0x2c   :  { %s4659_s16 = smov 256   ;;  %s4660_s17 = smov 16  }
  0x2d   :  { %58 = dma.hbm_to_vmem [thread:$0]  %s5729_s3, 4096, %s53_s13, [#allocation6], %s4659_s16, %s4659_s16, %s4660_s17  }
  0x2e   :  { %s4661_s20 = smov [#allocation10]   ;;  %s4662_s24 = smov [#allocation11]  }
  0x2f   :  { %s80_s21 = sshll.u32 %s4661_s20, 4  ;;  %s94_s25 = sshll.u32 %s4662_s24, 4  ;;  %s81_s21 = int_to_ptr.vmem [resolvable:$true] %s80_s21  ;;  %s95_s25 = int_to_ptr.vmem [resolvable:$true] %s94_s25 }
  0x30   :  { %s4591_s0 = scalar_lea.vmem %s81_s21, 4096  ;;  %p4596_p7 = scmp.lt.s32.totalorder %s81_s21, %s81_s21 }
  0x31   :  { %p4592_p6 = scmp.ne.s32.totalorder %s81_s21, %s4591_s0  ;;  %p4597_p8 = scmp.lt.s32.totalorder %s4591_s0, %s4591_s0 }
  0x33   :  { %p4598_p9 = por %p4597_p8, %p4596_p7 }
  0x35   :  { %p4599_p10 = pnand %p4598_p9, %p4592_p6 }
  0x37   :  { %4602 = shalt.err (!%p4599_p10)
}
  0x38   :  { %86 = dma.hbm_to_vmem [thread:$0]  %s5733_s7, 4096, %s81_s21, [#allocation9], %s4659_s16, %s4659_s16, %s4660_s17  }
  0x39   :  { %s4611_s28 = scalar_lea.vmem %s95_s25, 4096  ;;  %p4616_p12 = scmp.lt.s32.totalorder %s95_s25, %s95_s25 }
  0x3a   :  { %p4612_p11 = scmp.ne.s32.totalorder %s95_s25, %s4611_s28  ;;  %p4617_p13 = scmp.lt.s32.totalorder %s4611_s28, %s4611_s28 }
  0x3c   :  { %p4618_p0 = por %p4617_p13, %p4616_p12 }
  0x3e   :  { %p4619_p1 = pnand %p4618_p0, %p4612_p11 }
  0x40   :  { %4622 = shalt.err (!%p4619_p1)
}
  0x41   :  { %100 = dma.hbm_to_vmem [thread:$0]  %s5735_s9, 4096, %s95_s25, [#allocation12], %s4655_s22, %s4655_s22, %s4656_s23  }
  0x42   :  { %4643 = dma.done.wait [#allocation3], 1024  }
  0x43   :  { %4644 = vsyncadd [#allocation3], 4294966272 }
  0x44   :  { %4645 = dma.done.wait [#allocation6], 6144  }
  0x45   :  { %4646 = vsyncadd [#allocation6], 4294961152 }
  0x46   :  { %4647 = dma.done.wait [#allocation9], 6144  }
  0x47   :  { %4648 = vsyncadd [#allocation9], 4294961152 }
  0x48   :  { %4649 = dma.done.wait [#allocation12], 4096  }
  0x49   :  { %4650 = vsyncadd [#allocation12], 4294963200  ;;  %v5740_v0 = vmov 0.0   ;;  %v168_v1 = vld [vmem:[#allocation7 + $0xf8] sm:$0xff]  ;;  %v167_v2 = vld [vmem:[#allocation7 + $0xf0] sm:$0xff]  ;;  %vm4664_vm0 = vmmov 0   ;;  %v263_v57 = vlaneseq }
  0x4a   :  { %337 = vmatprep.mubr.f32.mxu0 %v5740_v0  ;;  %3931 = vmatprep.mubr.f32.mxu1 %v5740_v0  ;;  %v166_v3 = vld [vmem:[#allocation7 + $0xe8] sm:$0xff]  ;;  %v165_v4 = vld [vmem:[#allocation7 + $0xe0] sm:$0xff]  ;;  %v164_v5 = vld [vmem:[#allocation7 + $0xd8] sm:$0xff]  ;;  %vm761_vm1 = vcmask 130048  }
  0x4b   :  { %273 = vmatprep.subr.mxu0 %v168_v1  ;;  %v163_v6 = vld [vmem:[#allocation7 + $0xd0] sm:$0xff]  ;;  %v4758_v7 = vld [vmem:[#allocation5 + $0x78] sm:$0xff]  ;;  %v162_v8 = vld [vmem:[#allocation7 + $0xc8] sm:$0xff]  ;;  %v4838_v58 = vshrl.u32 %v263_v57, 7 }
  0x4c   :  { %274 = vmatpush1.msra.mxu0 %v167_v2  ;;  %3899 = vmatprep.subr.mxu1 %v4758_v7  ;;  %v4761_v9 = vld [vmem:[#allocation5 + $0x70] sm:$0xff]  ;;  %v161_v10 = vld [vmem:[#allocation7 + $0xc0] sm:$0xff]  ;;  %v4764_v11 = vld [vmem:[#allocation5 + $0x68] sm:$0xff] }
  0x4d   :  { %275 = vmatprep.subr.mxu0 %v166_v3  ;;  %3900 = vmatpush3.msra.mxu1 %v4758_v7  ;;  %v160_v12 = vld [vmem:[#allocation7 + $0xb8] sm:$0xff]  ;;  %v159_v13 = vld [vmem:[#allocation7 + $0xb0] sm:$0xff]  ;;  %v4768_v14 = vld [vmem:[#allocation5 + $0x60] sm:$0xff]  ;;  %v5739_v59 = vsub.s32 0, %v4838_v58  ;;  %v5738_v3 = vsub.s32 1, %v4838_v58 }
  0x4e   :  { %276 = vmatpush1.msra.mxu0 %v165_v4  ;;  %3901 = vmatprep.subr.mxu1 %v4761_v9  ;;  %v158_v15 = vld [vmem:[#allocation7 + $0xa8] sm:$0xff]  ;;  %v157_v16 = vld [vmem:[#allocation7 + $0xa0] sm:$0xff]  ;;  %v4772_v17 = vld [vmem:[#allocation5 + $0x58] sm:$0xff] }
  0x4f   :  { %277 = vmatprep.subr.mxu0 %v164_v5  ;;  %3902 = vmatpush3.msra.mxu1 %v4761_v9  ;;  %v156_v18 = vld [vmem:[#allocation7 + $0x98] sm:$0xff]  ;;  %v155_v19 = vld [vmem:[#allocation7 + $0x90] sm:$0xff]  ;;  %v154_v21 = vld [vmem:[#allocation7 + $0x88] sm:$0xff] }
  0x50   :  { %278 = vmatpush1.msra.mxu0 %v163_v6  ;;  %3903 = vmatprep.subr.mxu1 %v4764_v11  ;;  %v4776_v20 = vld [vmem:[#allocation5 + $0x50] sm:$0xff]  ;;  %v153_v22 = vld [vmem:[#allocation7 + $0x80] sm:$0xff]  ;;  %v4780_v23 = vld [vmem:[#allocation5 + $0x48] sm:$0xff] }
  0x51   :  { %279 = vmatprep.subr.mxu0 %v162_v8  ;;  %3904 = vmatpush3.msra.mxu1 %v4764_v11  ;;  %v152_v24 = vld [vmem:[#allocation7 + $0x78] sm:$0xff]  ;;  %v151_v25 = vld [vmem:[#allocation7 + $0x70] sm:$0xff]  ;;  %v4784_v26 = vld [vmem:[#allocation5 + $0x40] sm:$0xff] }
  0x52   :  { %280 = vmatpush1.msra.mxu0 %v161_v10  ;;  %3905 = vmatprep.subr.mxu1 %v4768_v14  ;;  %v150_v27 = vld [vmem:[#allocation7 + $0x68] sm:$0xff]  ;;  %v149_v28 = vld [vmem:[#allocation7 + $0x60] sm:$0xff]  ;;  %v4788_v29 = vld [vmem:[#allocation5 + $0x38] sm:$0xff] }
  0x53   :  { %281 = vmatprep.subr.mxu0 %v160_v12  ;;  %3906 = vmatpush3.msra.mxu1 %v4768_v14  ;;  %v148_v30 = vld [vmem:[#allocation7 + $0x58] sm:$0xff]  ;;  %v147_v31 = vld [vmem:[#allocation7 + $0x50] sm:$0xff]  ;;  %v146_v33 = vld [vmem:[#allocation7 + $0x48] sm:$0xff] }
  0x54   :  { %282 = vmatpush1.msra.mxu0 %v159_v13  ;;  %3907 = vmatprep.subr.mxu1 %v4772_v17  ;;  %v4792_v32 = vld [vmem:[#allocation5 + $0x30] sm:$0xff]  ;;  %v145_v34 = vld [vmem:[#allocation7 + $0x40] sm:$0xff]  ;;  %v4796_v35 = vld [vmem:[#allocation5 + $0x28] sm:$0xff] }
  0x55   :  { %283 = vmatprep.subr.mxu0 %v158_v15  ;;  %3908 = vmatpush3.msra.mxu1 %v4772_v17  ;;  %v144_v36 = vld [vmem:[#allocation7 + $0x38] sm:$0xff]  ;;  %v143_v37 = vld [vmem:[#allocation7 + $0x30] sm:$0xff]  ;;  %v4800_v38 = vld [vmem:[#allocation5 + $0x20] sm:$0xff] }
  0x56   :  { %284 = vmatpush1.msra.mxu0 %v157_v16  ;;  %3909 = vmatprep.subr.mxu1 %v4776_v20  ;;  %v142_v39 = vld [vmem:[#allocation7 + $0x28] sm:$0xff]  ;;  %v141_v40 = vld [vmem:[#allocation7 + $0x20] sm:$0xff]  ;;  %v4804_v41 = vld [vmem:[#allocation5 + $0x18] sm:$0xff] }
  0x57   :  { %285 = vmatprep.subr.mxu0 %v156_v18  ;;  %3910 = vmatpush3.msra.mxu1 %v4776_v20  ;;  %v140_v42 = vld [vmem:[#allocation7 + $0x18] sm:$0xff]  ;;  %v139_v43 = vld [vmem:[#allocation7 + $0x10] sm:$0xff]  ;;  %v138_v45 = vld [vmem:[#allocation7 + $0x8] sm:$0xff] }
  0x58   :  { %286 = vmatpush1.msra.mxu0 %v155_v19  ;;  %3911 = vmatprep.subr.mxu1 %v4780_v23  ;;  %v4808_v44 = vld [vmem:[#allocation5 + $0x10] sm:$0xff]  ;;  %v137_v46 = vld [vmem:[#allocation7] sm:$0xff]  ;;  %v4812_v47 = vld [vmem:[#allocation5 + $0x8] sm:$0xff] }
  0x59   :  { %287 = vmatprep.subr.mxu0 %v154_v21  ;;  %3912 = vmatpush3.msra.mxu1 %v4780_v23  ;;  %v254_v48 = vld [vmem:[#allocation2] sm:$0xff]  ;;  %v255_v50 = vld [vmem:[#allocation2 + $0x8] sm:$0xff]  ;;  %v256_v51 = vld [vmem:[#allocation2 + $0x10] sm:$0xff] }
  0x5a   :  { %288 = vmatpush1.msra.mxu0 %v153_v22  ;;  %3913 = vmatprep.subr.mxu1 %v4784_v26  ;;  %v4816_v49 = vld [vmem:[#allocation5] sm:$0xff]  ;;  %v257_v52 = vld [vmem:[#allocation2 + $0x18] sm:$0xff]  ;;  %v259_v54 = vld [vmem:[#allocation2 + $0x28] sm:$0xff] }
  0x5b   :  { %289 = vmatprep.subr.mxu0 %v152_v24  ;;  %3914 = vmatpush3.msra.mxu1 %v4784_v26  ;;  %v258_v53 = vld [vmem:[#allocation2 + $0x20] sm:$0xff]  ;;  %v260_v55 = vld [vmem:[#allocation2 + $0x30] sm:$0xff]  ;;  %v261_v56 = vld [vmem:[#allocation2 + $0x38] sm:$0xff] }
  0x5c   :  { %290 = vmatpush1.msra.mxu0 %v151_v25  ;;  %3915 = vmatprep.subr.mxu1 %v4788_v29  ;;  %v250_v60 = vld [vmem:[%s5730_s4] sm:$0x3] }
  0x5d   :  { %291 = vmatprep.subr.mxu0 %v150_v27  ;;  %3916 = vmatpush3.msra.mxu1 %v4788_v29  ;;  %v266_v63 = vrot.slane %v250_v60, %v5739_v59  ;;  %v3560_v6 = vld [vmem:[%s5728_s2] ss:$0 sm:$0xff]  ;;  %v4858_v13 = vrot.slane %v250_v60, %v5738_v3  ;;  %v5047_v3 = vld [vmem:[#allocation10 + $0x98] sm:$0xff]  ;;  %v5050_v59 = vld [vmem:[#allocation10 + $0x90] sm:$0xff] }
  0x5e   :  { %292 = vmatpush1.msra.mxu0 %v149_v28  ;;  %3917 = vmatprep.subr.mxu1 %v4792_v32  ;;  %5833 = vst [vmem:[#allocation30_spill] sm:$0xff] %v5047_v3  ;;  %5834 = vst [vmem:[#allocation31_spill] sm:$0xff] %v5050_v59 }
  0x5f   :  { %293 = vmatprep.subr.mxu0 %v148_v30  ;;  %3918 = vmatpush3.msra.mxu1 %v4792_v32 }
  0x60   :  { %294 = vmatpush1.msra.mxu0 %v147_v31  ;;  %3919 = vmatprep.subr.mxu1 %v4796_v35 }
  0x61   :  { %295 = vmatprep.subr.mxu0 %v146_v33  ;;  %3920 = vmatpush3.msra.mxu1 %v4796_v35 }
  0x62   :  { %296 = vmatpush1.msra.mxu0 %v145_v34  ;;  %3921 = vmatprep.subr.mxu1 %v4800_v38 }
  0x63   :  { %297 = vmatprep.subr.mxu0 %v144_v36  ;;  %3922 = vmatpush3.msra.mxu1 %v4800_v38 }
  0x64   :  { %298 = vmatpush1.msra.mxu0 %v143_v37  ;;  %3923 = vmatprep.subr.mxu1 %v4804_v41 }
  0x65   :  { %299 = vmatprep.subr.mxu0 %v142_v39  ;;  %3924 = vmatpush3.msra.mxu1 %v4804_v41 }
  0x66   :  { %300 = vmatpush1.msra.mxu0 %v141_v40  ;;  %3925 = vmatprep.subr.mxu1 %v4808_v44 }
  0x67   :  { %301 = vmatprep.subr.mxu0 %v140_v42  ;;  %3926 = vmatpush3.msra.mxu1 %v4808_v44 }
  0x68   :  { %302 = vmatpush1.msra.mxu0 %v139_v43  ;;  %3927 = vmatprep.subr.mxu1 %v4812_v47 }
  0x69   :  { %303 = vmatprep.subr.mxu0 %v138_v45  ;;  %3928 = vmatpush3.msra.mxu1 %v4812_v47 }
  0x6a   :  { %304 = vmatpush1.msra.mxu0 %v137_v46  ;;  %3929 = vmatprep.subr.mxu1 %v4816_v49 }
  0x6b   :  { %338 = vmatmul.mubr.f32.vlgmr.msra.gmra.mxu0 %v254_v48  ;;  %3930 = vmatpush3.msra.mxu1 %v4816_v49 }
  0x6c   :  { %343 = vmatprep.mubr.f32.mxu0 %v5740_v0  ;;  %3958 = vmatprep.subr.mxu0 %v5740_v0 }
  0x6d   :  { %3932 = vmatmul.mubr.f32.vlgmr.msra.gmra.mxu1 %v5740_v0  ;;  %3937 = vmatprep.subr.mxu1 %v5740_v0 }
  0x6e   :  { %3934 = vmatprep.mubr.f32.mxu1 %v5740_v0 }
  0x6f   :  { %344 = vmatmul.mubr.f32.gmra.mxu0 %v255_v50 }
  0x70   :  { %349 = vmatprep.mubr.f32.mxu0 %v5740_v0 }
  0x71   :  { %3935 = vmatmul.mubr.f32.gmra.mxu1 %v5740_v0 }
  0x72   :  { %3941 = vmatprep.mubr.msk.f32.mxu1 %vm4664_vm0, %v5740_v0 }
  0x73   :  { %350 = vmatmul.mubr.f32.gmra.mxu0 %v256_v51 }
  0x74   :  { %355 = vmatprep.mubr.f32.mxu0 %v5740_v0 }
  0x77   :  { %356 = vmatmul.mubr.f32.gmra.mxu0 %v257_v52 }
  0x78   :  { %361 = vmatprep.mubr.f32.mxu0 %v5740_v0 }
  0x7b   :  { %362 = vmatmul.mubr.f32.gmra.mxu0 %v258_v53 }
  0x7c   :  { %367 = vmatprep.mubr.f32.mxu0 %v5740_v0 }
  0x7f   :  { %368 = vmatmul.mubr.f32.gmra.mxu0 %v259_v54 }
  0x80   :  { %373 = vmatprep.mubr.f32.mxu0 %v5740_v0 }
  0x83   :  { %374 = vmatmul.mubr.f32.gmra.mxu0 %v260_v55 }
  0x84   :  { %379 = vmatprep.mubr.f32.mxu0 %v5740_v0 }
  0x87   :  { %380 = vmatmul.mubr.f32.gmra.mxu0 %v261_v56 }
  0x88   :  { %3962 = vmatprep.mubr.msk.f32.mxu0 %vm4664_vm0, %v5740_v0 }
 0x12b   :  { %v339_v61 = vpop.f32.mrf.mxu0 }
 0x12c   :  { %v4854_v12 = vadd.f32 %v339_v61, %v266_v63 }
 0x12d   :  { %v341_v62 = vpop.f32.mrf.mxu0  ;;  %v3933_v1 = vpop.f32.mrf.mxu1 }
 0x12e   :  { %v464_v31 = vadd.f32 %v3933_v1, %v3560_v6  ;;  %v4897_v51 = vadd.f32 %v341_v62, %v4858_v13 }
 0x12f   :  { %v345_v2 = vpop.f32.mrf.mxu0  ;;  %v458_v8 = vpop.f32.mrf.mxu1 }
 0x130   :  { %v4847_v4 = vadd.f32 %v345_v2, %v266_v63  ;;  %v459_v16 = vadd.f32 %v3560_v6, %v458_v8 }
 0x131   :  { %v347_v5 = vpop.f32.mrf.mxu0  ;;  %v3936_v30 = vpop.f32.mrf.mxu1 }
 0x132   :  { %3938 = vmatpush3.xpose.msra.mxu1 %v4847_v4  ;;  %v4892_v48 = vadd.f32 %v347_v5, %v4858_v13  ;;  %v474_v53 = vadd.f32 %v3936_v30, %v3560_v6 }
 0x133   :  { %v351_v10 = vpop.f32.mrf.mxu0  ;;  %3939 = vmatprep.subr.mxu1 %v5740_v0  ;;  %v468_v37 = vpop.f32.mrf.mxu1 }
 0x134   :  { %v4874_v27 = vadd.f32 %v351_v10, %v266_v63  ;;  %v469_v43 = vadd.f32 %v3560_v6, %v468_v37 }
 0x135   :  { %v353_v15 = vpop.f32.mrf.mxu0 }
 0x136   :  { %v4861_v18 = vadd.f32 %v353_v15, %v4858_v13  ;;  %3940 = vmatpush3.xpose.msra.mxu1 %v4854_v12 }
 0x137   :  { %v357_v19 = vpop.f32.mrf.mxu0  ;;  %3944 = vmatprep.subr.mxu1 %v5740_v0 }
 0x138   :  { %v4865_v21 = vadd.f32 %v357_v19, %v266_v63 }
 0x139   :  { %v359_v22 = vpop.f32.mrf.mxu0  ;;  %3942 = vmatmul.mubr.f32.vlgmr.msra.gmra.mxu1 %v459_v16 }
 0x13a   :  { %v4868_v24 = vadd.f32 %v359_v22, %v4858_v13  ;;  %3945 = vmatpush3.xpose.msra.mxu1 %v4865_v21  ;;  %3948 = vmatprep.mubr.msk.f32.mxu1 %vm4664_vm0, %v5740_v0 }
 0x13b   :  { %v363_v25 = vpop.f32.mrf.mxu0  ;;  %3946 = vmatprep.subr.mxu1 %v5740_v0 }
 0x13c   :  { %v4884_v40 = vadd.f32 %v363_v25, %v266_v63 }
 0x13d   :  { %v365_v28 = vpop.f32.mrf.mxu0 }
 0x13e   :  { %3947 = vmatpush3.xpose.msra.mxu1 %v4874_v27  ;;  %v4915_v55 = vadd.f32 %v365_v28, %v4858_v13 }
 0x13f   :  { %v369_v33 = vpop.f32.mrf.mxu0  ;;  %3951 = vmatprep.subr.mxu1 %v5740_v0 }
 0x140   :  { %v4878_v34 = vadd.f32 %v369_v33, %v266_v63 }
 0x141   :  { %v371_v36 = vpop.f32.mrf.mxu0  ;;  %3949 = vmatmul.mubr.f32.vlgmr.msra.gmra.mxu1 %v464_v31 }
 0x142   :  { %3952 = vmatpush3.xpose.msra.mxu1 %v4878_v34  ;;  %3955 = vmatprep.mubr.msk.f32.mxu1 %vm4664_vm0, %v5740_v0  ;;  %v4912_v54 = vadd.f32 %v371_v36, %v4858_v13 }
 0x143   :  { %v375_v39 = vpop.f32.mrf.mxu0  ;;  %3953 = vmatprep.subr.mxu1 %v5740_v0 }
 0x144   :  { %v4903_v52 = vadd.f32 %v375_v39, %v266_v63 }
 0x145   :  { %v377_v42 = vpop.f32.mrf.mxu0 }
 0x146   :  { %v4887_v45 = vadd.f32 %v377_v42, %v4858_v13  ;;  %3954 = vmatpush3.xpose.msra.mxu1 %v4884_v40 }
 0x147   :  { %v381_v46 = vpop.f32.mrf.mxu0  ;;  %3965 = vmatprep.subr.mxu1 %v5740_v0 }
 0x148   :  { %v4894_v50 = vadd.f32 %v381_v46, %v266_v63 }
 0x149   :  { %3956 = vmatmul.mubr.f32.vlgmr.msra.gmra.mxu1 %v469_v43  ;;  %v383_v15 = vpop.f32.mrf.mxu0 }
 0x14a   :  { %3959 = vmatpush3.xpose.msra.mxu0 %v4894_v50  ;;  %3966 = vmatpush3.msra.mxu1 %v4892_v48 }
 0x14b   :  { %3967 = vmatprep.subr.mxu1 %v5740_v0  ;;  %3960 = vmatprep.subr.mxu0 %v5740_v0 }
 0x14c   :  { %3968 = vmatpush3.msra.mxu1 %v4897_v51  ;;  %3969 = vmatprep.mubr.msk.f32.mxu1 %vm4664_vm0, %v5740_v0 }
 0x14d   :  { %3972 = vmatprep.subr.mxu1 %v5740_v0 }
 0x14e   :  { %3961 = vmatpush3.xpose.msra.mxu0 %v4903_v52 }
 0x14f   :  { %3979 = vmatprep.subr.mxu0 %v5740_v0 }
 0x151   :  { %3963 = vmatmul.mubr.f32.vlgmr.msra.gmra.mxu0 %v474_v53 }
 0x152   :  { %3980 = vmatpush3.msra.mxu0 %v4912_v54  ;;  %3983 = vmatprep.mubr.msk.f32.mxu0 %vm4664_vm0, %v5740_v0 }
 0x153   :  { %3981 = vmatprep.subr.mxu0 %v5740_v0 }
 0x154   :  { %3982 = vmatpush3.msra.mxu0 %v4915_v55 }
 0x1f9   :  { %v543_v56 = vpop.f32.mrf.mxu1 }
 0x1fa   :  { %v757_v57 = vmul.f32 0.088388346, %v543_v56 }
 0x1fb   :  { %v3943_v60 = vpop.f32.mrf.mxu1 }
 0x1fc   :  { %v762_v61 = vsel %vm761_vm1, %v757_v57, -inf }
 0x1fd   :  { %763 = vmax.xlane.f32.xlu0 %v762_v61 }
 0x201   :  { %v613_v62 = vpop.f32.mrf.mxu1 }
 0x202   :  { %v758_v63 = vmul.f32 0.088388346, %v613_v62 }
 0x203   :  { %v3950_v1 = vpop.f32.mrf.mxu1 }
 0x204   :  { %v765_v2 = vsel %vm761_vm1, %v758_v63, -inf }
 0x205   :  { %766 = vmax.xlane.f32.xlu0 %v765_v2 }
 0x209   :  { %v683_v5 = vpop.f32.mrf.mxu1 }
 0x20a   :  { %v759_v6 = vmul.f32 0.088388346, %v683_v5 }
 0x20b   :  { %v3957_v8 = vpop.f32.mrf.mxu1 }
 0x20c   :  { %v768_v10 = vsel %vm761_vm1, %v759_v6, -inf }
 0x20d   :  { %769 = vmax.xlane.f32.xlu1 %v768_v10 }
 0x211   :  { %v753_v16 = vpop.f32.mrf.mxu0 }
 0x212   :  { %v760_v19 = vmul.f32 0.088388346, %v753_v16 }
 0x213   :  { %v3964_v22 = vpop.f32.mrf.mxu0 }
 0x214   :  { %v771_v25 = vsel %vm761_vm1, %v760_v19, -inf }
 0x215   :  { %772 = vmax.xlane.f32.xlu1 %v771_v25 }
 0x286   :  { %v764_v28 = vpop.xlane.xlu0 %763 }
 0x287   :  { %v774_v30 = vsub.f32 %v757_v57, %v764_v28 }
 0x289   :  { %v778_v31 = vmul.f32 1.442695, %v774_v30  ;;  %v4941_v30 = vadd.f32 %v383_v15, %v4858_v13  ;;  %v4953_v13 = vld [vmem:[#allocation8 + $0x68] sm:$0xff]  ;;  %v4957_v15 = vld [vmem:[#allocation8 + $0x60] sm:$0xff] }
 0x28b   :  { %4308 = vpow2.f32 %v778_v31 }
 0x28e   :  { %v767_v33 = vpop.xlane.xlu0 %766 }
 0x28f   :  { %v775_v36 = vsub.f32 %v758_v63, %v767_v33 }
 0x291   :  { %v780_v37 = vmul.f32 1.442695, %v775_v36 }
 0x293   :  { %4310 = vpow2.f32 %v780_v37  ;;  %v4949_v37 = vld [vmem:[#allocation8 + $0x70] sm:$0xff] }
 0x296   :  { %v770_v39 = vpop.xlane.xlu1 %769 }
 0x297   :  { %v776_v42 = vsub.f32 %v759_v6, %v770_v39  ;;  %v4930_v6 = vld [vmem:[#allocation8 + $0x78] sm:$0xff] }
 0x298   :  { %v4309_v43 = vpop.eup %4308  ;;  %3993 = vmatprep.subr.mxu0 %v4930_v6 }
 0x299   :  { %v782_v46 = vmul.f32 1.442695, %v776_v42  ;;  %v786_v53 = vsel %vm761_vm1, %v4309_v43, 0.0  ;;  %v4961_v42 = vld [vmem:[#allocation8 + $0x58] sm:$0xff] }
 0x29a   :  { %787 = vadd.xlane.f32.xlu0 %v786_v53  ;;  %v4970_v53 = vld [vmem:[#allocation8 + $0x48] sm:$0xff] }
 0x29b   :  { %4312 = vpow2.f32 %v782_v46  ;;  %v4965_v46 = vld [vmem:[#allocation8 + $0x50] sm:$0xff]  ;;  %5823 = vst [vmem:[#allocation20_spill] sm:$0xff] %v4970_v53 }
 0x29c   :  { %5822 = vst [vmem:[#allocation19_spill] sm:$0xff] %v4965_v46 }
 0x29e   :  { %v773_v56 = vpop.xlane.xlu1 %772 }
 0x29f   :  { %v777_v60 = vsub.f32 %v760_v19, %v773_v56  ;;  %v4975_v56 = vld [vmem:[#allocation8 + $0x40] sm:$0xff] }
 0x2a0   :  { %v4311_v61 = vpop.eup %4310  ;;  %5824 = vst [vmem:[#allocation21_spill] sm:$0xff] %v4975_v56 }
 0x2a1   :  { %v784_v62 = vmul.f32 1.442695, %v777_v60  ;;  %v789_v57 = vsel %vm761_vm1, %v4311_v61, 0.0  ;;  %v4979_v60 = vld [vmem:[#allocation8 + $0x38] sm:$0xff] }
 0x2a2   :  { %790 = vadd.xlane.f32.xlu1 %v789_v57  ;;  %5825 = vst [vmem:[#allocation22_spill] sm:$0xff] %v4979_v60  ;;  %v4991_v57 = vld [vmem:[#allocation8 + $0x20] sm:$0xff] }
 0x2a3   :  { %4314 = vpow2.f32 %v784_v62  ;;  %v4987_v62 = vld [vmem:[#allocation8 + $0x28] sm:$0xff]  ;;  %5828 = vst [vmem:[#allocation25_spill] sm:$0xff] %v4991_v57 }
 0x2a4   :  { %5827 = vst [vmem:[#allocation24_spill] sm:$0xff] %v4987_v62 }
 0x2a8   :  { %v4313_v1 = vpop.eup %4312 }
 0x2a9   :  { %v792_v63 = vsel %vm761_vm1, %v4313_v1, 0.0 }
 0x2aa   :  { %793 = vadd.xlane.f32.xlu0 %v792_v63  ;;  %v5001_v63 = vld [vmem:[#allocation8 + $0x10] sm:$0xff] }
 0x2ab   :  { %5830 = vst [vmem:[#allocation27_spill] sm:$0xff] %v5001_v63 }
 0x2b0   :  { %v4315_v2 = vpop.eup %4314 }
 0x2b1   :  { %v795_v5 = vsel %vm761_vm1, %v4315_v2, 0.0 }
 0x2b2   :  { %796 = vadd.xlane.f32.xlu1 %v795_v5  ;;  %v5007_v5 = vld [vmem:[#allocation8] sm:$0xff] }
 0x2b3   :  { %5832 = vst [vmem:[#allocation29_spill] sm:$0xff] %v5007_v5 }
 0x323   :  { %v788_v8 = vpop.xlane.xlu0 %787 }
 0x324   :  { %4316 = vrcp.f32 %v788_v8  ;;  %v5013_v8 = vld [vmem:[#allocation10 + $0xf8] sm:$0xff] }
 0x32b   :  { %v791_v10 = vpop.xlane.xlu1 %790 }
 0x32c   :  { %4318 = vrcp.f32 %v791_v10  ;;  %v5015_v10 = vld [vmem:[#allocation10 + $0xf0] sm:$0xff] }
 0x331   :  { %v4317_v16 = vpop.eup %4316 }
 0x332   :  { %v802_v19 = vmul.f32 %v4317_v16, %v4309_v43  ;;  %v5017_v16 = vld [vmem:[#allocation10 + $0xe8] sm:$0xff] }
 0x333   :  { %v794_v22 = vpop.xlane.xlu0 %793 }
 0x334   :  { %4320 = vrcp.f32 %v794_v22  ;;  %3970 = vmatmul.mubr.msk.f32.vlgmr.msra.gmra.mxu1 %vm761_vm1, %v802_v19  ;;  %v5020_v19 = vld [vmem:[#allocation10 + $0xe0] sm:$0xff]  ;;  %v5023_v22 = vld [vmem:[#allocation10 + $0xd8] sm:$0xff] }
 0x335   :  { %3973 = vmatpush3.msra.mxu1 %v4868_v24  ;;  %3976 = vmatprep.mubr.msk.f32.mxu1 %vm4664_vm0, %v5740_v0 }
 0x336   :  { %3974 = vmatprep.subr.mxu1 %v5740_v0 }
 0x337   :  { %3975 = vmatpush3.msra.mxu1 %v4861_v18 }
 0x338   :  { %3986 = vmatprep.subr.mxu1 %v5740_v0 }
 0x339   :  { %v4319_v25 = vpop.eup %4318 }
 0x33a   :  { %v803_v28 = vmul.f32 %v4319_v25, %v4311_v61  ;;  %v4983_v61 = vld [vmem:[#allocation8 + $0x30] sm:$0xff] }
 0x33b   :  { %v797_v31 = vpop.xlane.xlu1 %796  ;;  %5826 = vst [vmem:[#allocation23_spill] sm:$0xff] %v4983_v61  ;;  %v5026_v25 = vld [vmem:[#allocation10 + $0xd0] sm:$0xff] }
 0x33c   :  { %4322 = vrcp.f32 %v797_v31  ;;  %3977 = vmatmul.mubr.msk.f32.vlgmr.msra.gmra.mxu1 %vm761_vm1, %v803_v28  ;;  %v5029_v28 = vld [vmem:[#allocation10 + $0xc8] sm:$0xff]  ;;  %v5032_v31 = vld [vmem:[#allocation10 + $0xc0] sm:$0xff] }
 0x33d   :  { %3987 = vmatpush3.msra.mxu1 %v4941_v30  ;;  %3990 = vmatprep.mubr.msk.f32.mxu1 %vm4664_vm0, %v5740_v0 }
 0x33e   :  { %3988 = vmatprep.subr.mxu1 %v5740_v0 }
 0x33f   :  { %3989 = vmatpush3.msra.mxu1 %v4887_v45 }
 0x340   :  { %1200 = vmatprep.subr.mxu1 %v5013_v8 }
 0x341   :  { %v4321_v33 = vpop.eup %4320 }
 0x342   :  { %v804_v36 = vmul.f32 %v4321_v33, %v4313_v1  ;;  %v4997_v1 = vld [vmem:[#allocation8 + $0x18] sm:$0xff] }
 0x343   :  { %5829 = vst [vmem:[#allocation26_spill] sm:$0xff] %v4997_v1  ;;  %v5035_v33 = vld [vmem:[#allocation10 + $0xb8] sm:$0xff] }
 0x344   :  { %3984 = vmatmul.mubr.msk.f32.vlgmr.msra.gmra.mxu0 %vm761_vm1, %v804_v36  ;;  %v5038_v36 = vld [vmem:[#allocation10 + $0xb0] sm:$0xff] }
 0x345   :  { %3994 = vmatpush3.msra.mxu0 %v4930_v6 }
 0x346   :  { %3995 = vmatprep.subr.mxu0 %v4949_v37 }
 0x347   :  { %3996 = vmatpush3.msra.mxu0 %v4949_v37 }
 0x348   :  { %3997 = vmatprep.subr.mxu0 %v4953_v13 }
 0x349   :  { %v4323_v39 = vpop.eup %4322  ;;  %3998 = vmatpush3.msra.mxu0 %v4953_v13 }
 0x34a   :  { %v805_v43 = vmul.f32 %v4323_v39, %v4315_v2  ;;  %3999 = vmatprep.subr.mxu0 %v4957_v15  ;;  %v5003_v2 = vld [vmem:[#allocation8 + $0x8] sm:$0xff] }
 0x34b   :  { %4000 = vmatpush3.msra.mxu0 %v4957_v15  ;;  %5831 = vst [vmem:[#allocation28_spill] sm:$0xff] %v5003_v2  ;;  %v5041_v39 = vld [vmem:[#allocation10 + $0xa8] sm:$0xff] }
 0x34c   :  { %3991 = vmatmul.mubr.msk.f32.vlgmr.msra.gmra.mxu1 %vm761_vm1, %v805_v43  ;;  %4001 = vmatprep.subr.mxu0 %v4961_v42  ;;  %v5044_v43 = vld [vmem:[#allocation10 + $0xa0] sm:$0xff] }
 0x34d   :  { %4002 = vmatpush3.msra.mxu0 %v4961_v42  ;;  %1264 = vmatprep.mubr.f32.mxu1 %v5740_v0  ;;  %v5053_v0 = vld [vmem:[#allocation10 + $0x88] sm:$0xff] }
 0x34e   :  { %4003 = vmatprep.subr.mxu0 %v4965_v46  ;;  %1201 = vmatpush1.msra.mxu1 %v5015_v10  ;;  %5835 = vst [vmem:[#allocation32_spill] sm:$0xff] %v5053_v0 }
 0x34f   :  { %4004 = vmatpush3.msra.mxu0 %v4965_v46  ;;  %1202 = vmatprep.subr.mxu1 %v5017_v16 }
 0x350   :  { %4005 = vmatprep.subr.mxu0 %v4970_v53  ;;  %1203 = vmatpush1.msra.mxu1 %v5020_v19 }
 0x351   :  { %4006 = vmatpush3.msra.mxu0 %v4970_v53  ;;  %1204 = vmatprep.subr.mxu1 %v5023_v22 }
 0x352   :  { %4007 = vmatprep.subr.mxu0 %v4975_v56  ;;  %1205 = vmatpush1.msra.mxu1 %v5026_v25 }
 0x353   :  { %4008 = vmatpush3.msra.mxu0 %v4975_v56  ;;  %1206 = vmatprep.subr.mxu1 %v5029_v28  ;;  %v5080_v56 = vld [vmem:[#allocation10 + $0x40] sm:$0xff] }
 0x354   :  { %4009 = vmatprep.subr.mxu0 %v4979_v60  ;;  %1207 = vmatpush1.msra.mxu1 %v5032_v31  ;;  %5844 = vst [vmem:[#allocation41_spill] sm:$0xff] %v5080_v56 }
 0x355   :  { %4010 = vmatpush3.msra.mxu0 %v4979_v60  ;;  %1208 = vmatprep.subr.mxu1 %v5035_v33  ;;  %v5077_v60 = vld [vmem:[#allocation10 + $0x48] sm:$0xff] }
 0x356   :  { %4011 = vmatprep.subr.mxu0 %v4983_v61  ;;  %1209 = vmatpush1.msra.mxu1 %v5038_v36  ;;  %5843 = vst [vmem:[#allocation40_spill] sm:$0xff] %v5077_v60 }
 0x357   :  { %4012 = vmatpush3.msra.mxu0 %v4983_v61  ;;  %1210 = vmatprep.subr.mxu1 %v5041_v39  ;;  %v5074_v61 = vld [vmem:[#allocation10 + $0x50] sm:$0xff] }
 0x358   :  { %4013 = vmatprep.subr.mxu0 %v4987_v62  ;;  %1211 = vmatpush1.msra.mxu1 %v5044_v43  ;;  %5842 = vst [vmem:[#allocation39_spill] sm:$0xff] %v5074_v61 }
 0x359   :  { %4014 = vmatpush3.msra.mxu0 %v4987_v62  ;;  %1212 = vmatprep.subr.mxu1 %v5047_v3  ;;  %v5071_v62 = vld [vmem:[#allocation10 + $0x58] sm:$0xff] }
 0x35a   :  { %4015 = vmatprep.subr.mxu0 %v4991_v57  ;;  %1213 = vmatpush1.msra.mxu1 %v5050_v59  ;;  %5841 = vst [vmem:[#allocation38_spill] sm:$0xff] %v5071_v62  ;;  %v5094_v59 = vld [vmem:[#allocation10 + $0x20] sm:$0xff] }
 0x35b   :  { %4016 = vmatpush3.msra.mxu0 %v4991_v57  ;;  %1214 = vmatprep.subr.mxu1 %v5053_v0  ;;  %v5068_v57 = vld [vmem:[#allocation10 + $0x60] sm:$0xff]  ;;  %5848 = vst [vmem:[#allocation45_spill] sm:$0xff] %v5094_v59 }
 0x35c   :  { %4017 = vmatprep.subr.mxu0 %v4997_v1  ;;  %5840 = vst [vmem:[#allocation37_spill] sm:$0xff] %v5068_v57 }
 0x35d   :  { %4018 = vmatpush3.msra.mxu0 %v4997_v1  ;;  %v5065_v1 = vld [vmem:[#allocation10 + $0x68] sm:$0xff] }
 0x35e   :  { %4019 = vmatprep.subr.mxu0 %v5001_v63  ;;  %5839 = vst [vmem:[#allocation36_spill] sm:$0xff] %v5065_v1 }
 0x35f   :  { %4020 = vmatpush3.msra.mxu0 %v5001_v63  ;;  %v5062_v63 = vld [vmem:[#allocation10 + $0x70] sm:$0xff] }
 0x360   :  { %4021 = vmatprep.subr.mxu0 %v5003_v2  ;;  %5838 = vst [vmem:[#allocation35_spill] sm:$0xff] %v5062_v63 }
 0x361   :  { %4022 = vmatpush3.msra.mxu0 %v5003_v2  ;;  %v5059_v2 = vld [vmem:[#allocation10 + $0x78] sm:$0xff] }
 0x362   :  { %4023 = vmatprep.subr.mxu0 %v5007_v5  ;;  %5837 = vst [vmem:[#allocation34_spill] sm:$0xff] %v5059_v2 }
 0x363   :  { %4024 = vmatpush3.msra.mxu0 %v5007_v5  ;;  %v5056_v5 = vld [vmem:[#allocation10 + $0x80] sm:$0xff] }
 0x364   :  { %5836 = vst [vmem:[#allocation33_spill] sm:$0xff] %v5056_v5  ;;  %1215 = vmatpush1.msra.mxu1 %v5056_v5 }
 0x365   :  { %1216 = vmatprep.subr.mxu1 %v5059_v2  ;;  %v5083_v2 = vld [vmem:[#allocation10 + $0x38] sm:$0xff] }
 0x366   :  { %1217 = vmatpush1.msra.mxu1 %v5062_v63  ;;  %5845 = vst [vmem:[#allocation42_spill] sm:$0xff] %v5083_v2  ;;  %v5086_v63 = vld [vmem:[#allocation10 + $0x30] sm:$0xff] }
 0x367   :  { %1218 = vmatprep.subr.mxu1 %v5065_v1  ;;  %5846 = vst [vmem:[#allocation43_spill] sm:$0xff] %v5086_v63  ;;  %v5089_v1 = vld [vmem:[#allocation10 + $0x28] sm:$0xff] }
 0x368   :  { %1219 = vmatpush1.msra.mxu1 %v5068_v57  ;;  %5847 = vst [vmem:[#allocation44_spill] sm:$0xff] %v5089_v1 }
 0x369   :  { %1220 = vmatprep.subr.mxu1 %v5071_v62 }
 0x36a   :  { %1221 = vmatpush1.msra.mxu1 %v5074_v61 }
 0x36b   :  { %1222 = vmatprep.subr.mxu1 %v5077_v60 }
 0x36c   :  { %1223 = vmatpush1.msra.mxu1 %v5080_v56 }
 0x36d   :  { %1224 = vmatprep.subr.mxu1 %v5083_v2  ;;  %v5097_v2 = vld [vmem:[#allocation10 + $0x18] sm:$0xff] }
 0x36e   :  { %1225 = vmatpush1.msra.mxu1 %v5086_v63  ;;  %5849 = vst [vmem:[#allocation46_spill] sm:$0xff] %v5097_v2 }
 0x36f   :  { %1226 = vmatprep.subr.mxu1 %v5089_v1  ;;  %v5100_v1 = vld [vmem:[#allocation10 + $0x10] sm:$0xff] }
 0x370   :  { %1227 = vmatpush1.msra.mxu1 %v5094_v59  ;;  %5850 = vst [vmem:[#allocation47_spill] sm:$0xff] %v5100_v1 }
 0x371   :  { %1228 = vmatprep.subr.mxu1 %v5097_v2 }
 0x372   :  { %1229 = vmatpush1.msra.mxu1 %v5100_v1 }
 0x3f4   :  { %v875_v62 = vpop.f32.mrf.mxu1 }
 0x3f5   :  { %4025 = vmatprep.mubr.f32.mxu0 %v875_v62  ;;  %v5105_v62 = vld [vmem:[#allocation10] sm:$0xff] }
 0x3f6   :  { %v3971_v57 = vpop.f32.mrf.mxu1  ;;  %5852 = vst [vmem:[#allocation49_spill] sm:$0xff] %v5105_v62 }
 0x3f7   :  { %v5854_v57 = vmov 0.0  }
 0x3fc   :  { %v948_v61 = vpop.f32.mrf.mxu1 }
 0x3fd   :  { %4026 = vmatmul.mubr.f32.vlgmr.msra.gmra.mxu0 %v948_v61  ;;  %v5103_v61 = vld [vmem:[#allocation10 + $0x8] sm:$0xff] }
 0x3fe   :  { %v3978_v5 = vpop.f32.mrf.mxu1  ;;  %5851 = vst [vmem:[#allocation48_spill] sm:$0xff] %v5103_v61  ;;  %1230 = vmatprep.subr.mxu1 %v5103_v61 }
 0x3ff   :  { %1231 = vmatpush1.msra.mxu1 %v5105_v62 }
 0x400   :  { %4031 = vmatprep.subr.mxu1 %v4758_v7 }
 0x404   :  { %v1021_v0 = vpop.f32.mrf.mxu0 }
 0x405   :  { %4028 = vmatprep.mubr.f32.mxu0 %v1021_v0 }
 0x406   :  { %v3985_v60 = vpop.f32.mrf.mxu0 }
 0x40c   :  { %v1094_v53 = vpop.f32.mrf.mxu1 }
 0x40d   :  { %4029 = vmatmul.mubr.f32.gmra.mxu0 %v1094_v53  ;;  %v5113_v53 = vld [vmem:[%s5732_s6] ss:$0 sm:$0xff] }
 0x40e   :  { %v3992_v56 = vpop.f32.mrf.mxu1  ;;  %5853 = vst [vmem:[#allocation50_spill] sm:$0xff] %v5113_v53 }
 0x4bd   :  { %v4027_v0 = vpop.f32.mrf.mxu0 }
 0x4be   :  { %v1176_v5 = vadd.f32 %v4027_v0, %v5113_v53  ;;  %v5190_v0 = vld [vmem:[#allocation11 + $0xc8] sm:$0xff] }
 0x4bf   :  { %v1170_v56 = vpop.f32.mrf.mxu0  ;;  %5867 = vst [vmem:[#allocation63_spill] sm:$0xff] %v5190_v0 }
 0x4c0   :  { %v1171_v60 = vadd.f32 %v5113_v53, %v1170_v56  ;;  %v5193_v56 = vld [vmem:[#allocation11 + $0x48] sm:$0xff] }
 0x4c1   :  { %5868 = vst [vmem:[#allocation64_spill] sm:$0xff] %v5193_v56 }
 0x4c2   :  { %1265 = vmatmul.mubr.f32.vlgmr.msra.gmra.mxu1 %v1171_v60  ;;  %v5196_v60 = vld [vmem:[#allocation11 + $0xc0] sm:$0xff] }
 0x4c3   :  { %1270 = vmatprep.mubr.f32.mxu1 %v5854_v57  ;;  %4032 = vmatpush3.msra.mxu1 %v4758_v7  ;;  %5869 = vst [vmem:[#allocation65_spill] sm:$0xff] %v5196_v60 }
 0x4c4   :  { %4033 = vmatprep.subr.mxu1 %v4761_v9 }
 0x4c5   :  { %4034 = vmatpush3.msra.mxu1 %v4761_v9 }
 0x4c6   :  { %1271 = vmatmul.mubr.f32.gmra.mxu1 %v1176_v5  ;;  %4035 = vmatprep.subr.mxu1 %v4764_v11  ;;  %v5199_v5 = vld [vmem:[#allocation11 + $0x40] sm:$0xff] }
 0x4c7   :  { %1276 = vmatprep.mubr.f32.mxu1 %v5854_v57  ;;  %4036 = vmatpush3.msra.mxu1 %v4764_v11  ;;  %5870 = vst [vmem:[#allocation66_spill] sm:$0xff] %v5199_v5 }
 0x4c8   :  { %4037 = vmatprep.subr.mxu1 %v4768_v14 }
 0x4c9   :  { %4038 = vmatpush3.msra.mxu1 %v4768_v14 }
 0x4ca   :  { %4039 = vmatprep.subr.mxu1 %v4772_v17 }
 0x4cb   :  { %4040 = vmatpush3.msra.mxu1 %v4772_v17  ;;  %v5154_v17 = vld [vmem:[#allocation11 + $0xf8] sm:$0xff] }
 0x4cc   :  { %4041 = vmatprep.subr.mxu1 %v4776_v20  ;;  %5855 = vst [vmem:[#allocation51_spill] sm:$0xff] %v5154_v17  ;;  %3639 = vmatprep.subr.mxu0 %v5154_v17 }
 0x4cd   :  { %v4030_v7 = vpop.f32.mrf.mxu0  ;;  %4042 = vmatpush3.msra.mxu1 %v4776_v20  ;;  %v5157_v20 = vld [vmem:[#allocation11 + $0x78] sm:$0xff] }
 0x4ce   :  { %4043 = vmatprep.subr.mxu1 %v4780_v23  ;;  %v1186_v14 = vadd.f32 %v4030_v7, %v5113_v53  ;;  %5856 = vst [vmem:[#allocation52_spill] sm:$0xff] %v5157_v20  ;;  %3640 = vmatpush3.msra.mxu0 %v5157_v20  ;;  %v5202_v7 = vld [vmem:[#allocation11 + $0xb8] sm:$0xff] }
 0x4cf   :  { %v1180_v9 = vpop.f32.mrf.mxu0  ;;  %4044 = vmatpush3.msra.mxu1 %v4780_v23  ;;  %v5160_v23 = vld [vmem:[#allocation11 + $0xf0] sm:$0xff]  ;;  %5871 = vst [vmem:[#allocation67_spill] sm:$0xff] %v5202_v7 }
 0x4d0   :  { %v1181_v11 = vadd.f32 %v5113_v53, %v1180_v9  ;;  %4045 = vmatprep.subr.mxu1 %v4784_v26  ;;  %5857 = vst [vmem:[#allocation53_spill] sm:$0xff] %v5160_v23  ;;  %3641 = vmatprep.subr.mxu0 %v5160_v23  ;;  %v5205_v9 = vld [vmem:[#allocation11 + $0x38] sm:$0xff]  ;;  %v5214_v53 = vld [vmem:[#allocation11 + $0xa8] sm:$0xff] }
 0x4d1   :  { %4046 = vmatpush3.msra.mxu1 %v4784_v26  ;;  %v5163_v26 = vld [vmem:[#allocation11 + $0x70] sm:$0xff]  ;;  %5872 = vst [vmem:[#allocation68_spill] sm:$0xff] %v5205_v9  ;;  %5875 = vst [vmem:[#allocation71_spill] sm:$0xff] %v5214_v53 }
 0x4d2   :  { %1277 = vmatmul.mubr.f32.gmra.mxu1 %v1181_v11  ;;  %4047 = vmatprep.subr.mxu1 %v4788_v29  ;;  %5858 = vst [vmem:[#allocation54_spill] sm:$0xff] %v5163_v26  ;;  %v5208_v11 = vld [vmem:[#allocation11 + $0xb0] sm:$0xff] }
 0x4d3   :  { %1282 = vmatprep.mubr.f32.mxu1 %v5854_v57  ;;  %4048 = vmatpush3.msra.mxu1 %v4788_v29  ;;  %v5166_v29 = vld [vmem:[#allocation11 + $0xe8] sm:$0xff]  ;;  %5873 = vst [vmem:[#allocation69_spill] sm:$0xff] %v5208_v11 }
 0x4d4   :  { %4049 = vmatprep.subr.mxu1 %v4792_v32  ;;  %3642 = vmatpush3.msra.mxu0 %v5163_v26  ;;  %5859 = vst [vmem:[#allocation55_spill] sm:$0xff] %v5166_v29 }
 0x4d5   :  { %4050 = vmatpush3.msra.mxu1 %v4792_v32  ;;  %3643 = vmatprep.subr.mxu0 %v5166_v29  ;;  %v5169_v32 = vld [vmem:[#allocation11 + $0x68] sm:$0xff] }
 0x4d6   :  { %1283 = vmatmul.mubr.f32.gmra.mxu1 %v1186_v14  ;;  %4051 = vmatprep.subr.mxu1 %v4796_v35  ;;  %5860 = vst [vmem:[#allocation56_spill] sm:$0xff] %v5169_v32  ;;  %v5211_v14 = vld [vmem:[#allocation11 + $0x30] sm:$0xff] }
 0x4d7   :  { %4052 = vmatpush3.msra.mxu1 %v4796_v35  ;;  %3644 = vmatpush3.msra.mxu0 %v5169_v32  ;;  %v5172_v35 = vld [vmem:[#allocation11 + $0xe0] sm:$0xff]  ;;  %5874 = vst [vmem:[#allocation70_spill] sm:$0xff] %v5211_v14 }
 0x4d8   :  { %4053 = vmatprep.subr.mxu1 %v4800_v38  ;;  %5861 = vst [vmem:[#allocation57_spill] sm:$0xff] %v5172_v35  ;;  %3645 = vmatprep.subr.mxu0 %v5172_v35 }
 0x4d9   :  { %4054 = vmatpush3.msra.mxu1 %v4800_v38  ;;  %v5175_v38 = vld [vmem:[#allocation11 + $0x60] sm:$0xff] }
 0x4da   :  { %4055 = vmatprep.subr.mxu1 %v4804_v41  ;;  %5862 = vst [vmem:[#allocation58_spill] sm:$0xff] %v5175_v38  ;;  %3646 = vmatpush3.msra.mxu0 %v5175_v38 }
 0x4db   :  { %4056 = vmatpush3.msra.mxu1 %v4804_v41  ;;  %v5178_v41 = vld [vmem:[#allocation11 + $0xd8] sm:$0xff] }
 0x4dc   :  { %4057 = vmatprep.subr.mxu1 %v4808_v44  ;;  %5863 = vst [vmem:[#allocation59_spill] sm:$0xff] %v5178_v41  ;;  %3647 = vmatprep.subr.mxu0 %v5178_v41 }
 0x4dd   :  { %4058 = vmatpush3.msra.mxu1 %v4808_v44  ;;  %v5181_v44 = vld [vmem:[#allocation11 + $0x58] sm:$0xff] }
 0x4de   :  { %4059 = vmatprep.subr.mxu1 %v4812_v47  ;;  %5864 = vst [vmem:[#allocation60_spill] sm:$0xff] %v5181_v44  ;;  %3648 = vmatpush3.msra.mxu0 %v5181_v44 }
 0x4df   :  { %4060 = vmatpush3.msra.mxu1 %v4812_v47  ;;  %v5184_v47 = vld [vmem:[#allocation11 + $0xd0] sm:$0xff] }
 0x4e0   :  { %4061 = vmatprep.subr.mxu1 %v4816_v49  ;;  %5865 = vst [vmem:[#allocation61_spill] sm:$0xff] %v5184_v47  ;;  %3649 = vmatprep.subr.mxu0 %v5184_v47 }
 0x4e1   :  { %4062 = vmatpush3.msra.mxu1 %v4816_v49  ;;  %v5187_v49 = vld [vmem:[#allocation11 + $0x50] sm:$0xff] }
 0x4e2   :  { %4069 = vmatprep.subr.mxu1 %v5854_v57  ;;  %5866 = vst [vmem:[#allocation62_spill] sm:$0xff] %v5187_v49  ;;  %3650 = vmatpush3.msra.mxu0 %v5187_v49 }
 0x4e3   :  { %3651 = vmatprep.subr.mxu0 %v5190_v0 }
 0x4e4   :  { %3652 = vmatpush3.msra.mxu0 %v5193_v56 }
 0x4e5   :  { %3653 = vmatprep.subr.mxu0 %v5196_v60 }
 0x4e6   :  { %3654 = vmatpush3.msra.mxu0 %v5199_v5  ;;  %v5217_v5 = vld [vmem:[#allocation11 + $0x28] sm:$0xff] }
 0x4e7   :  { %3655 = vmatprep.subr.mxu0 %v5202_v7  ;;  %5876 = vst [vmem:[#allocation72_spill] sm:$0xff] %v5217_v5  ;;  %v5220_v7 = vld [vmem:[#allocation11 + $0xa0] sm:$0xff] }
 0x4e8   :  { %3656 = vmatpush3.msra.mxu0 %v5205_v9  ;;  %5877 = vst [vmem:[#allocation73_spill] sm:$0xff] %v5220_v7  ;;  %v5223_v9 = vld [vmem:[#allocation11 + $0x20] sm:$0xff] }
 0x4e9   :  { %3657 = vmatprep.subr.mxu0 %v5208_v11  ;;  %5878 = vst [vmem:[#allocation74_spill] sm:$0xff] %v5223_v9  ;;  %v5226_v11 = vld [vmem:[#allocation11 + $0x98] sm:$0xff] }
 0x4ea   :  { %3658 = vmatpush3.msra.mxu0 %v5211_v14  ;;  %5879 = vst [vmem:[#allocation75_spill] sm:$0xff] %v5226_v11  ;;  %v5229_v14 = vld [vmem:[#allocation11 + $0x18] sm:$0xff] }
 0x4eb   :  { %3659 = vmatprep.subr.mxu0 %v5214_v53  ;;  %5880 = vst [vmem:[#allocation76_spill] sm:$0xff] %v5229_v14  ;;  %v5232_v53 = vld [vmem:[#allocation11 + $0x90] sm:$0xff] }
 0x4ec   :  { %3660 = vmatpush3.msra.mxu0 %v5217_v5  ;;  %5881 = vst [vmem:[#allocation77_spill] sm:$0xff] %v5232_v53  ;;  %v5235_v5 = vld [vmem:[#allocation11 + $0x10] sm:$0xff] }
 0x4ed   :  { %3661 = vmatprep.subr.mxu0 %v5220_v7  ;;  %5882 = vst [vmem:[#allocation78_spill] sm:$0xff] %v5235_v5  ;;  %v5238_v7 = vld [vmem:[#allocation11 + $0x88] sm:$0xff] }
 0x4ee   :  { %3662 = vmatpush3.msra.mxu0 %v5223_v9  ;;  %5883 = vst [vmem:[#allocation79_spill] sm:$0xff] %v5238_v7  ;;  %v5241_v9 = vld [vmem:[#allocation11 + $0x8] sm:$0xff] }
 0x4ef   :  { %3663 = vmatprep.subr.mxu0 %v5226_v11  ;;  %5884 = vst [vmem:[#allocation80_spill] sm:$0xff] %v5241_v9  ;;  %v5244_v11 = vld [vmem:[#allocation11 + $0x80] sm:$0xff] }
 0x4f0   :  { %3664 = vmatpush3.msra.mxu0 %v5229_v14  ;;  %5885 = vst [vmem:[#allocation81_spill] sm:$0xff] %v5244_v11  ;;  %v5247_v14 = vld [vmem:[#allocation11] sm:$0xff] }
 0x4f1   :  { %3665 = vmatprep.subr.mxu0 %v5232_v53  ;;  %5886 = vst [vmem:[#allocation82_spill] sm:$0xff] %v5247_v14 }
 0x4f2   :  { %3666 = vmatpush3.msra.mxu0 %v5235_v5  ;;  %v252_v5 = vld [vmem:[%s5734_s8] sm:$0x3] }
 0x4f3   :  { %3667 = vmatprep.subr.mxu0 %v5238_v7  ;;  %v5887_v7 = vsub.s32 0, %v4838_v58 }
 0x4f4   :  { %3668 = vmatpush3.msra.mxu0 %v5241_v9  ;;  %v5889_v9 = vsub.s32 1, %v4838_v58 }
 0x4f5   :  { %3669 = vmatprep.subr.mxu0 %v5244_v11  ;;  %v5256_v53 = vrot.slane %v252_v5, %v5887_v7 }
 0x4f6   :  { %3670 = vmatpush3.msra.mxu0 %v5247_v14  ;;  %v5260_v60 = vrot.slane %v252_v5, %v5889_v9 }
 0x4f7   :  { %4090 = vmatprep.subr.mxu0 %v5854_v57  ;;  %5888 = vst [vmem:[#allocation83_spill] sm:$0xff] %v5256_v53 }
 0x4f8   :  { %5890 = vst [vmem:[#allocation84_spill] sm:$0xff] %v5260_v60 }
 0x582   :  { %v1266_v56 = vpop.f32.mrf.mxu1 }
 0x583   :  { %v5263_v11 = vadd.f32 %v1266_v56, %v5256_v53 }
 0x584   :  { %v1268_v0 = vpop.f32.mrf.mxu1 }
 0x585   :  { %v1289_v14 = vmul.f32 %v5263_v11, %v5263_v11  ;;  %v5268_v49 = vadd.f32 %v1268_v0, %v5260_v60 }
 0x586   :  { %v1272_v47 = vpop.f32.mrf.mxu1 }
 0x587   :  { %v1297_v44 = vmul.f32 %v1289_v14, %v5263_v11  ;;  %v1290_v7 = vmul.f32 %v5268_v49, %v5268_v49  ;;  %v5274_v58 = vadd.f32 %v1272_v47, %v5256_v53 }
 0x588   :  { %v1274_v5 = vpop.f32.mrf.mxu1 }
 0x589   :  { %v1305_v9 = vmul.f32 0.044715, %v1297_v44  ;;  %v1298_v56 = vmul.f32 %v1290_v7, %v5268_v49  ;;  %v1291_v41 = vmul.f32 %v5274_v58, %v5274_v58  ;;  %v5280_v38 = vadd.f32 %v1274_v5, %v5260_v60 }
 0x58b   :  { %v1313_v0 = vadd.f32 %v1305_v9, %v5263_v11  ;;  %v1306_v35 = vmul.f32 0.044715, %v1298_v56  ;;  %v1299_v14 = vmul.f32 %v1291_v41, %v5274_v58  ;;  %v1292_v32 = vmul.f32 %v5280_v38, %v5280_v38 }
 0x58d   :  { %v1321_v47 = vmul.f32 0.7978846, %v1313_v0  ;;  %v1314_v29 = vadd.f32 %v1306_v35, %v5268_v49  ;;  %v1307_v44 = vmul.f32 0.044715, %v1299_v14  ;;  %v1300_v7 = vmul.f32 %v1292_v32, %v5280_v38 }
 0x58f   :  { %4324 = vtanh.f32 %v1321_v47  ;;  %v1322_v26 = vmul.f32 0.7978846, %v1314_v29  ;;  %v1315_v23 = vadd.f32 %v1307_v44, %v5274_v58  ;;  %v1308_v5 = vmul.f32 0.044715, %v1300_v7 }
 0x591   :  { %4326 = vtanh.f32 %v1322_v26  ;;  %v1323_v20 = vmul.f32 0.7978846, %v1315_v23  ;;  %v1316_v9 = vadd.f32 %v1308_v5, %v5280_v38 }
 0x592   :  { %v1278_v56 = vpop.f32.mrf.mxu1 }
 0x593   :  { %4328 = vtanh.f32 %v1323_v20  ;;  %v1324_v41 = vmul.f32 0.7978846, %v1316_v9  ;;  %v5291_v17 = vadd.f32 %v1278_v56, %v5256_v53 }
 0x594   :  { %v1280_v0 = vpop.f32.mrf.mxu1 }
 0x595   :  { %4330 = vtanh.f32 %v1324_v41  ;;  %v1293_v32 = vmul.f32 %v5291_v17, %v5291_v17  ;;  %v1281_v29 = vadd.f32 %v1280_v0, %v5260_v60 }
 0x596   :  { %v1284_v35 = vpop.f32.mrf.mxu1 }
 0x597   :  { %v1301_v14 = vmul.f32 %v1293_v32, %v5291_v17  ;;  %v1294_v26 = vmul.f32 %v1281_v29, %v1281_v29  ;;  %v5298_v23 = vadd.f32 %v1284_v35, %v5256_v53 }
 0x598   :  { %v1286_v47 = vpop.f32.mrf.mxu1 }
 0x599   :  { %v1309_v20 = vmul.f32 0.044715, %v1301_v14  ;;  %v1302_v44 = vmul.f32 %v1294_v26, %v1281_v29  ;;  %v1295_v7 = vmul.f32 %v5298_v23, %v5298_v23  ;;  %v1287_v5 = vadd.f32 %v1286_v47, %v5260_v60 }
 0x59b   :  { %v1317_v9 = vadd.f32 %v1309_v20, %v5291_v17  ;;  %v1310_v56 = vmul.f32 0.044715, %v1302_v44  ;;  %v1303_v41 = vmul.f32 %v1295_v7, %v5298_v23  ;;  %v1296_v0 = vmul.f32 %v1287_v5, %v1287_v5 }
 0x59c   :  { %v4325_v62 = vpop.eup %4324 }
 0x59d   :  { %v1337_v32 = vadd.f32 1.0, %v4325_v62  ;;  %v1325_v61 = vmul.f32 0.7978846, %v1317_v9  ;;  %v1318_v1 = vadd.f32 %v1310_v56, %v1281_v29  ;;  %v1311_v35 = vmul.f32 0.044715, %v1303_v41 }
 0x59e   :  { %v4327_v53 = vpop.eup %4326  ;;  %v1304_v2 = vmul.f32 %v1296_v0, %v1287_v5 }
 0x59f   :  { %4332 = vtanh.f32 %v1325_v61  ;;  %v1326_v14 = vmul.f32 0.7978846, %v1318_v1  ;;  %v1319_v26 = vadd.f32 %v1311_v35, %v5298_v23  ;;  %v1338_v47 = vadd.f32 1.0, %v4327_v53 }
 0x5a0   :  { %v4329_v59 = vpop.eup %4328  ;;  %v1312_v63 = vmul.f32 0.044715, %v1304_v2  ;;  %v1345_v60 = vmul.f32 0.5, %v1337_v32 }
 0x5a1   :  { %4334 = vtanh.f32 %v1326_v14  ;;  %v1327_v20 = vmul.f32 0.7978846, %v1319_v26  ;;  %v1339_v44 = vadd.f32 1.0, %v4329_v59  ;;  %v1346_v46 = vmul.f32 0.5, %v1338_v47 }
 0x5a2   :  { %v4331_v7 = vpop.eup %4330  ;;  %v1320_v3 = vadd.f32 %v1312_v63, %v1287_v5  ;;  %v1353_v61 = vmul.f32 %v1345_v60, %v5263_v11 }
 0x5a3   :  { %4336 = vtanh.f32 %v1327_v20  ;;  %v1340_v62 = vadd.f32 1.0, %v4331_v7  ;;  %v1354_v56 = vmul.f32 %v1346_v46, %v5268_v49  ;;  %v1347_v41 = vmul.f32 0.5, %v1339_v44 }
 0x5a4   :  { %v1328_v9 = vmul.f32 0.7978846, %v1320_v3 }
 0x5a5   :  { %v1348_v1 = vmul.f32 0.5, %v1340_v62  ;;  %1431 = vmatprep.mubr.f32.mxu0 %v1354_v56  ;;  %v1355_v59 = vmul.f32 %v1347_v41, %v5274_v58 }
 0x5a6   :  { %4338 = vtanh.f32 %v1328_v9  ;;  %1432 = vmatmul.mubr.f32.vlgmr.msra.gmra.mxu0 %v1353_v61 }
 0x5a7   :  { %v1356_v2 = vmul.f32 %v1348_v1, %v5280_v38  ;;  %4091 = vmatpush3.xpose.msra.mxu0 %v4894_v50 }
 0x5a8   :  { %4092 = vmatprep.subr.mxu0 %v5854_v57 }
 0x5a9   :  { %1436 = vmatprep.mubr.f32.mxu0 %v1356_v2 }
 0x5aa   :  { %1437 = vmatmul.mubr.f32.gmra.mxu0 %v1355_v59 }
 0x5ab   :  { %4093 = vmatpush3.xpose.msra.mxu0 %v4903_v52 }
 0x5ac   :  { %v4333_v3 = vpop.eup %4332  ;;  %4111 = vmatprep.subr.mxu0 %v5854_v57 }
 0x5ad   :  { %v1341_v46 = vadd.f32 1.0, %v4333_v3 }
 0x5ae   :  { %v4335_v63 = vpop.eup %4334 }
 0x5af   :  { %v1342_v53 = vadd.f32 1.0, %v4335_v63  ;;  %v1349_v60 = vmul.f32 0.5, %v1341_v46 }
 0x5b0   :  { %v4337_v49 = vpop.eup %4336 }
 0x5b1   :  { %v1350_v11 = vmul.f32 0.5, %v1342_v53  ;;  %v1343_v38 = vadd.f32 1.0, %v4337_v49  ;;  %v1357_v35 = vmul.f32 %v1349_v60, %v5291_v17  ;;  %v5348_v60 = vld [vmem:[%s5728_s2] ss:$0 sm:$0xff] }
 0x5b3   :  { %v4339_v0 = vpop.eup %4338  ;;  %v1358_v32 = vmul.f32 %v1350_v11, %v1281_v29  ;;  %v1351_v58 = vmul.f32 0.5, %v1343_v38  ;;  %v5321_v29 = vld [vmem:[%s5736_s10] ss:$0 sm:$0xff] }
 0x5b4   :  { %v1344_v14 = vadd.f32 1.0, %v4339_v0 }
 0x5b5   :  { %1441 = vmatprep.mubr.f32.mxu0 %v1358_v32  ;;  %v1359_v20 = vmul.f32 %v1351_v58, %v5298_v23 }
 0x5b6   :  { %1442 = vmatmul.mubr.f32.gmra.mxu0 %v1357_v35  ;;  %v1352_v26 = vmul.f32 0.5, %v1344_v14 }
 0x5b8   :  { %v1360_v47 = vmul.f32 %v1352_v26, %v1287_v5 }
 0x5ba   :  { %1446 = vmatprep.mubr.f32.mxu0 %v1360_v47 }
 0x5bb   :  { %1447 = vmatmul.mubr.f32.gmra.mxu0 %v1359_v20 }
 0x5bc   :  { %4094 = vmatprep.mubr.msk.f32.mxu0 %vm4664_vm0, %v5854_v57 }
 0x666   :  { %v3671_v44 = vpop.f32.mrf.mxu0 }
 0x668   :  { %v3672_v17 = vpop.f32.mrf.mxu0 }
 0x669   :  { %v3673_v7 = vadd.f32 %v3672_v17, %v3671_v44 }
 0x66a   :  { %v3674_v62 = vpop.f32.mrf.mxu0 }
 0x66b   :  { %v5324_v9 = vadd.f32 %v3673_v7, %v5321_v29 }
 0x66c   :  { %v3675_v5 = vpop.f32.mrf.mxu0 }
 0x66d   :  { %v3676_v56 = vadd.f32 %v3675_v5, %v3674_v62  ;;  %4063 = vmatprep.mubr.f32.mxu1 %v5324_v9 }
 0x66f   :  { %v5328_v23 = vadd.f32 %v3676_v56, %v5321_v29 }
 0x671   :  { %4064 = vmatmul.mubr.f32.vlgmr.msra.gmra.mxu1 %v5328_v23 }
 0x672   :  { %4070 = vmatpush3.xpose.msra.mxu1 %v4847_v4 }
 0x673   :  { %4071 = vmatprep.subr.mxu1 %v5854_v57 }
 0x676   :  { %v3677_v61 = vpop.f32.mrf.mxu0  ;;  %4072 = vmatpush3.xpose.msra.mxu1 %v4854_v12 }
 0x677   :  { %4076 = vmatprep.subr.mxu1 %v5854_v57 }
 0x678   :  { %v3678_v1 = vpop.f32.mrf.mxu0 }
 0x679   :  { %v3679_v41 = vadd.f32 %v3678_v1, %v3677_v61 }
 0x67b   :  { %v5336_v2 = vadd.f32 %v3679_v41, %v5321_v29  ;;  %v3680_v59 = vpop.f32.mrf.mxu0 }
 0x67d   :  { %v3681_v3 = vpop.f32.mrf.mxu0  ;;  %4066 = vmatprep.mubr.f32.mxu1 %v5336_v2 }
 0x67e   :  { %v3682_v46 = vadd.f32 %v3681_v3, %v3680_v59 }
 0x680   :  { %v5340_v63 = vadd.f32 %v3682_v46, %v5321_v29 }
 0x682   :  { %4067 = vmatmul.mubr.f32.gmra.mxu1 %v5340_v63 }
 0x683   :  { %4073 = vmatprep.mubr.msk.f32.mxu1 %vm4664_vm0, %v5854_v57 }
 0x731   :  { %v4065_v53 = vpop.f32.mrf.mxu1 }
 0x732   :  { %v1528_v38 = vadd.f32 %v5348_v60, %v4065_v53 }
 0x733   :  { %v1522_v49 = vpop.f32.mrf.mxu1 }
 0x734   :  { %v1523_v11 = vadd.f32 %v5348_v60, %v1522_v49 }
 0x736   :  { %4074 = vmatmul.mubr.f32.vlgmr.msra.gmra.mxu1 %v1523_v11 }
 0x737   :  { %4077 = vmatpush3.xpose.msra.mxu1 %v4865_v21  ;;  %4080 = vmatprep.mubr.msk.f32.mxu1 %vm4664_vm0, %v5854_v57 }
 0x738   :  { %4078 = vmatprep.subr.mxu1 %v5854_v57 }
 0x73b   :  { %4079 = vmatpush3.xpose.msra.mxu1 %v4874_v27 }
 0x73c   :  { %4083 = vmatprep.subr.mxu1 %v5854_v57 }
 0x73e   :  { %4081 = vmatmul.mubr.f32.vlgmr.msra.gmra.mxu1 %v1528_v38 }
 0x73f   :  { %4084 = vmatpush3.xpose.msra.mxu1 %v4878_v34  ;;  %4087 = vmatprep.mubr.msk.f32.mxu1 %vm4664_vm0, %v5854_v57 }
 0x740   :  { %4085 = vmatprep.subr.mxu1 %v5854_v57 }
 0x742   :  { %v4068_v0 = vpop.f32.mrf.mxu1 }
 0x743   :  { %v1538_v32 = vadd.f32 %v5348_v60, %v4068_v0  ;;  %4086 = vmatpush3.xpose.msra.mxu1 %v4884_v40 }
 0x744   :  { %v1532_v35 = vpop.f32.mrf.mxu1  ;;  %4097 = vmatprep.subr.mxu1 %v5854_v57 }
 0x745   :  { %v1533_v14 = vadd.f32 %v5348_v60, %v1532_v35  ;;  %4095 = vmatmul.mubr.f32.vlgmr.msra.gmra.mxu0 %v1538_v32 }
 0x746   :  { %4112 = vmatpush3.msra.mxu0 %v4912_v54  ;;  %4115 = vmatprep.mubr.msk.f32.mxu0 %vm4664_vm0, %v5854_v57 }
 0x747   :  { %4113 = vmatprep.subr.mxu0 %v5854_v57  ;;  %4088 = vmatmul.mubr.f32.vlgmr.msra.gmra.mxu1 %v1533_v14 }
 0x748   :  { %4098 = vmatpush3.msra.mxu1 %v4892_v48  ;;  %4114 = vmatpush3.msra.mxu0 %v4915_v55 }
 0x749   :  { %4099 = vmatprep.subr.mxu1 %v5854_v57  ;;  %4101 = vmatprep.mubr.msk.f32.mxu1 %vm4664_vm0, %v5854_v57 }
 0x74a   :  { %4100 = vmatpush3.msra.mxu1 %v4897_v51  ;;  %4125 = vmatprep.subr.mxu0 %v4930_v6 }
 0x74b   :  { %4104 = vmatprep.subr.mxu1 %v5854_v57 }
 0x7f6   :  { %v1607_v58 = vpop.f32.mrf.mxu1 }
 0x7f7   :  { %v1821_v26 = vmul.f32 0.088388346, %v1607_v58 }
 0x7f8   :  { %v4075_v47 = vpop.f32.mrf.mxu1 }
 0x7f9   :  { %v1825_v20 = vsel %vm761_vm1, %v1821_v26, -inf }
 0x7fa   :  { %1826 = vmax.xlane.f32.xlu0 %v1825_v20 }
 0x7fe   :  { %v1677_v44 = vpop.f32.mrf.mxu1 }
 0x7ff   :  { %v1822_v17 = vmul.f32 0.088388346, %v1677_v44 }
 0x800   :  { %v4082_v7 = vpop.f32.mrf.mxu1 }
 0x801   :  { %v1828_v62 = vsel %vm761_vm1, %v1822_v17, -inf }
 0x802   :  { %1829 = vmax.xlane.f32.xlu1 %v1828_v62 }
 0x805   :  { %v1817_v5 = vpop.f32.mrf.mxu0 }
 0x806   :  { %v1824_v56 = vmul.f32 0.088388346, %v1817_v5 }
 0x807   :  { %v1747_v61 = vpop.f32.mrf.mxu1  ;;  %v4096_v1 = vpop.f32.mrf.mxu0 }
 0x808   :  { %v1823_v41 = vmul.f32 0.088388346, %v1747_v61  ;;  %v1834_v6 = vsel %vm761_vm1, %v1824_v56, -inf }
 0x809   :  { %1835 = vmax.xlane.f32.xlu1 %v1834_v6  ;;  %v4089_v59 = vpop.f32.mrf.mxu1 }
 0x80a   :  { %v1831_v3 = vsel %vm761_vm1, %v1823_v41, -inf }
 0x80b   :  { %1832 = vmax.xlane.f32.xlu0 %v1831_v3 }
 0x883   :  { %v1827_v46 = vpop.xlane.xlu0 %1826 }
 0x884   :  { %v1837_v53 = vsub.f32 %v1821_v26, %v1827_v46 }
 0x886   :  { %v1841_v49 = vmul.f32 1.442695, %v1837_v53 }
 0x888   :  { %4340 = vpow2.f32 %v1841_v49 }
 0x88b   :  { %v1830_v11 = vpop.xlane.xlu1 %1829 }
 0x88c   :  { %v1838_v38 = vsub.f32 %v1822_v17, %v1830_v11 }
 0x88e   :  { %v1843_v0 = vmul.f32 1.442695, %v1838_v38 }
 0x890   :  { %4342 = vpow2.f32 %v1843_v0 }
 0x892   :  { %v1836_v32 = vpop.xlane.xlu1 %1835 }
 0x893   :  { %v1840_v35 = vsub.f32 %v1824_v56, %v1836_v32 }
 0x894   :  { %v1833_v14 = vpop.xlane.xlu0 %1832 }
 0x895   :  { %v1847_v58 = vmul.f32 1.442695, %v1840_v35  ;;  %v1839_v47 = vsub.f32 %v1823_v41, %v1833_v14  ;;  %v4341_v20 = vpop.eup %4340  ;;  %v5405_v35 = vld [vmem:[#allocation8 + $0x78] sm:$0xff]  ;;  %v5907_v14 = vld [vmem:[#allocation40_spill] sm:$0xff] }
 0x896   :  { %v1849_v7 = vsel %vm761_vm1, %v4341_v20, 0.0 }
 0x897   :  { %4344 = vpow2.f32 %v1847_v58  ;;  %v1845_v44 = vmul.f32 1.442695, %v1839_v47  ;;  %1850 = vadd.xlane.f32.xlu0 %v1849_v7  ;;  %v5908_v58 = vld [vmem:[#allocation41_spill] sm:$0xff]  ;;  %v5912_v7 = vld [vmem:[#allocation26_spill] sm:$0xff] }
 0x898   :  { %v5909_v47 = vld [vmem:[#allocation25_spill] sm:$0xff] }
 0x899   :  { %4346 = vpow2.f32 %v1845_v44  ;;  %v5911_v44 = vld [vmem:[#allocation43_spill] sm:$0xff] }
 0x89d   :  { %v4343_v62 = vpop.eup %4342 }
 0x89e   :  { %v1852_v26 = vsel %vm761_vm1, %v4343_v62, 0.0 }
 0x89f   :  { %1853 = vadd.xlane.f32.xlu1 %v1852_v26  ;;  %v5914_v26 = vld [vmem:[#allocation45_spill] sm:$0xff] }
 0x8a4   :  { %v4345_v5 = vpop.eup %4344 }
 0x8a5   :  { %v1858_v17 = vsel %vm761_vm1, %v4345_v5, 0.0 }
 0x8a6   :  { %v4347_v61 = vpop.eup %4346  ;;  %1859 = vadd.xlane.f32.xlu1 %v1858_v17  ;;  %v5916_v17 = vld [vmem:[#allocation46_spill] sm:$0xff] }
 0x8a7   :  { %v1855_v56 = vsel %vm761_vm1, %v4347_v61, 0.0 }
 0x8a8   :  { %1856 = vadd.xlane.f32.xlu0 %v1855_v56  ;;  %v5918_v56 = vld [vmem:[#allocation28_spill] sm:$0xff] }
 0x920   :  { %v1851_v1 = vpop.xlane.xlu0 %1850 }
 0x921   :  { %4348 = vrcp.f32 %v1851_v1  ;;  %v5919_v1 = vld [vmem:[#allocation48_spill] sm:$0xff] }
 0x928   :  { %v1854_v41 = vpop.xlane.xlu1 %1853 }
 0x929   :  { %4350 = vrcp.f32 %v1854_v41  ;;  %v5920_v41 = vld [vmem:[#allocation49_spill] sm:$0xff] }
 0x92e   :  { %v4349_v6 = vpop.eup %4348 }
 0x92f   :  { %v1860_v59 = vpop.xlane.xlu1 %1859  ;;  %v1865_v3 = vmul.f32 %v4349_v6, %v4341_v20  ;;  %v5910_v20 = vld [vmem:[#allocation42_spill] sm:$0xff]  ;;  %v5921_v6 = vld [vmem:[#allocation29_spill] sm:$0xff] }
 0x930   :  { %4352 = vrcp.f32 %v1860_v59  ;;  %v4406_v59 = vld [vmem:[#allocation5 + $0x78] sm:$0xff] }
 0x931   :  { %v1857_v46 = vpop.xlane.xlu0 %1856  ;;  %4102 = vmatmul.mubr.msk.f32.vlgmr.msra.gmra.mxu1 %vm761_vm1, %v1865_v3  ;;  %v5922_v3 = vld [vmem:[#allocation51_spill] sm:$0xff] }
 0x932   :  { %4354 = vrcp.f32 %v1857_v46  ;;  %4105 = vmatpush3.msra.mxu1 %v4868_v24  ;;  %4108 = vmatprep.mubr.msk.f32.mxu1 %vm4664_vm0, %v5854_v57 }
 0x933   :  { %4106 = vmatprep.subr.mxu1 %v5854_v57 }
 0x934   :  { %4107 = vmatpush3.msra.mxu1 %v4861_v18 }
 0x935   :  { %4118 = vmatprep.subr.mxu1 %v5854_v57 }
 0x936   :  { %v4351_v53 = vpop.eup %4350 }
 0x937   :  { %v1866_v49 = vmul.f32 %v4351_v53, %v4343_v62  ;;  %v5913_v62 = vld [vmem:[#allocation44_spill] sm:$0xff] }
 0x939   :  { %4109 = vmatmul.mubr.msk.f32.vlgmr.msra.gmra.mxu1 %vm761_vm1, %v1866_v49 }
 0x93a   :  { %4119 = vmatpush3.msra.mxu1 %v4941_v30  ;;  %4122 = vmatprep.mubr.msk.f32.mxu1 %vm4664_vm0, %v5854_v57 }
 0x93b   :  { %4120 = vmatprep.subr.mxu1 %v5854_v57 }
 0x93c   :  { %4121 = vmatpush3.msra.mxu1 %v4887_v45 }
 0x93d   :  { %v4353_v11 = vpop.eup %4352  ;;  %2246 = vmatprep.subr.mxu1 %v5013_v8  ;;  %v5893_v8 = vld [vmem:[#allocation31_spill] sm:$0xff] }
 0x93e   :  { %v1868_v38 = vmul.f32 %v4353_v11, %v4345_v5  ;;  %v5915_v5 = vld [vmem:[#allocation27_spill] sm:$0xff] }
 0x93f   :  { %v4355_v0 = vpop.eup %4354 }
 0x940   :  { %4123 = vmatmul.mubr.msk.f32.vlgmr.msra.gmra.mxu1 %vm761_vm1, %v1868_v38  ;;  %v1867_v32 = vmul.f32 %v4355_v0, %v4347_v61  ;;  %v5917_v61 = vld [vmem:[#allocation47_spill] sm:$0xff]  ;;  %v5923_v38 = vld [vmem:[#allocation52_spill] sm:$0xff]  ;;  %v5924_v0 = vld [vmem:[#allocation53_spill] sm:$0xff] }
 0x941   :  { %2247 = vmatpush1.msra.mxu1 %v5015_v10  ;;  %2310 = vmatprep.mubr.f32.mxu1 %v5854_v57  ;;  %v5894_v10 = vld [vmem:[#allocation20_spill] sm:$0xff] }
 0x942   :  { %4116 = vmatmul.mubr.msk.f32.vlgmr.msra.gmra.mxu0 %vm761_vm1, %v1867_v32  ;;  %2248 = vmatprep.subr.mxu1 %v5017_v16  ;;  %v5896_v16 = vld [vmem:[#allocation33_spill] sm:$0xff]  ;;  %v5925_v32 = vld [vmem:[#allocation54_spill] sm:$0xff] }
 0x943   :  { %4126 = vmatpush3.msra.mxu0 %v5405_v35  ;;  %2249 = vmatpush1.msra.mxu1 %v5020_v19  ;;  %v5897_v19 = vld [vmem:[#allocation21_spill] sm:$0xff] }
 0x944   :  { %4127 = vmatprep.subr.mxu0 %v4949_v37  ;;  %2250 = vmatprep.subr.mxu1 %v5023_v22  ;;  %v5899_v22 = vld [vmem:[#allocation35_spill] sm:$0xff] }
 0x945   :  { %4128 = vmatpush3.msra.mxu0 %v4949_v37  ;;  %2251 = vmatpush1.msra.mxu1 %v5026_v25  ;;  %v5891_v37 = vld [vmem:[#allocation19_spill] sm:$0xff]  ;;  %v5900_v25 = vld [vmem:[#allocation22_spill] sm:$0xff] }
 0x946   :  { %4129 = vmatprep.subr.mxu0 %v4953_v13  ;;  %2252 = vmatprep.subr.mxu1 %v5029_v28  ;;  %v5901_v28 = vld [vmem:[#allocation36_spill] sm:$0xff] }
 0x947   :  { %4130 = vmatpush3.msra.mxu0 %v4953_v13  ;;  %2253 = vmatpush1.msra.mxu1 %v5032_v31  ;;  %v5892_v13 = vld [vmem:[#allocation30_spill] sm:$0xff]  ;;  %v5902_v31 = vld [vmem:[#allocation37_spill] sm:$0xff] }
 0x948   :  { %4131 = vmatprep.subr.mxu0 %v4957_v15  ;;  %2254 = vmatprep.subr.mxu1 %v5035_v33  ;;  %v5903_v33 = vld [vmem:[#allocation23_spill] sm:$0xff] }
 0x949   :  { %4132 = vmatpush3.msra.mxu0 %v4957_v15  ;;  %2255 = vmatpush1.msra.mxu1 %v5038_v36  ;;  %v5895_v15 = vld [vmem:[#allocation32_spill] sm:$0xff]  ;;  %v5904_v36 = vld [vmem:[#allocation38_spill] sm:$0xff] }
 0x94a   :  { %4133 = vmatprep.subr.mxu0 %v4961_v42  ;;  %2256 = vmatprep.subr.mxu1 %v5041_v39  ;;  %v5905_v39 = vld [vmem:[#allocation39_spill] sm:$0xff] }
 0x94b   :  { %4134 = vmatpush3.msra.mxu0 %v4961_v42  ;;  %2257 = vmatpush1.msra.mxu1 %v5044_v43  ;;  %v5898_v42 = vld [vmem:[#allocation34_spill] sm:$0xff]  ;;  %v5906_v43 = vld [vmem:[#allocation24_spill] sm:$0xff] }
 0x94c   :  { %4135 = vmatprep.subr.mxu0 %v5891_v37  ;;  %2258 = vmatprep.subr.mxu1 %v5892_v13 }
 0x94d   :  { %4136 = vmatpush3.msra.mxu0 %v5891_v37  ;;  %2259 = vmatpush1.msra.mxu1 %v5893_v8  ;;  %v5926_v37 = vld [vmem:[#allocation55_spill] sm:$0xff]  ;;  %v5927_v8 = vld [vmem:[#allocation56_spill] sm:$0xff] }
 0x94e   :  { %4137 = vmatprep.subr.mxu0 %v5894_v10  ;;  %2260 = vmatprep.subr.mxu1 %v5895_v15 }
 0x94f   :  { %4138 = vmatpush3.msra.mxu0 %v5894_v10  ;;  %2261 = vmatpush1.msra.mxu1 %v5896_v16  ;;  %v5928_v10 = vld [vmem:[#allocation57_spill] sm:$0xff] }
 0x950   :  { %4139 = vmatprep.subr.mxu0 %v5897_v19  ;;  %2262 = vmatprep.subr.mxu1 %v5898_v42  ;;  %v5930_v42 = vld [vmem:[#allocation59_spill] sm:$0xff] }
 0x951   :  { %4140 = vmatpush3.msra.mxu0 %v5897_v19  ;;  %2263 = vmatpush1.msra.mxu1 %v5899_v22  ;;  %v5929_v19 = vld [vmem:[#allocation58_spill] sm:$0xff] }
 0x952   :  { %4141 = vmatprep.subr.mxu0 %v5900_v25  ;;  %2264 = vmatprep.subr.mxu1 %v5901_v28  ;;  %v5932_v28 = vld [vmem:[#allocation61_spill] sm:$0xff] }
 0x953   :  { %4142 = vmatpush3.msra.mxu0 %v5900_v25  ;;  %2265 = vmatpush1.msra.mxu1 %v5902_v31  ;;  %v5931_v25 = vld [vmem:[#allocation60_spill] sm:$0xff]  ;;  %v5933_v31 = vld [vmem:[#allocation62_spill] sm:$0xff] }
 0x954   :  { %4143 = vmatprep.subr.mxu0 %v5903_v33  ;;  %2266 = vmatprep.subr.mxu1 %v5904_v36  ;;  %v5935_v36 = vld [vmem:[#allocation64_spill] sm:$0xff] }
 0x955   :  { %4144 = vmatpush3.msra.mxu0 %v5903_v33  ;;  %2267 = vmatpush1.msra.mxu1 %v5905_v39  ;;  %v5934_v33 = vld [vmem:[#allocation63_spill] sm:$0xff]  ;;  %v5936_v39 = vld [vmem:[#allocation65_spill] sm:$0xff] }
 0x956   :  { %4145 = vmatprep.subr.mxu0 %v5906_v43  ;;  %2268 = vmatprep.subr.mxu1 %v5907_v14  ;;  %v5938_v14 = vld [vmem:[#allocation67_spill] sm:$0xff] }
 0x957   :  { %4146 = vmatpush3.msra.mxu0 %v5906_v43  ;;  %2269 = vmatpush1.msra.mxu1 %v5908_v58  ;;  %v5937_v43 = vld [vmem:[#allocation66_spill] sm:$0xff]  ;;  %v5939_v58 = vld [vmem:[#allocation68_spill] sm:$0xff] }
 0x958   :  { %4147 = vmatprep.subr.mxu0 %v5909_v47  ;;  %2270 = vmatprep.subr.mxu1 %v5910_v20  ;;  %v5941_v20 = vld [vmem:[#allocation70_spill] sm:$0xff] }
 0x959   :  { %4148 = vmatpush3.msra.mxu0 %v5909_v47  ;;  %2271 = vmatpush1.msra.mxu1 %v5911_v44  ;;  %v5940_v47 = vld [vmem:[#allocation69_spill] sm:$0xff]  ;;  %v5942_v44 = vld [vmem:[#allocation71_spill] sm:$0xff] }
 0x95a   :  { %4149 = vmatprep.subr.mxu0 %v5912_v7  ;;  %2272 = vmatprep.subr.mxu1 %v5913_v62  ;;  %v5944_v62 = vld [vmem:[#allocation73_spill] sm:$0xff] }
 0x95b   :  { %4150 = vmatpush3.msra.mxu0 %v5912_v7  ;;  %2273 = vmatpush1.msra.mxu1 %v5914_v26  ;;  %v5943_v7 = vld [vmem:[#allocation72_spill] sm:$0xff]  ;;  %v5945_v26 = vld [vmem:[#allocation74_spill] sm:$0xff] }
 0x95c   :  { %4151 = vmatprep.subr.mxu0 %v5915_v5  ;;  %2274 = vmatprep.subr.mxu1 %v5916_v17  ;;  %v5947_v17 = vld [vmem:[#allocation76_spill] sm:$0xff] }
 0x95d   :  { %4152 = vmatpush3.msra.mxu0 %v5915_v5  ;;  %2275 = vmatpush1.msra.mxu1 %v5917_v61  ;;  %v5946_v5 = vld [vmem:[#allocation75_spill] sm:$0xff]  ;;  %v5948_v61 = vld [vmem:[#allocation77_spill] sm:$0xff] }
 0x95e   :  { %4153 = vmatprep.subr.mxu0 %v5918_v56  ;;  %2276 = vmatprep.subr.mxu1 %v5919_v1  ;;  %v5950_v1 = vld [vmem:[#allocation79_spill] sm:$0xff] }
 0x95f   :  { %4154 = vmatpush3.msra.mxu0 %v5918_v56  ;;  %2277 = vmatpush1.msra.mxu1 %v5920_v41  ;;  %v5949_v56 = vld [vmem:[#allocation78_spill] sm:$0xff]  ;;  %v5951_v41 = vld [vmem:[#allocation80_spill] sm:$0xff] }
 0x960   :  { %4155 = vmatprep.subr.mxu0 %v5921_v6  ;;  %4163 = vmatprep.subr.mxu1 %v4406_v59 }
 0x961   :  { %4156 = vmatpush3.msra.mxu0 %v5921_v6  ;;  %v5952_v6 = vld [vmem:[#allocation81_spill] sm:$0xff] }
 0x962   :  { %3747 = vmatprep.subr.mxu0 %v5922_v3  ;;  %v5953_v3 = vld [vmem:[#allocation82_spill] sm:$0xff] }
 0x9f1   :  { %v1938_v46 = vpop.f32.mrf.mxu1 }
 0x9f2   :  { %4157 = vmatprep.mubr.f32.mxu0 %v1938_v46 }
 0x9f3   :  { %v4103_v53 = vpop.f32.mrf.mxu1 }
 0x9f9   :  { %v2011_v49 = vpop.f32.mrf.mxu1 }
 0x9fa   :  { %4158 = vmatmul.mubr.f32.vlgmr.msra.gmra.mxu0 %v2011_v49  ;;  %v5954_v49 = vld [vmem:[#allocation50_spill] sm:$0xff] }
 0x9fb   :  { %v4110_v11 = vpop.f32.mrf.mxu1  ;;  %3748 = vmatpush3.msra.mxu0 %v5923_v38 }
 0x9fc   :  { %3749 = vmatprep.subr.mxu0 %v5924_v0  ;;  %v4407_v0 = vld [vmem:[#allocation5 + $0x70] sm:$0xff] }
 0x9fd   :  { %3750 = vmatpush3.msra.mxu0 %v5925_v32 }
 0x9fe   :  { %3751 = vmatprep.subr.mxu0 %v5926_v37  ;;  %v4408_v37 = vld [vmem:[#allocation5 + $0x68] sm:$0xff] }
 0x9ff   :  { %3752 = vmatpush3.msra.mxu0 %v5927_v8  ;;  %v4409_v8 = vld [vmem:[#allocation5 + $0x60] sm:$0xff] }
 0xa00   :  { %v2157_v13 = vpop.f32.mrf.mxu1  ;;  %3753 = vmatprep.subr.mxu0 %v5928_v10 }
 0xa01   :  { %3754 = vmatpush3.msra.mxu0 %v5929_v19  ;;  %v4412_v19 = vld [vmem:[#allocation5 + $0x48] sm:$0xff] }
 0xa02   :  { %v2084_v15 = vpop.f32.mrf.mxu0  ;;  %v4124_v16 = vpop.f32.mrf.mxu1  ;;  %3755 = vmatprep.subr.mxu0 %v5930_v42  ;;  %v4413_v42 = vld [vmem:[#allocation5 + $0x40] sm:$0xff] }
 0xa03   :  { %4160 = vmatprep.mubr.f32.mxu0 %v2084_v15  ;;  %3756 = vmatpush3.msra.mxu0 %v5931_v25  ;;  %v4410_v15 = vld [vmem:[#allocation5 + $0x58] sm:$0xff]  ;;  %v4411_v16 = vld [vmem:[#allocation5 + $0x50] sm:$0xff] }
 0xa04   :  { %v4117_v22 = vpop.f32.mrf.mxu0  ;;  %4161 = vmatmul.mubr.f32.gmra.mxu0 %v2157_v13  ;;  %3757 = vmatprep.subr.mxu0 %v5932_v28  ;;  %v4415_v25 = vld [vmem:[#allocation5 + $0x30] sm:$0xff]  ;;  %v4416_v28 = vld [vmem:[#allocation5 + $0x28] sm:$0xff] }
 0xa05   :  { %3758 = vmatpush3.msra.mxu0 %v5933_v31  ;;  %v4414_v22 = vld [vmem:[#allocation5 + $0x38] sm:$0xff]  ;;  %v4417_v31 = vld [vmem:[#allocation5 + $0x20] sm:$0xff] }
 0xa06   :  { %3759 = vmatprep.subr.mxu0 %v5934_v33  ;;  %v4418_v33 = vld [vmem:[#allocation5 + $0x18] sm:$0xff] }
 0xa07   :  { %3760 = vmatpush3.msra.mxu0 %v5935_v36  ;;  %v4419_v36 = vld [vmem:[#allocation5 + $0x10] sm:$0xff] }
 0xa08   :  { %3761 = vmatprep.subr.mxu0 %v5936_v39  ;;  %v4420_v39 = vld [vmem:[#allocation5 + $0x8] sm:$0xff] }
 0xa09   :  { %3762 = vmatpush3.msra.mxu0 %v5937_v43  ;;  %v4421_v43 = vld [vmem:[#allocation5] sm:$0xff] }
 0xa0a   :  { %3763 = vmatprep.subr.mxu0 %v5938_v14 }
 0xa0b   :  { %3764 = vmatpush3.msra.mxu0 %v5939_v58  ;;  %v5955_v58 = vld [vmem:[#allocation83_spill] sm:$0xff] }
 0xa0c   :  { %3765 = vmatprep.subr.mxu0 %v5940_v47 }
 0xa0d   :  { %3766 = vmatpush3.msra.mxu0 %v5941_v20 }
 0xa0e   :  { %3767 = vmatprep.subr.mxu0 %v5942_v44 }
 0xa0f   :  { %3768 = vmatpush3.msra.mxu0 %v5943_v7  ;;  %v5956_v7 = vld [vmem:[#allocation84_spill] sm:$0xff] }
 0xa10   :  { %3769 = vmatprep.subr.mxu0 %v5944_v62 }
 0xa11   :  { %3770 = vmatpush3.msra.mxu0 %v5945_v26 }
 0xa12   :  { %3771 = vmatprep.subr.mxu0 %v5946_v5 }
 0xa13   :  { %3772 = vmatpush3.msra.mxu0 %v5947_v17 }
 0xa14   :  { %3773 = vmatprep.subr.mxu0 %v5948_v61 }
 0xa15   :  { %3774 = vmatpush3.msra.mxu0 %v5949_v56 }
 0xa16   :  { %3775 = vmatprep.subr.mxu0 %v5950_v1 }
 0xa17   :  { %3776 = vmatpush3.msra.mxu0 %v5951_v41 }
 0xa18   :  { %3777 = vmatprep.subr.mxu0 %v5952_v6 }
 0xa19   :  { %3778 = vmatpush3.msra.mxu0 %v5953_v3 }
 0xa1a   :  { %4222 = vmatprep.subr.mxu0 %v5854_v57 }
 0xaba   :  { %v4159_v46 = vpop.f32.mrf.mxu0 }
 0xabb   :  { %v2233_v38 = vadd.f32 %v4159_v46, %v5954_v49 }
 0xabc   :  { %v2227_v53 = vpop.f32.mrf.mxu0 }
 0xabd   :  { %v2228_v11 = vadd.f32 %v5954_v49, %v2227_v53 }
 0xabf   :  { %2311 = vmatmul.mubr.f32.vlgmr.msra.gmra.mxu1 %v2228_v11 }
 0xac0   :  { %2316 = vmatprep.mubr.f32.mxu1 %v5854_v57  ;;  %4164 = vmatpush3.msra.mxu1 %v4406_v59 }
 0xac1   :  { %4165 = vmatprep.subr.mxu1 %v4407_v0 }
 0xac2   :  { %4166 = vmatpush3.msra.mxu1 %v4407_v0 }
 0xac3   :  { %2317 = vmatmul.mubr.f32.gmra.mxu1 %v2233_v38  ;;  %4167 = vmatprep.subr.mxu1 %v4408_v37 }
 0xac4   :  { %v4162_v32 = vpop.f32.mrf.mxu0  ;;  %2322 = vmatprep.mubr.f32.mxu1 %v5854_v57  ;;  %4168 = vmatpush3.msra.mxu1 %v4408_v37 }
 0xac5   :  { %4169 = vmatprep.subr.mxu1 %v4409_v8  ;;  %v2243_v59 = vadd.f32 %v4162_v32, %v5954_v49 }
 0xac6   :  { %v2237_v13 = vpop.f32.mrf.mxu0  ;;  %4170 = vmatpush3.msra.mxu1 %v4409_v8 }
 0xac7   :  { %v2238_v10 = vadd.f32 %v5954_v49, %v2237_v13  ;;  %4171 = vmatprep.subr.mxu1 %v4410_v15 }
 0xac8   :  { %4172 = vmatpush3.msra.mxu1 %v4410_v15 }
 0xac9   :  { %2323 = vmatmul.mubr.f32.gmra.mxu1 %v2238_v10  ;;  %4173 = vmatprep.subr.mxu1 %v4411_v16 }
 0xaca   :  { %2328 = vmatprep.mubr.f32.mxu1 %v5854_v57  ;;  %4174 = vmatpush3.msra.mxu1 %v4411_v16 }
 0xacb   :  { %4175 = vmatprep.subr.mxu1 %v4412_v19 }
 0xacc   :  { %4176 = vmatpush3.msra.mxu1 %v4412_v19 }
 0xacd   :  { %2329 = vmatmul.mubr.f32.gmra.mxu1 %v2243_v59  ;;  %4177 = vmatprep.subr.mxu1 %v4413_v42 }
 0xace   :  { %4178 = vmatpush3.msra.mxu1 %v4413_v42 }
 0xacf   :  { %4179 = vmatprep.subr.mxu1 %v4414_v22 }
 0xad0   :  { %4180 = vmatpush3.msra.mxu1 %v4414_v22 }
 0xad1   :  { %4181 = vmatprep.subr.mxu1 %v4415_v25 }
 0xad2   :  { %4182 = vmatpush3.msra.mxu1 %v4415_v25 }
 0xad3   :  { %4183 = vmatprep.subr.mxu1 %v4416_v28 }
 0xad4   :  { %4184 = vmatpush3.msra.mxu1 %v4416_v28 }
 0xad5   :  { %4185 = vmatprep.subr.mxu1 %v4417_v31 }
 0xad6   :  { %4186 = vmatpush3.msra.mxu1 %v4417_v31 }
 0xad7   :  { %4187 = vmatprep.subr.mxu1 %v4418_v33 }
 0xad8   :  { %4188 = vmatpush3.msra.mxu1 %v4418_v33 }
 0xad9   :  { %4189 = vmatprep.subr.mxu1 %v4419_v36 }
 0xada   :  { %4190 = vmatpush3.msra.mxu1 %v4419_v36 }
 0xadb   :  { %4191 = vmatprep.subr.mxu1 %v4420_v39 }
 0xadc   :  { %4192 = vmatpush3.msra.mxu1 %v4420_v39 }
 0xadd   :  { %4193 = vmatprep.subr.mxu1 %v4421_v43 }
 0xade   :  { %4194 = vmatpush3.msra.mxu1 %v4421_v43 }
 0xadf   :  { %4201 = vmatprep.subr.mxu1 %v5854_v57 }
 0xb7f   :  { %v2312_v14 = vpop.f32.mrf.mxu1 }
 0xb80   :  { %v5509_v47 = vadd.f32 %v2312_v14, %v5955_v58 }
 0xb81   :  { %v2314_v20 = vpop.f32.mrf.mxu1 }
 0xb82   :  { %v2335_v44 = vmul.f32 %v5509_v47, %v5509_v47  ;;  %v5514_v62 = vadd.f32 %v2314_v20, %v5956_v7 }
 0xb83   :  { %v2318_v26 = vpop.f32.mrf.mxu1 }
 0xb84   :  { %v2343_v5 = vmul.f32 %v2335_v44, %v5509_v47  ;;  %v2336_v17 = vmul.f32 %v5514_v62, %v5514_v62  ;;  %v5520_v61 = vadd.f32 %v2318_v26, %v5955_v58 }
 0xb85   :  { %v2320_v56 = vpop.f32.mrf.mxu1 }
 0xb86   :  { %v2351_v1 = vmul.f32 0.044715, %v2343_v5  ;;  %v2344_v41 = vmul.f32 %v2336_v17, %v5514_v62  ;;  %v2337_v6 = vmul.f32 %v5520_v61, %v5520_v61  ;;  %v5526_v3 = vadd.f32 %v2320_v56, %v5956_v7 }
 0xb88   :  { %v2359_v46 = vadd.f32 %v2351_v1, %v5509_v47  ;;  %v2352_v53 = vmul.f32 0.044715, %v2344_v41  ;;  %v2345_v49 = vmul.f32 %v2337_v6, %v5520_v61  ;;  %v2338_v11 = vmul.f32 %v5526_v3, %v5526_v3 }
 0xb89   :  { %v2324_v38 = vpop.f32.mrf.mxu1 }
 0xb8a   :  { %v5533_v0 = vadd.f32 %v2324_v38, %v5955_v58  ;;  %v2367_v32 = vmul.f32 0.7978846, %v2359_v46  ;;  %v2360_v37 = vadd.f32 %v2352_v53, %v5514_v62  ;;  %v2353_v13 = vmul.f32 0.044715, %v2345_v49 }
 0xb8b   :  { %v2346_v8 = vmul.f32 %v2338_v11, %v5526_v3  ;;  %v2326_v10 = vpop.f32.mrf.mxu1 }
 0xb8c   :  { %v2339_v15 = vmul.f32 %v5533_v0, %v5533_v0  ;;  %v5540_v59 = vadd.f32 %v2326_v10, %v5956_v7  ;;  %4356 = vtanh.f32 %v2367_v32  ;;  %v2368_v16 = vmul.f32 0.7978846, %v2360_v37 }
 0xb8d   :  { %v2361_v19 = vadd.f32 %v2353_v13, %v5520_v61  ;;  %v2354_v42 = vmul.f32 0.044715, %v2346_v8  ;;  %v2330_v22 = vpop.f32.mrf.mxu1 }
 0xb8e   :  { %v2347_v25 = vmul.f32 %v2339_v15, %v5533_v0  ;;  %v2340_v28 = vmul.f32 %v5540_v59, %v5540_v59  ;;  %v5547_v31 = vadd.f32 %v2330_v22, %v5955_v58  ;;  %4358 = vtanh.f32 %v2368_v16 }
 0xb8f   :  { %v2369_v33 = vmul.f32 0.7978846, %v2361_v19  ;;  %v2362_v36 = vadd.f32 %v2354_v42, %v5526_v3  ;;  %v2332_v39 = vpop.f32.mrf.mxu1 }
 0xb90   :  { %v2355_v43 = vmul.f32 0.044715, %v2347_v25  ;;  %v2348_v14 = vmul.f32 %v2340_v28, %v5540_v59  ;;  %v2341_v20 = vmul.f32 %v5547_v31, %v5547_v31  ;;  %v2333_v44 = vadd.f32 %v2332_v39, %v5956_v7 }
 0xb91   :  { %4360 = vtanh.f32 %v2369_v33  ;;  %v2370_v26 = vmul.f32 0.7978846, %v2362_v36 }
 0xb92   :  { %v2363_v5 = vadd.f32 %v2355_v43, %v5533_v0  ;;  %v2356_v17 = vmul.f32 0.044715, %v2348_v14  ;;  %v2349_v56 = vmul.f32 %v2341_v20, %v5547_v31  ;;  %v2342_v1 = vmul.f32 %v2333_v44, %v2333_v44 }
 0xb93   :  { %4362 = vtanh.f32 %v2370_v26 }
 0xb94   :  { %v2371_v41 = vmul.f32 0.7978846, %v2363_v5  ;;  %v2364_v6 = vadd.f32 %v2356_v17, %v5540_v59  ;;  %v2357_v46 = vmul.f32 0.044715, %v2349_v56  ;;  %v2350_v53 = vmul.f32 %v2342_v1, %v2333_v44 }
 0xb96   :  { %4364 = vtanh.f32 %v2371_v41  ;;  %v2372_v49 = vmul.f32 0.7978846, %v2364_v6  ;;  %v2365_v11 = vadd.f32 %v2357_v46, %v5547_v31  ;;  %v2358_v38 = vmul.f32 0.044715, %v2350_v53 }
 0xb98   :  { %4366 = vtanh.f32 %v2372_v49  ;;  %v2373_v32 = vmul.f32 0.7978846, %v2365_v11  ;;  %v2366_v37 = vadd.f32 %v2358_v38, %v2333_v44 }
 0xb99   :  { %v4357_v13 = vpop.eup %4356 }
 0xb9a   :  { %4368 = vtanh.f32 %v2373_v32  ;;  %v2374_v8 = vmul.f32 0.7978846, %v2366_v37  ;;  %v2383_v10 = vadd.f32 1.0, %v4357_v13 }
 0xb9b   :  { %v4359_v15 = vpop.eup %4358 }
 0xb9c   :  { %4370 = vtanh.f32 %v2374_v8  ;;  %v2384_v16 = vadd.f32 1.0, %v4359_v15  ;;  %v2391_v42 = vmul.f32 0.5, %v2383_v10 }
 0xb9e   :  { %v4361_v19 = vpop.eup %4360  ;;  %v2392_v22 = vmul.f32 0.5, %v2384_v16  ;;  %v2399_v39 = vmul.f32 %v2391_v42, %v5509_v47 }
 0xb9f   :  { %v2385_v25 = vadd.f32 1.0, %v4361_v19 }
 0xba0   :  { %v4363_v28 = vpop.eup %4362  ;;  %v2400_v33 = vmul.f32 %v2392_v22, %v5514_v62 }
 0xba1   :  { %v2386_v36 = vadd.f32 1.0, %v4363_v28  ;;  %v2393_v43 = vmul.f32 0.5, %v2385_v25 }
 0xba2   :  { %2471 = vmatprep.mubr.f32.mxu0 %v2400_v33 }
 0xba3   :  { %v4365_v14 = vpop.eup %4364  ;;  %v2394_v20 = vmul.f32 0.5, %v2386_v36  ;;  %2472 = vmatmul.mubr.f32.vlgmr.msra.gmra.mxu0 %v2399_v39  ;;  %v2401_v56 = vmul.f32 %v2393_v43, %v5520_v61 }
 0xba4   :  { %v2387_v26 = vadd.f32 1.0, %v4365_v14  ;;  %4223 = vmatpush3.xpose.msra.mxu0 %v4894_v50 }
 0xba5   :  { %v4367_v5 = vpop.eup %4366  ;;  %v2402_v17 = vmul.f32 %v2394_v20, %v5526_v3  ;;  %4224 = vmatprep.subr.mxu0 %v5854_v57 }
 0xba6   :  { %v2388_v1 = vadd.f32 1.0, %v4367_v5  ;;  %v2395_v41 = vmul.f32 0.5, %v2387_v26 }
 0xba7   :  { %v4369_v62 = vpop.eup %4368  ;;  %2476 = vmatprep.mubr.f32.mxu0 %v2402_v17 }
 0xba8   :  { %2477 = vmatmul.mubr.f32.gmra.mxu0 %v2401_v56  ;;  %v2396_v47 = vmul.f32 0.5, %v2388_v1  ;;  %v2389_v6 = vadd.f32 1.0, %v4369_v62  ;;  %v2403_v50 = vmul.f32 %v2395_v41, %v5533_v0 }
 0xba9   :  { %v4371_v46 = vpop.eup %4370  ;;  %4225 = vmatpush3.xpose.msra.mxu0 %v4903_v52 }
 0xbaa   :  { %v2404_v53 = vmul.f32 %v2396_v47, %v5540_v59  ;;  %v2390_v49 = vadd.f32 1.0, %v4371_v46  ;;  %4243 = vmatprep.subr.mxu0 %v5854_v57  ;;  %v2397_v3 = vmul.f32 0.5, %v2389_v6 }
 0xbac   :  { %2481 = vmatprep.mubr.f32.mxu0 %v2404_v53  ;;  %v2398_v61 = vmul.f32 0.5, %v2390_v49  ;;  %v2405_v38 = vmul.f32 %v2397_v3, %v5547_v31 }
 0xbad   :  { %2482 = vmatmul.mubr.f32.gmra.mxu0 %v2403_v50 }
 0xbae   :  { %v2406_v11 = vmul.f32 %v2398_v61, %v2333_v44 }
 0xbb0   :  { %2486 = vmatprep.mubr.f32.mxu0 %v2406_v11 }
 0xbb1   :  { %2487 = vmatmul.mubr.f32.gmra.mxu0 %v2405_v38 }
 0xbb2   :  { %4226 = vmatprep.mubr.msk.f32.mxu0 %vm4664_vm0, %v5854_v57 }
 0xc63   :  { %v3779_v52 = vpop.f32.mrf.mxu0 }
 0xc65   :  { %v3780_v32 = vpop.f32.mrf.mxu0 }
 0xc66   :  { %v3781_v59 = vadd.f32 %v3780_v32, %v3779_v52 }
 0xc68   :  { %v3782_v37 = vpop.f32.mrf.mxu0  ;;  %v2474_v13 = vadd.f32 %v3781_v59, %v5321_v29 }
 0xc6a   :  { %v3783_v8 = vpop.f32.mrf.mxu0  ;;  %v5573_v10 = vadd.f32 %v2474_v13, %v5324_v9 }
 0xc6b   :  { %v3784_v0 = vadd.f32 %v3783_v8, %v3782_v37 }
 0xc6c   :  { %4195 = vmatprep.mubr.f32.mxu1 %v5573_v10 }
 0xc6d   :  { %v2479_v44 = vadd.f32 %v3784_v0, %v5321_v29  ;;  %v3785_v31 = vpop.f32.mrf.mxu0 }
 0xc6f   :  { %v5578_v15 = vadd.f32 %v2479_v44, %v5328_v23  ;;  %v3786_v16 = vpop.f32.mrf.mxu0 }
 0xc70   :  { %v3787_v19 = vadd.f32 %v3786_v16, %v3785_v31 }
 0xc71   :  { %4196 = vmatmul.mubr.f32.vlgmr.msra.gmra.mxu1 %v5578_v15  ;;  %v3788_v42 = vpop.f32.mrf.mxu0 }
 0xc72   :  { %v2484_v22 = vadd.f32 %v3787_v19, %v5321_v29  ;;  %4202 = vmatpush3.xpose.msra.mxu1 %v4847_v4 }
 0xc73   :  { %v3789_v25 = vpop.f32.mrf.mxu0  ;;  %4203 = vmatprep.subr.mxu1 %v5854_v57 }
 0xc74   :  { %v3790_v9 = vadd.f32 %v3789_v25, %v3788_v42  ;;  %v5585_v28 = vadd.f32 %v2484_v22, %v5336_v2 }
 0xc76   :  { %v2489_v33 = vadd.f32 %v3790_v9, %v5321_v29  ;;  %4204 = vmatpush3.xpose.msra.mxu1 %v4854_v12  ;;  %4198 = vmatprep.mubr.f32.mxu1 %v5585_v28 }
 0xc77   :  { %4208 = vmatprep.subr.mxu1 %v5854_v57 }
 0xc78   :  { %v5592_v23 = vadd.f32 %v2489_v33, %v5340_v63 }
 0xc7a   :  { %4199 = vmatmul.mubr.f32.gmra.mxu1 %v5592_v23 }
 0xc7b   :  { %4205 = vmatprep.mubr.msk.f32.mxu1 %vm4664_vm0, %v5854_v57 }
 0xd31   :  { %v4197_v4 = vpop.f32.mrf.mxu1 }
 0xd32   :  { %v2568_v63 = vadd.f32 %v5348_v60, %v4197_v4 }
 0xd33   :  { %v2562_v36 = vpop.f32.mrf.mxu1 }
 0xd34   :  { %v2563_v2 = vadd.f32 %v5348_v60, %v2562_v36 }
 0xd36   :  { %4206 = vmatmul.mubr.f32.vlgmr.msra.gmra.mxu1 %v2563_v2  ;;  %v4423_v2 = vld [vmem:[#allocation10 + $0xf0] sm:$0xff] }
 0xd37   :  { %4209 = vmatpush3.xpose.msra.mxu1 %v4865_v21  ;;  %4212 = vmatprep.mubr.msk.f32.mxu1 %vm4664_vm0, %v5854_v57 }
 0xd38   :  { %4210 = vmatprep.subr.mxu1 %v5854_v57 }
 0xd3a   :  { %v4200_v12 = vpop.f32.mrf.mxu1 }
 0xd3b   :  { %4211 = vmatpush3.xpose.msra.mxu1 %v4874_v27  ;;  %v2578_v29 = vadd.f32 %v5348_v60, %v4200_v12 }
 0xd3c   :  { %4215 = vmatprep.subr.mxu1 %v5854_v57  ;;  %v2572_v21 = vpop.f32.mrf.mxu1 }
 0xd3d   :  { %4227 = vmatmul.mubr.f32.vlgmr.msra.gmra.mxu0 %v2578_v29  ;;  %v2573_v27 = vadd.f32 %v5348_v60, %v2572_v21  ;;  %v4424_v29 = vld [vmem:[#allocation10 + $0xe8] sm:$0xff]  ;;  %v4428_v21 = vld [vmem:[#allocation8 + $0x70] sm:$0xff] }
 0xd3e   :  { %4213 = vmatmul.mubr.f32.vlgmr.msra.gmra.mxu1 %v2568_v63  ;;  %4244 = vmatpush3.msra.mxu0 %v4912_v54  ;;  %v4426_v63 = vld [vmem:[#allocation10 + $0xd8] sm:$0xff] }
 0xd3f   :  { %4216 = vmatpush3.xpose.msra.mxu1 %v4878_v34  ;;  %4245 = vmatprep.subr.mxu0 %v5854_v57 }
 0xd40   :  { %4246 = vmatpush3.msra.mxu0 %v4915_v55  ;;  %4217 = vmatprep.subr.mxu1 %v5854_v57 }
 0xd41   :  { %4219 = vmatprep.mubr.msk.f32.mxu1 %vm4664_vm0, %v5854_v57  ;;  %4247 = vmatprep.mubr.msk.f32.mxu0 %vm4664_vm0, %v5854_v57 }
 0xd42   :  { %4257 = vmatprep.subr.mxu0 %v5405_v35 }
 0xd43   :  { %4218 = vmatpush3.xpose.msra.mxu1 %v4884_v40 }
 0xd44   :  { %4229 = vmatprep.subr.mxu1 %v5854_v57 }
 0xd46   :  { %4220 = vmatmul.mubr.f32.vlgmr.msra.gmra.mxu1 %v2573_v27  ;;  %v4429_v27 = vld [vmem:[#allocation10 + $0xc8] sm:$0xff] }
 0xd47   :  { %4230 = vmatpush3.msra.mxu1 %v4892_v48  ;;  %4233 = vmatprep.mubr.msk.f32.mxu1 %vm4664_vm0, %v5854_v57 }
 0xd48   :  { %4231 = vmatprep.subr.mxu1 %v5854_v57 }
 0xd49   :  { %4232 = vmatpush3.msra.mxu1 %v4897_v51 }
 0xd4a   :  { %4236 = vmatprep.subr.mxu1 %v5854_v57 }
 0xdf6   :  { %v2647_v34 = vpop.f32.mrf.mxu1 }
 0xdf7   :  { %v2861_v54 = vmul.f32 0.088388346, %v2647_v34  ;;  %v4430_v34 = vld [vmem:[#allocation10 + $0xc0] sm:$0xff] }
 0xdf8   :  { %v4207_v55 = vpop.f32.mrf.mxu1 }
 0xdf9   :  { %v2865_v40 = vsel %vm761_vm1, %v2861_v54, -inf  ;;  %v4432_v55 = vld [vmem:[#allocation10 + $0xb8] sm:$0xff] }
 0xdfa   :  { %2866 = vmax.xlane.f32.xlu0 %v2865_v40  ;;  %v4433_v40 = vld [vmem:[#allocation10 + $0xb0] sm:$0xff] }
 0xdfd   :  { %v2857_v60 = vpop.f32.mrf.mxu0 }
 0xdfe   :  { %v2717_v39 = vpop.f32.mrf.mxu1  ;;  %v2864_v20 = vmul.f32 0.088388346, %v2857_v60  ;;  %v4434_v60 = vld [vmem:[#allocation8 + $0x60] sm:$0xff] }
 0xdff   :  { %v2862_v43 = vmul.f32 0.088388346, %v2717_v39  ;;  %v4228_v14 = vpop.f32.mrf.mxu0  ;;  %v4435_v39 = vld [vmem:[#allocation10 + $0xa8] sm:$0xff] }
 0xe00   :  { %v4214_v48 = vpop.f32.mrf.mxu1  ;;  %v2874_v5 = vsel %vm761_vm1, %v2864_v20, -inf  ;;  %v4438_v14 = vld [vmem:[#allocation10 + $0x98] sm:$0xff] }
 0xe01   :  { %v2868_v26 = vsel %vm761_vm1, %v2862_v43, -inf  ;;  %v4439_v48 = vld [vmem:[#allocation10 + $0x90] sm:$0xff] }
 0xe02   :  { %2869 = vmax.xlane.f32.xlu1 %v2868_v26  ;;  %v4441_v26 = vld [vmem:[#allocation10 + $0x88] sm:$0xff] }
 0xe06   :  { %2875 = vmax.xlane.f32.xlu1 %v2874_v5  ;;  %v2787_v51 = vpop.f32.mrf.mxu1  ;;  %v4442_v5 = vld [vmem:[#allocation10 + $0x80] sm:$0xff] }
 0xe07   :  { %v2863_v17 = vmul.f32 0.088388346, %v2787_v51  ;;  %v4443_v51 = vld [vmem:[#allocation8 + $0x48] sm:$0xff] }
 0xe08   :  { %v4221_v56 = vpop.f32.mrf.mxu1 }
 0xe09   :  { %v2871_v1 = vsel %vm761_vm1, %v2863_v17, -inf  ;;  %v4445_v56 = vld [vmem:[#allocation10 + $0x70] sm:$0xff] }
 0xe0a   :  { %2872 = vmax.xlane.f32.xlu0 %v2871_v1  ;;  %v4446_v1 = vld [vmem:[#allocation8 + $0x40] sm:$0xff] }
 0xe83   :  { %v2867_v62 = vpop.xlane.xlu0 %2866 }
 0xe84   :  { %v2877_v41 = vsub.f32 %v2861_v54, %v2867_v62  ;;  %v4431_v54 = vld [vmem:[#allocation8 + $0x68] sm:$0xff] }
 0xe85   :  { %v4447_v62 = vld [vmem:[#allocation10 + $0x68] sm:$0xff] }
 0xe86   :  { %v2881_v47 = vmul.f32 1.442695, %v2877_v41  ;;  %v4448_v41 = vld [vmem:[#allocation10 + $0x60] sm:$0xff] }
 0xe88   :  { %4372 = vpow2.f32 %v2881_v47  ;;  %v4449_v47 = vld [vmem:[#allocation8 + $0x38] sm:$0xff] }
 0xe8b   :  { %v2870_v6 = vpop.xlane.xlu1 %2869 }
 0xe8c   :  { %v2878_v46 = vsub.f32 %v2862_v43, %v2870_v6  ;;  %v4437_v43 = vld [vmem:[#allocation8 + $0x58] sm:$0xff] }
 0xe8d   :  { %v4450_v6 = vld [vmem:[#allocation10 + $0x58] sm:$0xff] }
 0xe8e   :  { %v2883_v53 = vmul.f32 1.442695, %v2878_v46  ;;  %v4451_v46 = vld [vmem:[#allocation10 + $0x50] sm:$0xff] }
 0xe8f   :  { %v2876_v49 = vpop.xlane.xlu1 %2875 }
 0xe90   :  { %4374 = vpow2.f32 %v2883_v53  ;;  %v2880_v50 = vsub.f32 %v2864_v20, %v2876_v49  ;;  %v4440_v20 = vld [vmem:[#allocation8 + $0x50] sm:$0xff]  ;;  %v4453_v49 = vld [vmem:[#allocation10 + $0x48] sm:$0xff] }
 0xe91   :  { %v4452_v53 = vld [vmem:[#allocation8 + $0x30] sm:$0xff] }
 0xe92   :  { %v2887_v3 = vmul.f32 1.442695, %v2880_v50  ;;  %v4454_v50 = vld [vmem:[#allocation10 + $0x40] sm:$0xff] }
 0xe93   :  { %v2873_v61 = vpop.xlane.xlu0 %2872 }
 0xe94   :  { %4376 = vpow2.f32 %v2887_v3  ;;  %v2879_v11 = vsub.f32 %v2863_v17, %v2873_v61  ;;  %v4444_v17 = vld [vmem:[#allocation10 + $0x78] sm:$0xff]  ;;  %v4455_v3 = vld [vmem:[#allocation8 + $0x28] sm:$0xff] }
 0xe95   :  { %v4373_v38 = vpop.eup %4372  ;;  %v4456_v61 = vld [vmem:[#allocation10 + $0x38] sm:$0xff] }
 0xe96   :  { %v2885_v52 = vmul.f32 1.442695, %v2879_v11  ;;  %v2889_v32 = vsel %vm761_vm1, %v4373_v38, 0.0  ;;  %v4457_v11 = vld [vmem:[#allocation10 + $0x30] sm:$0xff] }
 0xe97   :  { %2890 = vadd.xlane.f32.xlu0 %v2889_v32  ;;  %v4460_v32 = vld [vmem:[#allocation10 + $0x20] sm:$0xff] }
 0xe98   :  { %4378 = vpow2.f32 %v2885_v52  ;;  %v4459_v52 = vld [vmem:[#allocation10 + $0x28] sm:$0xff] }
 0xe9d   :  { %v4375_v59 = vpop.eup %4374 }
 0xe9e   :  { %v2892_v37 = vsel %vm761_vm1, %v4375_v59, 0.0 }
 0xe9f   :  { %2893 = vadd.xlane.f32.xlu1 %v2892_v37  ;;  %v4462_v37 = vld [vmem:[#allocation10 + $0x18] sm:$0xff] }
 0xea1   :  { %v4377_v13 = vpop.eup %4376 }
 0xea2   :  { %v2898_v8 = vsel %vm761_vm1, %v4377_v13, 0.0 }
 0xea3   :  { %2899 = vadd.xlane.f32.xlu1 %v2898_v8  ;;  %v4464_v8 = vld [vmem:[#allocation8 + $0x10] sm:$0xff] }
 0xea5   :  { %v4379_v0 = vpop.eup %4378 }
 0xea6   :  { %v2895_v44 = vsel %vm761_vm1, %v4379_v0, 0.0 }
 0xea7   :  { %2896 = vadd.xlane.f32.xlu0 %v2895_v44  ;;  %v4466_v44 = vld [vmem:[#allocation10] sm:$0xff] }
 0xf20   :  { %v2891_v31 = vpop.xlane.xlu0 %2890 }
 0xf21   :  { %4380 = vrcp.f32 %v2891_v31  ;;  %v4467_v31 = vld [vmem:[#allocation8 + $0x8] sm:$0xff] }
 0xf28   :  { %v2894_v16 = vpop.xlane.xlu1 %2893 }
 0xf29   :  { %4382 = vrcp.f32 %v2894_v16  ;;  %v4468_v16 = vld [vmem:[#allocation8] sm:$0xff] }
 0xf2c   :  { %v2900_v19 = vpop.xlane.xlu1 %2899 }
 0xf2d   :  { %4384 = vrcp.f32 %v2900_v19  ;;  %v4469_v19 = vld [vmem:[#allocation11 + $0xf8] sm:$0xff] }
 0xf2e   :  { %v4381_v42 = vpop.eup %4380 }
 0xf2f   :  { %v2905_v22 = vmul.f32 %v4381_v42, %v4373_v38  ;;  %v4458_v38 = vld [vmem:[#allocation8 + $0x20] sm:$0xff] }
 0xf30   :  { %v2897_v25 = vpop.xlane.xlu0 %2896 }
 0xf31   :  { %4386 = vrcp.f32 %v2897_v25  ;;  %4234 = vmatmul.mubr.msk.f32.vlgmr.msra.gmra.mxu1 %vm761_vm1, %v2905_v22 }
 0xf32   :  { %4237 = vmatpush3.msra.mxu1 %v4868_v24  ;;  %4240 = vmatprep.mubr.msk.f32.mxu1 %vm4664_vm0, %v5854_v57 }
 0xf33   :  { %4238 = vmatprep.subr.mxu1 %v5854_v57 }
 0xf34   :  { %4239 = vmatpush3.msra.mxu1 %v4861_v18  ;;  %v4422_v18 = vld [vmem:[#allocation10 + $0xf8] sm:$0xff] }
 0xf35   :  { %4250 = vmatprep.subr.mxu1 %v5854_v57 }
 0xf36   :  { %v4383_v9 = vpop.eup %4382 }
 0xf37   :  { %v2906_v33 = vmul.f32 %v4383_v9, %v4375_v59  ;;  %v4461_v59 = vld [vmem:[#allocation8 + $0x18] sm:$0xff] }
 0xf39   :  { %4241 = vmatmul.mubr.msk.f32.vlgmr.msra.gmra.mxu1 %vm761_vm1, %v2906_v33  ;;  %v4470_v33 = vld [vmem:[#allocation11 + $0x78] sm:$0xff] }
 0xf3a   :  { %v4385_v4 = vpop.eup %4384  ;;  %4251 = vmatpush3.msra.mxu1 %v4941_v30  ;;  %4254 = vmatprep.mubr.msk.f32.mxu1 %vm4664_vm0, %v5854_v57  ;;  %v4425_v30 = vld [vmem:[#allocation10 + $0xe0] sm:$0xff] }
 0xf3b   :  { %4252 = vmatprep.subr.mxu1 %v5854_v57  ;;  %v2908_v24 = vmul.f32 %v4385_v4, %v4377_v13  ;;  %v4463_v13 = vld [vmem:[#allocation10 + $0x10] sm:$0xff] }
 0xf3c   :  { %4253 = vmatpush3.msra.mxu1 %v4887_v45  ;;  %v4427_v45 = vld [vmem:[#allocation10 + $0xd0] sm:$0xff] }
 0xf3d   :  { %4255 = vmatmul.mubr.msk.f32.vlgmr.msra.gmra.mxu1 %vm761_vm1, %v2908_v24  ;;  %3286 = vmatprep.subr.mxu1 %v4422_v18  ;;  %v4471_v4 = vld [vmem:[#allocation11 + $0xf0] sm:$0xff] }
 0xf3e   :  { %v4387_v36 = vpop.eup %4386  ;;  %3287 = vmatpush1.msra.mxu1 %v4423_v2  ;;  %3350 = vmatprep.mubr.f32.mxu1 %v5854_v57  ;;  %v4472_v18 = vld [vmem:[#allocation11 + $0x70] sm:$0xff] }
 0xf3f   :  { %v2907_v12 = vmul.f32 %v4387_v36, %v4379_v0  ;;  %3288 = vmatprep.subr.mxu1 %v4424_v29  ;;  %v4465_v0 = vld [vmem:[#allocation10 + $0x8] sm:$0xff]  ;;  %v4475_v29 = vld [vmem:[#allocation11 + $0xe0] sm:$0xff] }
 0xf40   :  { %3289 = vmatpush1.msra.mxu1 %v4425_v30  ;;  %v4473_v36 = vld [vmem:[#allocation11 + $0xe8] sm:$0xff] }
 0xf41   :  { %4248 = vmatmul.mubr.msk.f32.vlgmr.msra.gmra.mxu0 %vm761_vm1, %v2907_v12  ;;  %3290 = vmatprep.subr.mxu1 %v4426_v63  ;;  %v4474_v12 = vld [vmem:[#allocation11 + $0x68] sm:$0xff]  ;;  %v4476_v63 = vld [vmem:[#allocation11 + $0x60] sm:$0xff] }
 0xf42   :  { %4258 = vmatpush3.msra.mxu0 %v5405_v35  ;;  %3291 = vmatpush1.msra.mxu1 %v4427_v45  ;;  %v4436_v35 = vld [vmem:[#allocation10 + $0xa0] sm:$0xff]  ;;  %v4477_v45 = vld [vmem:[#allocation11 + $0xd8] sm:$0xff] }
 0xf43   :  { %4259 = vmatprep.subr.mxu0 %v4428_v21  ;;  %3292 = vmatprep.subr.mxu1 %v4429_v27  ;;  %v4478_v27 = vld [vmem:[#allocation11 + $0x58] sm:$0xff] }
 0xf44   :  { %4260 = vmatpush3.msra.mxu0 %v4428_v21  ;;  %3293 = vmatpush1.msra.mxu1 %v4430_v34  ;;  %v4479_v34 = vld [vmem:[#allocation11 + $0xd0] sm:$0xff] }
 0xf45   :  { %4261 = vmatprep.subr.mxu0 %v4431_v54  ;;  %3294 = vmatprep.subr.mxu1 %v4432_v55  ;;  %v4481_v55 = vld [vmem:[#allocation11 + $0xc8] sm:$0xff] }
 0xf46   :  { %4262 = vmatpush3.msra.mxu0 %v4431_v54  ;;  %3295 = vmatpush1.msra.mxu1 %v4433_v40  ;;  %v4480_v54 = vld [vmem:[#allocation11 + $0x50] sm:$0xff]  ;;  %v4482_v40 = vld [vmem:[#allocation11 + $0x48] sm:$0xff] }
 0xf47   :  { %4263 = vmatprep.subr.mxu0 %v4434_v60  ;;  %3296 = vmatprep.subr.mxu1 %v4435_v39  ;;  %v4484_v39 = vld [vmem:[#allocation11 + $0x40] sm:$0xff] }
 0xf48   :  { %4264 = vmatpush3.msra.mxu0 %v4434_v60  ;;  %3297 = vmatpush1.msra.mxu1 %v4436_v35  ;;  %v4483_v60 = vld [vmem:[#allocation11 + $0xc0] sm:$0xff]  ;;  %v4485_v35 = vld [vmem:[#allocation11 + $0xb8] sm:$0xff] }
 0xf49   :  { %4265 = vmatprep.subr.mxu0 %v4437_v43  ;;  %3298 = vmatprep.subr.mxu1 %v4438_v14  ;;  %v4487_v14 = vld [vmem:[#allocation11 + $0xb0] sm:$0xff] }
 0xf4a   :  { %4266 = vmatpush3.msra.mxu0 %v4437_v43  ;;  %3299 = vmatpush1.msra.mxu1 %v4439_v48  ;;  %v4486_v43 = vld [vmem:[#allocation11 + $0x38] sm:$0xff]  ;;  %v4488_v48 = vld [vmem:[#allocation11 + $0x30] sm:$0xff] }
 0xf4b   :  { %4267 = vmatprep.subr.mxu0 %v4440_v20  ;;  %3300 = vmatprep.subr.mxu1 %v4441_v26  ;;  %v4490_v26 = vld [vmem:[#allocation11 + $0x28] sm:$0xff] }
 0xf4c   :  { %4268 = vmatpush3.msra.mxu0 %v4440_v20  ;;  %3301 = vmatpush1.msra.mxu1 %v4442_v5  ;;  %v4489_v20 = vld [vmem:[#allocation11 + $0xa8] sm:$0xff]  ;;  %v4491_v5 = vld [vmem:[#allocation11 + $0xa0] sm:$0xff] }
 0xf4d   :  { %4269 = vmatprep.subr.mxu0 %v4443_v51  ;;  %3302 = vmatprep.subr.mxu1 %v4444_v17  ;;  %v4493_v17 = vld [vmem:[#allocation11 + $0x98] sm:$0xff] }
 0xf4e   :  { %4270 = vmatpush3.msra.mxu0 %v4443_v51  ;;  %3303 = vmatpush1.msra.mxu1 %v4445_v56  ;;  %v4492_v51 = vld [vmem:[#allocation11 + $0x20] sm:$0xff]  ;;  %v4494_v56 = vld [vmem:[#allocation11 + $0x18] sm:$0xff] }
 0xf4f   :  { %4271 = vmatprep.subr.mxu0 %v4446_v1  ;;  %3304 = vmatprep.subr.mxu1 %v4447_v62  ;;  %v4496_v62 = vld [vmem:[#allocation11 + $0x10] sm:$0xff] }
 0xf50   :  { %4272 = vmatpush3.msra.mxu0 %v4446_v1  ;;  %3305 = vmatpush1.msra.mxu1 %v4448_v41  ;;  %v4495_v1 = vld [vmem:[#allocation11 + $0x90] sm:$0xff]  ;;  %v4497_v41 = vld [vmem:[#allocation11 + $0x88] sm:$0xff] }
 0xf51   :  { %4273 = vmatprep.subr.mxu0 %v4449_v47  ;;  %3306 = vmatprep.subr.mxu1 %v4450_v6  ;;  %v4499_v6 = vld [vmem:[#allocation11 + $0x80] sm:$0xff] }
 0xf52   :  { %4274 = vmatpush3.msra.mxu0 %v4449_v47  ;;  %3307 = vmatpush1.msra.mxu1 %v4451_v46  ;;  %v4498_v47 = vld [vmem:[#allocation11 + $0x8] sm:$0xff]  ;;  %v4500_v46 = vld [vmem:[#allocation11] sm:$0xff] }
 0xf53   :  { %4275 = vmatprep.subr.mxu0 %v4452_v53  ;;  %3308 = vmatprep.subr.mxu1 %v4453_v49 }
 0xf54   :  { %4276 = vmatpush3.msra.mxu0 %v4452_v53  ;;  %3309 = vmatpush1.msra.mxu1 %v4454_v50  ;;  %v4501_v50 = vld [vmem:[%s5732_s6] ss:$0 sm:$0xff] }
 0xf55   :  { %4277 = vmatprep.subr.mxu0 %v4455_v3  ;;  %3310 = vmatprep.subr.mxu1 %v4456_v61 }
 0xf56   :  { %4278 = vmatpush3.msra.mxu0 %v4455_v3  ;;  %3311 = vmatpush1.msra.mxu1 %v4457_v11 }
 0xf57   :  { %4279 = vmatprep.subr.mxu0 %v4458_v38  ;;  %3312 = vmatprep.subr.mxu1 %v4459_v52 }
 0xf58   :  { %4280 = vmatpush3.msra.mxu0 %v4458_v38  ;;  %3313 = vmatpush1.msra.mxu1 %v4460_v32 }
 0xf59   :  { %4281 = vmatprep.subr.mxu0 %v4461_v59  ;;  %3314 = vmatprep.subr.mxu1 %v4462_v37 }
 0xf5a   :  { %4282 = vmatpush3.msra.mxu0 %v4461_v59  ;;  %3315 = vmatpush1.msra.mxu1 %v4463_v13 }
 0xf5b   :  { %4283 = vmatprep.subr.mxu0 %v4464_v8  ;;  %3316 = vmatprep.subr.mxu1 %v4465_v0 }
 0xf5c   :  { %4284 = vmatpush3.msra.mxu0 %v4464_v8  ;;  %3317 = vmatpush1.msra.mxu1 %v4466_v44 }
 0xf5d   :  { %4285 = vmatprep.subr.mxu0 %v4467_v31 }
 0xf5e   :  { %4286 = vmatpush3.msra.mxu0 %v4467_v31 }
 0xf5f   :  { %4287 = vmatprep.subr.mxu0 %v4468_v16 }
 0xf60   :  { %4288 = vmatpush3.msra.mxu0 %v4468_v16 }
 0xf61   :  { %3855 = vmatprep.subr.mxu0 %v4469_v19 }
 0xff1   :  { %v2978_v42 = vpop.f32.mrf.mxu1 }
 0xff2   :  { %4289 = vmatprep.mubr.f32.mxu0 %v2978_v42 }
 0xff3   :  { %v4235_v22 = vpop.f32.mrf.mxu1 }
 0xff9   :  { %v3051_v25 = vpop.f32.mrf.mxu1 }
 0xffa   :  { %4290 = vmatmul.mubr.f32.vlgmr.msra.gmra.mxu0 %v3051_v25 }
 0xffb   :  { %v4242_v9 = vpop.f32.mrf.mxu1  ;;  %3856 = vmatpush3.msra.mxu0 %v4470_v33 }
 0xffc   :  { %3857 = vmatprep.subr.mxu0 %v4471_v4 }
 0xffd   :  { %v3197_v24 = vpop.f32.mrf.mxu1  ;;  %3858 = vmatpush3.msra.mxu0 %v4472_v18 }
 0xffe   :  { %3859 = vmatprep.subr.mxu0 %v4473_v36 }
 0xfff   :  { %v4256_v2 = vpop.f32.mrf.mxu1  ;;  %3860 = vmatpush3.msra.mxu0 %v4474_v12 }
0x1000   :  { %3861 = vmatprep.subr.mxu0 %v4475_v29 }
0x1001   :  { %v3124_v30 = vpop.f32.mrf.mxu0  ;;  %3862 = vmatpush3.msra.mxu0 %v4476_v63 }
0x1002   :  { %4292 = vmatprep.mubr.f32.mxu0 %v3124_v30  ;;  %3863 = vmatprep.subr.mxu0 %v4477_v45 }
0x1003   :  { %v4249_v21 = vpop.f32.mrf.mxu0  ;;  %4293 = vmatmul.mubr.f32.gmra.mxu0 %v3197_v24 }
0x1004   :  { %3864 = vmatpush3.msra.mxu0 %v4478_v27 }
0x1005   :  { %3865 = vmatprep.subr.mxu0 %v4479_v34 }
0x1006   :  { %3866 = vmatpush3.msra.mxu0 %v4480_v54 }
0x1007   :  { %3867 = vmatprep.subr.mxu0 %v4481_v55 }
0x1008   :  { %3868 = vmatpush3.msra.mxu0 %v4482_v40 }
0x1009   :  { %3869 = vmatprep.subr.mxu0 %v4483_v60 }
0x100a   :  { %3870 = vmatpush3.msra.mxu0 %v4484_v39 }
0x100b   :  { %3871 = vmatprep.subr.mxu0 %v4485_v35 }
0x100c   :  { %3872 = vmatpush3.msra.mxu0 %v4486_v43 }
0x100d   :  { %3873 = vmatprep.subr.mxu0 %v4487_v14 }
0x100e   :  { %3874 = vmatpush3.msra.mxu0 %v4488_v48 }
0x100f   :  { %3875 = vmatprep.subr.mxu0 %v4489_v20 }
0x1010   :  { %3876 = vmatpush3.msra.mxu0 %v4490_v26 }
0x1011   :  { %3877 = vmatprep.subr.mxu0 %v4491_v5 }
0x1012   :  { %3878 = vmatpush3.msra.mxu0 %v4492_v51 }
0x1013   :  { %3879 = vmatprep.subr.mxu0 %v4493_v17 }
0x1014   :  { %3880 = vmatpush3.msra.mxu0 %v4494_v56 }
0x1015   :  { %3881 = vmatprep.subr.mxu0 %v4495_v1 }
0x1016   :  { %3882 = vmatpush3.msra.mxu0 %v4496_v62 }
0x1017   :  { %3883 = vmatprep.subr.mxu0 %v4497_v41 }
0x1018   :  { %3884 = vmatpush3.msra.mxu0 %v4498_v47 }
0x1019   :  { %3885 = vmatprep.subr.mxu0 %v4499_v6 }
0x101a   :  { %3886 = vmatpush3.msra.mxu0 %v4500_v46 }
0x10ba   :  { %v4291_v53 = vpop.f32.mrf.mxu0 }
0x10bb   :  { %v3273_v61 = vadd.f32 %v4501_v50, %v4291_v53 }
0x10bc   :  { %v3267_v49 = vpop.f32.mrf.mxu0 }
0x10bd   :  { %v3268_v3 = vadd.f32 %v4501_v50, %v3267_v49 }
0x10bf   :  { %3351 = vmatmul.mubr.f32.vlgmr.msra.gmra.mxu1 %v3268_v3 }
0x10c0   :  { %3356 = vmatprep.mubr.f32.mxu1 %v5854_v57 }
0x10c3   :  { %v4294_v11 = vpop.f32.mrf.mxu0  ;;  %3357 = vmatmul.mubr.f32.gmra.mxu1 %v3273_v61 }
0x10c4   :  { %3362 = vmatprep.mubr.f32.mxu1 %v5854_v57  ;;  %v3283_v32 = vadd.f32 %v4501_v50, %v4294_v11 }
0x10c5   :  { %v3277_v38 = vpop.f32.mrf.mxu0 }
0x10c6   :  { %v3278_v52 = vadd.f32 %v4501_v50, %v3277_v38 }
0x10c8   :  { %3363 = vmatmul.mubr.f32.gmra.mxu1 %v3278_v52 }
0x10c9   :  { %3368 = vmatprep.mubr.f32.mxu1 %v5854_v57 }
0x10cc   :  { %3369 = vmatmul.mubr.f32.gmra.mxu1 %v3283_v32 }
0x117f   :  { %v3352_v59 = vpop.f32.mrf.mxu1 }
0x1180   :  { %v5657_v37 = vadd.f32 %v3352_v59, %v5955_v58 }
0x1181   :  { %v3354_v13 = vpop.f32.mrf.mxu1 }
0x1182   :  { %v3375_v8 = vmul.f32 %v5657_v37, %v5657_v37  ;;  %v5662_v0 = vadd.f32 %v3354_v13, %v5956_v7 }
0x1183   :  { %v3358_v44 = vpop.f32.mrf.mxu1 }
0x1184   :  { %v3383_v31 = vmul.f32 %v3375_v8, %v5657_v37  ;;  %v3376_v16 = vmul.f32 %v5662_v0, %v5662_v0  ;;  %v5668_v57 = vadd.f32 %v3358_v44, %v5955_v58 }
0x1185   :  { %v3360_v19 = vpop.f32.mrf.mxu1 }
0x1186   :  { %v3391_v42 = vmul.f32 0.044715, %v3383_v31  ;;  %v3384_v22 = vmul.f32 %v3376_v16, %v5662_v0  ;;  %v3377_v25 = vmul.f32 %v5668_v57, %v5668_v57  ;;  %v5674_v9 = vadd.f32 %v3360_v19, %v5956_v7 }
0x1188   :  { %v3399_v33 = vadd.f32 %v3391_v42, %v5657_v37  ;;  %v3392_v4 = vmul.f32 0.044715, %v3384_v22  ;;  %v3385_v24 = vmul.f32 %v3377_v25, %v5668_v57  ;;  %v3378_v18 = vmul.f32 %v5674_v9, %v5674_v9  ;;  %v3364_v36 = vpop.f32.mrf.mxu1 }
0x1189   :  { %v5681_v2 = vadd.f32 %v3364_v36, %v5955_v58 }
0x118a   :  { %v3407_v12 = vmul.f32 0.7978846, %v3399_v33  ;;  %v3400_v29 = vadd.f32 %v3392_v4, %v5662_v0  ;;  %v3393_v30 = vmul.f32 0.044715, %v3385_v24  ;;  %v3386_v63 = vmul.f32 %v3378_v18, %v5674_v9  ;;  %v3366_v45 = vpop.f32.mrf.mxu1 }
0x118b   :  { %v3379_v21 = vmul.f32 %v5681_v2, %v5681_v2  ;;  %v5688_v27 = vadd.f32 %v3366_v45, %v5956_v7 }
0x118c   :  { %4388 = vtanh.f32 %v3407_v12  ;;  %v3408_v34 = vmul.f32 0.7978846, %v3400_v29  ;;  %v3401_v54 = vadd.f32 %v3393_v30, %v5668_v57  ;;  %v3394_v55 = vmul.f32 0.044715, %v3386_v63  ;;  %v3370_v40 = vpop.f32.mrf.mxu1 }
0x118d   :  { %v3387_v60 = vmul.f32 %v3379_v21, %v5681_v2  ;;  %v3380_v39 = vmul.f32 %v5688_v27, %v5688_v27  ;;  %v5695_v35 = vadd.f32 %v3370_v40, %v5955_v58 }
0x118e   :  { %4390 = vtanh.f32 %v3408_v34  ;;  %v3409_v43 = vmul.f32 0.7978846, %v3401_v54  ;;  %v3402_v14 = vadd.f32 %v3394_v55, %v5674_v9  ;;  %v3372_v48 = vpop.f32.mrf.mxu1 }
0x118f   :  { %v3395_v20 = vmul.f32 0.044715, %v3387_v60  ;;  %v3388_v26 = vmul.f32 %v3380_v39, %v5688_v27  ;;  %v3381_v5 = vmul.f32 %v5695_v35, %v5695_v35  ;;  %v3373_v51 = vadd.f32 %v3372_v48, %v5956_v7 }
0x1190   :  { %4392 = vtanh.f32 %v3409_v43  ;;  %v3410_v17 = vmul.f32 0.7978846, %v3402_v14 }
0x1191   :  { %v3403_v56 = vadd.f32 %v3395_v20, %v5681_v2  ;;  %v3396_v1 = vmul.f32 0.044715, %v3388_v26  ;;  %v3389_v58 = vmul.f32 %v3381_v5, %v5695_v35  ;;  %v3382_v62 = vmul.f32 %v3373_v51, %v3373_v51 }
0x1192   :  { %4394 = vtanh.f32 %v3410_v17 }
0x1193   :  { %v3411_v41 = vmul.f32 0.7978846, %v3403_v56  ;;  %v3404_v47 = vadd.f32 %v3396_v1, %v5688_v27  ;;  %v3397_v6 = vmul.f32 0.044715, %v3389_v58  ;;  %v3390_v46 = vmul.f32 %v3382_v62, %v3373_v51 }
0x1195   :  { %4396 = vtanh.f32 %v3411_v41  ;;  %v3412_v53 = vmul.f32 0.7978846, %v3404_v47  ;;  %v3405_v49 = vadd.f32 %v3397_v6, %v5695_v35  ;;  %v3398_v50 = vmul.f32 0.044715, %v3390_v46 }
0x1197   :  { %4398 = vtanh.f32 %v3412_v53  ;;  %v3413_v7 = vmul.f32 0.7978846, %v3405_v49  ;;  %v3406_v3 = vadd.f32 %v3398_v50, %v3373_v51 }
0x1199   :  { %v4389_v61 = vpop.eup %4388  ;;  %4400 = vtanh.f32 %v3413_v7  ;;  %v3414_v11 = vmul.f32 0.7978846, %v3406_v3 }
0x119a   :  { %v3423_v38 = vadd.f32 1.0, %v4389_v61 }
0x119b   :  { %v4391_v52 = vpop.eup %4390  ;;  %4402 = vtanh.f32 %v3414_v11 }
0x119c   :  { %v3424_v32 = vadd.f32 1.0, %v4391_v52  ;;  %v3431_v13 = vmul.f32 0.5, %v3423_v38 }
0x119d   :  { %v4393_v59 = vpop.eup %4392 }
0x119e   :  { %v3432_v8 = vmul.f32 0.5, %v3424_v32  ;;  %v3425_v44 = vadd.f32 1.0, %v4393_v59  ;;  %v3439_v42 = vmul.f32 %v3431_v13, %v5657_v37 }
0x119f   :  { %v4395_v31 = vpop.eup %4394 }
0x11a0   :  { %v3440_v16 = vmul.f32 %v3432_v8, %v5662_v0  ;;  %v3426_v19 = vadd.f32 1.0, %v4395_v31  ;;  %v3433_v22 = vmul.f32 0.5, %v3425_v44 }
0x11a2   :  { %v4397_v25 = vpop.eup %4396  ;;  %3511 = vmatprep.mubr.f32.mxu0 %v3440_v16  ;;  %v3434_v33 = vmul.f32 0.5, %v3426_v19  ;;  %v3441_v36 = vmul.f32 %v3433_v22, %v5668_v57 }
0x11a3   :  { %3512 = vmatmul.mubr.f32.vlgmr.msra.gmra.mxu0 %v3439_v42  ;;  %v3427_v4 = vadd.f32 1.0, %v4397_v25 }
0x11a4   :  { %v4399_v24 = vpop.eup %4398  ;;  %v3442_v18 = vmul.f32 %v3434_v33, %v5674_v9 }
0x11a5   :  { %v3428_v12 = vadd.f32 1.0, %v4399_v24  ;;  %v3435_v30 = vmul.f32 0.5, %v3427_v4 }
0x11a6   :  { %v4401_v29 = vpop.eup %4400  ;;  %3516 = vmatprep.mubr.f32.mxu0 %v3442_v18 }
0x11a7   :  { %3517 = vmatmul.mubr.f32.gmra.mxu0 %v3441_v36  ;;  %v3436_v0 = vmul.f32 0.5, %v3428_v12  ;;  %v3429_v63 = vadd.f32 1.0, %v4401_v29  ;;  %v3443_v34 = vmul.f32 %v3435_v30, %v5681_v2 }
0x11a8   :  { %v4403_v45 = vpop.eup %4402 }
0x11a9   :  { %v3444_v37 = vmul.f32 %v3436_v0, %v5688_v27  ;;  %v3430_v21 = vadd.f32 1.0, %v4403_v45  ;;  %v3437_v54 = vmul.f32 0.5, %v3429_v63  ;;  %v4502_v27 = vld [vmem:[%s5736_s10] ss:$0 sm:$0xff]  ;;  %s4665_s10 = smov [#allocation13]  }
0x11aa   :  { %s3545_s19 = sshll.u32 %s4665_s10, 4  ;;  %s3546_s19 = int_to_ptr.vmem [resolvable:$true] %s3545_s19 }
0x11ab   :  { %3521 = vmatprep.mubr.f32.mxu0 %v3444_v37  ;;  %v3438_v55 = vmul.f32 0.5, %v3430_v21  ;;  %v3445_v57 = vmul.f32 %v3437_v54, %v5695_v35  ;;  %s4623_s20 = scalar_lea.vmem %s3546_s19, 512  ;;  %p4628_p3 = scmp.lt.s32.totalorder %s3546_s19, %s3546_s19 }
0x11ac   :  { %3522 = vmatmul.mubr.f32.gmra.mxu0 %v3443_v34  ;;  %p4624_p2 = scmp.ne.s32.totalorder %s3546_s19, %s4623_s20  ;;  %p4629_p4 = scmp.lt.s32.totalorder %s4623_s20, %s4623_s20 }
0x11ad   :  { %v3446_v9 = vmul.f32 %v3438_v55, %v3373_v51 }
0x11ae   :  { %p4630_p5 = por %p4629_p4, %p4628_p3 }
0x11af   :  { %3526 = vmatprep.mubr.f32.mxu0 %v3446_v9 }
0x11b0   :  { %3527 = vmatmul.mubr.f32.gmra.mxu0 %v3445_v57  ;;  %p4631_p6 = pnand %p4630_p5, %p4624_p2 }
0x1263   :  { %v3887_v40 = vpop.f32.mrf.mxu0 }
0x1265   :  { %v3888_v60 = vpop.f32.mrf.mxu0 }
0x1266   :  { %v3889_v39 = vadd.f32 %v3888_v60, %v3887_v40 }
0x1267   :  { %v3890_v43 = vpop.f32.mrf.mxu0 }
0x1268   :  { %v3514_v14 = vadd.f32 %v4502_v27, %v3889_v39 }
0x1269   :  { %v3891_v48 = vpop.f32.mrf.mxu0 }
0x126a   :  { %v3532_v2 = vadd.f32 %v3514_v14, %v5573_v10  ;;  %v3892_v20 = vadd.f32 %v3891_v48, %v3890_v43 }
0x126c   :  { %3536 = vst [vmem:[#allocation13] sm:$0xff] %v3532_v2  ;;  %v3519_v26 = vadd.f32 %v4502_v27, %v3892_v20  ;;  %v3893_v5 = vpop.f32.mrf.mxu0 }
0x126e   :  { %v3533_v35 = vadd.f32 %v3519_v26, %v5578_v15  ;;  %v3894_v51 = vpop.f32.mrf.mxu0 }
0x126f   :  { %v3895_v17 = vadd.f32 %v3894_v51, %v3893_v5 }
0x1270   :  { %3537 = vst [vmem:[#allocation13 + $0x8] sm:$0xff] %v3533_v35  ;;  %v3896_v56 = vpop.f32.mrf.mxu0 }
0x1271   :  { %v3524_v1 = vadd.f32 %v4502_v27, %v3895_v17 }
0x1272   :  { %v3897_v58 = vpop.f32.mrf.mxu0 }
0x1273   :  { %v3534_v62 = vadd.f32 %v3524_v1, %v5585_v28  ;;  %v3898_v41 = vadd.f32 %v3897_v58, %v3896_v56 }
0x1275   :  { %3538 = vst [vmem:[#allocation13 + $0x10] sm:$0xff] %v3534_v62  ;;  %v3529_v47 = vadd.f32 %v4502_v27, %v3898_v41 }
0x1277   :  { %v3535_v10 = vadd.f32 %v3529_v47, %v5592_v23 }
0x1279   :  { %3539 = vst [vmem:[#allocation13 + $0x18] sm:$0xff] %v3535_v10 }
0x127a   :  { %4634 = shalt.err (!%p4631_p6)
}
0x127b   :  { %3551 = dma.vmem_to_hbm [thread:$0]  %s3546_s19, 512, %s5737_s11, [#allocation4], %s4655_s22, %s4655_s22, %s4656_s23  }
0x127c   :  { %4651 = dma.done.wait [#allocation4], 512  }
0x127d   :  { %4652 = vsyncadd [#allocation4], 4294966784 }
0x127e   :  { %3555 = vsyncpa [#allocation3], 1 }
0x127f   :  { %3556 = vsyncpa [#allocation6], 1 }
0x1280   :  { %3557 = vsyncpa [#allocation9], 1 }
0x1281   :  { %3558 = vsyncpa [#allocation12], 1 }
0x1282   :  { %3559 = vsyncpa [#allocation4], 1 }

// kernel: tpu_custom_call.1
= control target key start
LH: loop header
LB: loop body
LE: loop exit
PB: predicated region body
PF: predicated region fallthrough
CT: control target
= control target key end

     0   :  { %16 = vsyncpa [#allocation3], 0  ;;  %s5726_s0 = inlined_call_operand.hbm [shape: f32[4,16,128], index: 0, kind: input, shape index: {}]   ;;  %s5727_s1 = inlined_call_operand.hbm [shape: f32[128,128], index: 1, kind: input, shape index: {}]   ;;  %s5728_s2 = inlined_call_operand.vmem [shape: f32[1,128], index: 2, kind: input, shape index: {}]   ;;  %s5729_s3 = inlined_call_operand.hbm [shape: f32[128,256], index: 3, kind: input, shape index: {}]   ;;  %s5730_s4 = inlined_call_operand.vmem [shape: f32[1,256], index: 4, kind: input, shape index: {}]   ;;  %s5731_s5 = inlined_call_operand.hbm [shape: f32[128,128], index: 5, kind: input, shape index: {}]   ;;  %s5732_s6 = inlined_call_operand.vmem [shape: f32[1,128], index: 6, kind: input, shape index: {}]   ;;  %s5733_s7 = inlined_call_operand.hbm [shape: f32[128,256], index: 7, kind: input, shape index: {}]   ;;  %s5734_s8 = inlined_call_operand.vmem [shape: f32[1,256], index: 8, kind: input, shape index: {}]   ;;  %s5735_s9 = inlined_call_operand.hbm [shape: f32[256,128], index: 9, kind: input, shape index: {}]   ;;  %s5736_s10 = inlined_call_operand.vmem [shape: f32[1,128], index: 10, kind: input, shape index: {}]   ;;  %s5737_s11 = inlined_call_operand.hbm [shape: f32[4,8,128], index: 11, kind: output, shape index: {}]  }
   0x1   :  { %17 = vsyncpa [#allocation6], 0 }
   0x2   :  { %18 = vsyncpa [#allocation9], 0 }
   0x3   :  { %19 = vsyncpa [#allocation12], 0 }
   0x4   :  { %20 = vsyncpa [#allocation4], 0  ;;  %s4653_s17 = smov [#allocation5]   ;;  %s4654_s19 = smov [#allocation8]  }
   0x5   :  { %s38_s18 = sshll.u32 %s4653_s17, 4  ;;  %s66_s20 = sshll.u32 %s4654_s19, 4  ;;  %s39_s18 = int_to_ptr.vmem [resolvable:$true] %s38_s18  ;;  %s67_s20 = int_to_ptr.vmem [resolvable:$true] %s66_s20 }
   0x6   :  { %s4511_s21 = scalar_lea.vmem %s39_s18, 2048  ;;  %p4516_p1 = scmp.lt.s32.totalorder %s39_s18, %s39_s18 }
   0x7   :  { %p4512_p0 = scmp.ne.s32.totalorder %s39_s18, %s4511_s21  ;;  %p4517_p2 = scmp.lt.s32.totalorder %s4511_s21, %s4511_s21 }
   0x9   :  { %p4518_p3 = por %p4517_p2, %p4516_p1 }
   0xb   :  { %p4519_p4 = pnand %p4518_p3, %p4512_p0 }
   0xd   :  { %4522 = shalt.err (!%p4519_p4)
}
   0xe   :  { %s4655_s22 = smov 128   ;;  %s4656_s23 = smov 8  }
   0xf   :  { %44 = dma.hbm_to_vmem [thread:$0]  %s5727_s1, 2048, %s39_s18, [#allocation6], %s4655_s22, %s4655_s22, %s4656_s23  }
  0x10   :  { %s4531_s26 = scalar_lea.vmem %s67_s20, 2048  ;;  %p4536_p6 = scmp.lt.s32.totalorder %s67_s20, %s67_s20 }
  0x11   :  { %p4532_p5 = scmp.ne.s32.totalorder %s67_s20, %s4531_s26  ;;  %p4537_p7 = scmp.lt.s32.totalorder %s4531_s26, %s4531_s26 }
  0x13   :  { %p4538_p8 = por %p4537_p7, %p4536_p6 }
  0x15   :  { %p4539_p9 = pnand %p4538_p8, %p4532_p5 }
  0x17   :  { %4542 = shalt.err (!%p4539_p9)
}
  0x18   :  { %72 = dma.hbm_to_vmem [thread:$0]  %s5731_s5, 2048, %s67_s20, [#allocation9], %s4655_s22, %s4655_s22, %s4656_s23  }
  0x19   :  { %s4657_s29 = smov [#allocation2]   ;;  %s4658_s12 = smov [#allocation7]  }
  0x1a   :  { %s26_s30 = sshll.u32 %s4657_s29, 4  ;;  %s52_s13 = sshll.u32 %s4658_s12, 4  ;;  %s27_s30 = int_to_ptr.vmem [resolvable:$true] %s26_s30  ;;  %s53_s13 = int_to_ptr.vmem [resolvable:$true] %s52_s13 }
  0x1b   :  { %s4551_s1 = scalar_lea.vmem %s27_s30, 1024  ;;  %p4556_p11 = scmp.lt.s32.totalorder %s27_s30, %s27_s30 }
  0x1c   :  { %p4552_p10 = scmp.ne.s32.totalorder %s27_s30, %s4551_s1  ;;  %p4557_p12 = scmp.lt.s32.totalorder %s4551_s1, %s4551_s1 }
  0x1e   :  { %p4558_p13 = por %p4557_p12, %p4556_p11 }
  0x20   :  { %p4559_p0 = pnand %p4558_p13, %p4552_p10 }
  0x22   :  { %4562 = shalt.err (!%p4559_p0)
}
  0x23   :  { %32 = dma.hbm_to_vmem [thread:$0]  %s5726_s0, 1024, %s27_s30, [#allocation3], %s4655_s22, %s4655_s22, %s4656_s23  }
  0x24   :  { %s4571_s5 = scalar_lea.vmem %s53_s13, 4096  ;;  %p4576_p2 = scmp.lt.s32.totalorder %s53_s13, %s53_s13 }
  0x25   :  { %p4572_p1 = scmp.ne.s32.totalorder %s53_s13, %s4571_s5  ;;  %p4577_p3 = scmp.lt.s32.totalorder %s4571_s5, %s4571_s5 }
  0x27   :  { %p4578_p4 = por %p4577_p3, %p4576_p2 }
  0x29   :  { %p4579_p5 = pnand %p4578_p4, %p4572_p1 }
  0x2b   :  { %4582 = shalt.err (!%p4579_p5)
}
  0x2c   :  { %s4659_s16 = smov 256   ;;  %s4660_s17 = smov 16  }
  0x2d   :  { %58 = dma.hbm_to_vmem [thread:$0]  %s5729_s3, 4096, %s53_s13, [#allocation6], %s4659_s16, %s4659_s16, %s4660_s17  }
  0x2e   :  { %s4661_s20 = smov [#allocation10]   ;;  %s4662_s24 = smov [#allocation11]  }
  0x2f   :  { %s80_s21 = sshll.u32 %s4661_s20, 4  ;;  %s94_s25 = sshll.u32 %s4662_s24, 4  ;;  %s81_s21 = int_to_ptr.vmem [resolvable:$true] %s80_s21  ;;  %s95_s25 = int_to_ptr.vmem [resolvable:$true] %s94_s25 }
  0x30   :  { %s4591_s0 = scalar_lea.vmem %s81_s21, 4096  ;;  %p4596_p7 = scmp.lt.s32.totalorder %s81_s21, %s81_s21 }
  0x31   :  { %p4592_p6 = scmp.ne.s32.totalorder %s81_s21, %s4591_s0  ;;  %p4597_p8 = scmp.lt.s32.totalorder %s4591_s0, %s4591_s0 }
  0x33   :  { %p4598_p9 = por %p4597_p8, %p4596_p7 }
  0x35   :  { %p4599_p10 = pnand %p4598_p9, %p4592_p6 }
  0x37   :  { %4602 = shalt.err (!%p4599_p10)
}
  0x38   :  { %86 = dma.hbm_to_vmem [thread:$0]  %s5733_s7, 4096, %s81_s21, [#allocation9], %s4659_s16, %s4659_s16, %s4660_s17  }
  0x39   :  { %s4611_s28 = scalar_lea.vmem %s95_s25, 4096  ;;  %p4616_p12 = scmp.lt.s32.totalorder %s95_s25, %s95_s25 }
  0x3a   :  { %p4612_p11 = scmp.ne.s32.totalorder %s95_s25, %s4611_s28  ;;  %p4617_p13 = scmp.lt.s32.totalorder %s4611_s28, %s4611_s28 }
  0x3c   :  { %p4618_p0 = por %p4617_p13, %p4616_p12 }
  0x3e   :  { %p4619_p1 = pnand %p4618_p0, %p4612_p11 }
  0x40   :  { %4622 = shalt.err (!%p4619_p1)
}
  0x41   :  { %100 = dma.hbm_to_vmem [thread:$0]  %s5735_s9, 4096, %s95_s25, [#allocation12], %s4655_s22, %s4655_s22, %s4656_s23  }
  0x42   :  { %4643 = dma.done.wait [#allocation3], 1024  }
  0x43   :  { %4644 = vsyncadd [#allocation3], 4294966272 }
  0x44   :  { %4645 = dma.done.wait [#allocation6], 6144  }
  0x45   :  { %4646 = vsyncadd [#allocation6], 4294961152 }
  0x46   :  { %4647 = dma.done.wait [#allocation9], 6144  }
  0x47   :  { %4648 = vsyncadd [#allocation9], 4294961152 }
  0x48   :  { %4649 = dma.done.wait [#allocation12], 4096  }
  0x49   :  { %4650 = vsyncadd [#allocation12], 4294963200  ;;  %v5740_v0 = vmov 0.0   ;;  %v168_v1 = vld [vmem:[#allocation7 + $0xf8] sm:$0xff]  ;;  %v167_v2 = vld [vmem:[#allocation7 + $0xf0] sm:$0xff]  ;;  %vm4664_vm0 = vmmov 0   ;;  %v263_v57 = vlaneseq }
  0x4a   :  { %337 = vmatprep.mubr.f32.mxu0 %v5740_v0  ;;  %3931 = vmatprep.mubr.f32.mxu1 %v5740_v0  ;;  %v166_v3 = vld [vmem:[#allocation7 + $0xe8] sm:$0xff]  ;;  %v165_v4 = vld [vmem:[#allocation7 + $0xe0] sm:$0xff]  ;;  %v164_v5 = vld [vmem:[#allocation7 + $0xd8] sm:$0xff]  ;;  %vm761_vm1 = vcmask 130048  }
  0x4b   :  { %273 = vmatprep.subr.mxu0 %v168_v1  ;;  %v163_v6 = vld [vmem:[#allocation7 + $0xd0] sm:$0xff]  ;;  %v4758_v7 = vld [vmem:[#allocation5 + $0x78] sm:$0xff]  ;;  %v162_v8 = vld [vmem:[#allocation7 + $0xc8] sm:$0xff]  ;;  %v4838_v58 = vshrl.u32 %v263_v57, 7 }
  0x4c   :  { %274 = vmatpush1.msra.mxu0 %v167_v2  ;;  %3899 = vmatprep.subr.mxu1 %v4758_v7  ;;  %v4761_v9 = vld [vmem:[#allocation5 + $0x70] sm:$0xff]  ;;  %v161_v10 = vld [vmem:[#allocation7 + $0xc0] sm:$0xff]  ;;  %v4764_v11 = vld [vmem:[#allocation5 + $0x68] sm:$0xff] }
  0x4d   :  { %275 = vmatprep.subr.mxu0 %v166_v3  ;;  %3900 = vmatpush3.msra.mxu1 %v4758_v7  ;;  %v160_v12 = vld [vmem:[#allocation7 + $0xb8] sm:$0xff]  ;;  %v159_v13 = vld [vmem:[#allocation7 + $0xb0] sm:$0xff]  ;;  %v4768_v14 = vld [vmem:[#allocation5 + $0x60] sm:$0xff]  ;;  %v5739_v59 = vsub.s32 0, %v4838_v58  ;;  %v5738_v3 = vsub.s32 1, %v4838_v58 }
  0x4e   :  { %276 = vmatpush1.msra.mxu0 %v165_v4  ;;  %3901 = vmatprep.subr.mxu1 %v4761_v9  ;;  %v158_v15 = vld [vmem:[#allocation7 + $0xa8] sm:$0xff]  ;;  %v157_v16 = vld [vmem:[#allocation7 + $0xa0] sm:$0xff]  ;;  %v4772_v17 = vld [vmem:[#allocation5 + $0x58] sm:$0xff] }
  0x4f   :  { %277 = vmatprep.subr.mxu0 %v164_v5  ;;  %3902 = vmatpush3.msra.mxu1 %v4761_v9  ;;  %v156_v18 = vld [vmem:[#allocation7 + $0x98] sm:$0xff]  ;;  %v155_v19 = vld [vmem:[#allocation7 + $0x90] sm:$0xff]  ;;  %v154_v21 = vld [vmem:[#allocation7 + $0x88] sm:$0xff] }
  0x50   :  { %278 = vmatpush1.msra.mxu0 %v163_v6  ;;  %3903 = vmatprep.subr.mxu1 %v4764_v11  ;;  %v4776_v20 = vld [vmem:[#allocation5 + $0x50] sm:$0xff]  ;;  %v153_v22 = vld [vmem:[#allocation7 + $0x80] sm:$0xff]  ;;  %v4780_v23 = vld [vmem:[#allocation5 + $0x48] sm:$0xff] }
  0x51   :  { %279 = vmatprep.subr.mxu0 %v162_v8  ;;  %3904 = vmatpush3.msra.mxu1 %v4764_v11  ;;  %v152_v24 = vld [vmem:[#allocation7 + $0x78] sm:$0xff]  ;;  %v151_v25 = vld [vmem:[#allocation7 + $0x70] sm:$0xff]  ;;  %v4784_v26 = vld [vmem:[#allocation5 + $0x40] sm:$0xff] }
  0x52   :  { %280 = vmatpush1.msra.mxu0 %v161_v10  ;;  %3905 = vmatprep.subr.mxu1 %v4768_v14  ;;  %v150_v27 = vld [vmem:[#allocation7 + $0x68] sm:$0xff]  ;;  %v149_v28 = vld [vmem:[#allocation7 + $0x60] sm:$0xff]  ;;  %v4788_v29 = vld [vmem:[#allocation5 + $0x38] sm:$0xff] }
  0x53   :  { %281 = vmatprep.subr.mxu0 %v160_v12  ;;  %3906 = vmatpush3.msra.mxu1 %v4768_v14  ;;  %v148_v30 = vld [vmem:[#allocation7 + $0x58] sm:$0xff]  ;;  %v147_v31 = vld [vmem:[#allocation7 + $0x50] sm:$0xff]  ;;  %v146_v33 = vld [vmem:[#allocation7 + $0x48] sm:$0xff] }
  0x54   :  { %282 = vmatpush1.msra.mxu0 %v159_v13  ;;  %3907 = vmatprep.subr.mxu1 %v4772_v17  ;;  %v4792_v32 = vld [vmem:[#allocation5 + $0x30] sm:$0xff]  ;;  %v145_v34 = vld [vmem:[#allocation7 + $0x40] sm:$0xff]  ;;  %v4796_v35 = vld [vmem:[#allocation5 + $0x28] sm:$0xff] }
  0x55   :  { %283 = vmatprep.subr.mxu0 %v158_v15  ;;  %3908 = vmatpush3.msra.mxu1 %v4772_v17  ;;  %v144_v36 = vld [vmem:[#allocation7 + $0x38] sm:$0xff]  ;;  %v143_v37 = vld [vmem:[#allocation7 + $0x30] sm:$0xff]  ;;  %v4800_v38 = vld [vmem:[#allocation5 + $0x20] sm:$0xff] }
  0x56   :  { %284 = vmatpush1.msra.mxu0 %v157_v16  ;;  %3909 = vmatprep.subr.mxu1 %v4776_v20  ;;  %v142_v39 = vld [vmem:[#allocation7 + $0x28] sm:$0xff]  ;;  %v141_v40 = vld [vmem:[#allocation7 + $0x20] sm:$0xff]  ;;  %v4804_v41 = vld [vmem:[#allocation5 + $0x18] sm:$0xff] }
  0x57   :  { %285 = vmatprep.subr.mxu0 %v156_v18  ;;  %3910 = vmatpush3.msra.mxu1 %v4776_v20  ;;  %v140_v42 = vld [vmem:[#allocation7 + $0x18] sm:$0xff]  ;;  %v139_v43 = vld [vmem:[#allocation7 + $0x10] sm:$0xff]  ;;  %v138_v45 = vld [vmem:[#allocation7 + $0x8] sm:$0xff] }
  0x58   :  { %286 = vmatpush1.msra.mxu0 %v155_v19  ;;  %3911 = vmatprep.subr.mxu1 %v4780_v23  ;;  %v4808_v44 = vld [vmem:[#allocation5 + $0x10] sm:$0xff]  ;;  %v137_v46 = vld [vmem:[#allocation7] sm:$0xff]  ;;  %v4812_v47 = vld [vmem:[#allocation5 + $0x8] sm:$0xff] }
  0x59   :  { %287 = vmatprep.subr.mxu0 %v154_v21  ;;  %3912 = vmatpush3.msra.mxu1 %v4780_v23  ;;  %v254_v48 = vld [vmem:[#allocation2] sm:$0xff]  ;;  %v255_v50 = vld [vmem:[#allocation2 + $0x8] sm:$0xff]  ;;  %v256_v51 = vld [vmem:[#allocation2 + $0x10] sm:$0xff] }
  0x5a   :  { %288 = vmatpush1.msra.mxu0 %v153_v22  ;;  %3913 = vmatprep.subr.mxu1 %v4784_v26  ;;  %v4816_v49 = vld [vmem:[#allocation5] sm:$0xff]  ;;  %v257_v52 = vld [vmem:[#allocation2 + $0x18] sm:$0xff]  ;;  %v259_v54 = vld [vmem:[#allocation2 + $0x28] sm:$0xff] }
  0x5b   :  { %289 = vmatprep.subr.mxu0 %v152_v24  ;;  %3914 = vmatpush3.msra.mxu1 %v4784_v26  ;;  %v258_v53 = vld [vmem:[#allocation2 + $0x20] sm:$0xff]  ;;  %v260_v55 = vld [vmem:[#allocation2 + $0x30] sm:$0xff]  ;;  %v261_v56 = vld [vmem:[#allocation2 + $0x38] sm:$0xff] }
  0x5c   :  { %290 = vmatpush1.msra.mxu0 %v151_v25  ;;  %3915 = vmatprep.subr.mxu1 %v4788_v29  ;;  %v250_v60 = vld [vmem:[%s5730_s4] sm:$0x3] }
  0x5d   :  { %291 = vmatprep.subr.mxu0 %v150_v27  ;;  %3916 = vmatpush3.msra.mxu1 %v4788_v29  ;;  %v266_v63 = vrot.slane %v250_v60, %v5739_v59  ;;  %v3560_v6 = vld [vmem:[%s5728_s2] ss:$0 sm:$0xff]  ;;  %v4858_v13 = vrot.slane %v250_v60, %v5738_v3  ;;  %v5047_v3 = vld [vmem:[#allocation10 + $0x98] sm:$0xff]  ;;  %v5050_v59 = vld [vmem:[#allocation10 + $0x90] sm:$0xff] }
  0x5e   :  { %292 = vmatpush1.msra.mxu0 %v149_v28  ;;  %3917 = vmatprep.subr.mxu1 %v4792_v32  ;;  %5833 = vst [vmem:[#allocation30_spill] sm:$0xff] %v5047_v3  ;;  %5834 = vst [vmem:[#allocation31_spill] sm:$0xff] %v5050_v59 }
  0x5f   :  { %293 = vmatprep.subr.mxu0 %v148_v30  ;;  %3918 = vmatpush3.msra.mxu1 %v4792_v32 }
  0x60   :  { %294 = vmatpush1.msra.mxu0 %v147_v31  ;;  %3919 = vmatprep.subr.mxu1 %v4796_v35 }
  0x61   :  { %295 = vmatprep.subr.mxu0 %v146_v33  ;;  %3920 = vmatpush3.msra.mxu1 %v4796_v35 }
  0x62   :  { %296 = vmatpush1.msra.mxu0 %v145_v34  ;;  %3921 = vmatprep.subr.mxu1 %v4800_v38 }
  0x63   :  { %297 = vmatprep.subr.mxu0 %v144_v36  ;;  %3922 = vmatpush3.msra.mxu1 %v4800_v38 }
  0x64   :  { %298 = vmatpush1.msra.mxu0 %v143_v37  ;;  %3923 = vmatprep.subr.mxu1 %v4804_v41 }
  0x65   :  { %299 = vmatprep.subr.mxu0 %v142_v39  ;;  %3924 = vmatpush3.msra.mxu1 %v4804_v41 }
  0x66   :  { %300 = vmatpush1.msra.mxu0 %v141_v40  ;;  %3925 = vmatprep.subr.mxu1 %v4808_v44 }
  0x67   :  { %301 = vmatprep.subr.mxu0 %v140_v42  ;;  %3926 = vmatpush3.msra.mxu1 %v4808_v44 }
  0x68   :  { %302 = vmatpush1.msra.mxu0 %v139_v43  ;;  %3927 = vmatprep.subr.mxu1 %v4812_v47 }
  0x69   :  { %303 = vmatprep.subr.mxu0 %v138_v45  ;;  %3928 = vmatpush3.msra.mxu1 %v4812_v47 }
  0x6a   :  { %304 = vmatpush1.msra.mxu0 %v137_v46  ;;  %3929 = vmatprep.subr.mxu1 %v4816_v49 }
  0x6b   :  { %338 = vmatmul.mubr.f32.vlgmr.msra.gmra.mxu0 %v254_v48  ;;  %3930 = vmatpush3.msra.mxu1 %v4816_v49 }
  0x6c   :  { %343 = vmatprep.mubr.f32.mxu0 %v5740_v0  ;;  %3958 = vmatprep.subr.mxu0 %v5740_v0 }
  0x6d   :  { %3932 = vmatmul.mubr.f32.vlgmr.msra.gmra.mxu1 %v5740_v0  ;;  %3937 = vmatprep.subr.mxu1 %v5740_v0 }
  0x6e   :  { %3934 = vmatprep.mubr.f32.mxu1 %v5740_v0 }
  0x6f   :  { %344 = vmatmul.mubr.f32.gmra.mxu0 %v255_v50 }
  0x70   :  { %349 = vmatprep.mubr.f32.mxu0 %v5740_v0 }
  0x71   :  { %3935 = vmatmul.mubr.f32.gmra.mxu1 %v5740_v0 }
  0x72   :  { %3941 = vmatprep.mubr.msk.f32.mxu1 %vm4664_vm0, %v5740_v0 }
  0x73   :  { %350 = vmatmul.mubr.f32.gmra.mxu0 %v256_v51 }
  0x74   :  { %355 = vmatprep.mubr.f32.mxu0 %v5740_v0 }
  0x77   :  { %356 = vmatmul.mubr.f32.gmra.mxu0 %v257_v52 }
  0x78   :  { %361 = vmatprep.mubr.f32.mxu0 %v5740_v0 }
  0x7b   :  { %362 = vmatmul.mubr.f32.gmra.mxu0 %v258_v53 }
  0x7c   :  { %367 = vmatprep.mubr.f32.mxu0 %v5740_v0 }
  0x7f   :  { %368 = vmatmul.mubr.f32.gmra.mxu0 %v259_v54 }
  0x80   :  { %373 = vmatprep.mubr.f32.mxu0 %v5740_v0 }
  0x83   :  { %374 = vmatmul.mubr.f32.gmra.mxu0 %v260_v55 }
  0x84   :  { %379 = vmatprep.mubr.f32.mxu0 %v5740_v0 }
  0x87   :  { %380 = vmatmul.mubr.f32.gmra.mxu0 %v261_v56 }
  0x88   :  { %3962 = vmatprep.mubr.msk.f32.mxu0 %vm4664_vm0, %v5740_v0 }
 0x12b   :  { %v339_v61 = vpop.f32.mrf.mxu0 }
 0x12c   :  { %v4854_v12 = vadd.f32 %v339_v61, %v266_v63 }
 0x12d   :  { %v341_v62 = vpop.f32.mrf.mxu0  ;;  %v3933_v1 = vpop.f32.mrf.mxu1 }
 0x12e   :  { %v464_v31 = vadd.f32 %v3933_v1, %v3560_v6  ;;  %v4897_v51 = vadd.f32 %v341_v62, %v4858_v13 }
 0x12f   :  { %v345_v2 = vpop.f32.mrf.mxu0  ;;  %v458_v8 = vpop.f32.mrf.mxu1 }
 0x130   :  { %v4847_v4 = vadd.f32 %v345_v2, %v266_v63  ;;  %v459_v16 = vadd.f32 %v3560_v6, %v458_v8 }
 0x131   :  { %v347_v5 = vpop.f32.mrf.mxu0  ;;  %v3936_v30 = vpop.f32.mrf.mxu1 }
 0x132   :  { %3938 = vmatpush3.xpose.msra.mxu1 %v4847_v4  ;;  %v4892_v48 = vadd.f32 %v347_v5, %v4858_v13  ;;  %v474_v53 = vadd.f32 %v3936_v30, %v3560_v6 }
 0x133   :  { %v351_v10 = vpop.f32.mrf.mxu0  ;;  %3939 = vmatprep.subr.mxu1 %v5740_v0  ;;  %v468_v37 = vpop.f32.mrf.mxu1 }
 0x134   :  { %v4874_v27 = vadd.f32 %v351_v10, %v266_v63  ;;  %v469_v43 = vadd.f32 %v3560_v6, %v468_v37 }
 0x135   :  { %v353_v15 = vpop.f32.mrf.mxu0 }
 0x136   :  { %v4861_v18 = vadd.f32 %v353_v15, %v4858_v13  ;;  %3940 = vmatpush3.xpose.msra.mxu1 %v4854_v12 }
 0x137   :  { %v357_v19 = vpop.f32.mrf.mxu0  ;;  %3944 = vmatprep.subr.mxu1 %v5740_v0 }
 0x138   :  { %v4865_v21 = vadd.f32 %v357_v19, %v266_v63 }
 0x139   :  { %v359_v22 = vpop.f32.mrf.mxu0  ;;  %3942 = vmatmul.mubr.f32.vlgmr.msra.gmra.mxu1 %v459_v16 }
 0x13a   :  { %v4868_v24 = vadd.f32 %v359_v22, %v4858_v13  ;;  %3945 = vmatpush3.xpose.msra.mxu1 %v4865_v21  ;;  %3948 = vmatprep.mubr.msk.f32.mxu1 %vm4664_vm0, %v5740_v0 }
 0x13b   :  { %v363_v25 = vpop.f32.mrf.mxu0  ;;  %3946 = vmatprep.subr.mxu1 %v5740_v0 }
 0x13c   :  { %v4884_v40 = vadd.f32 %v363_v25, %v266_v63 }
 0x13d   :  { %v365_v28 = vpop.f32.mrf.mxu0 }
 0x13e   :  { %3947 = vmatpush3.xpose.msra.mxu1 %v4874_v27  ;;  %v4915_v55 = vadd.f32 %v365_v28, %v4858_v13 }
 0x13f   :  { %v369_v33 = vpop.f32.mrf.mxu0  ;;  %3951 = vmatprep.subr.mxu1 %v5740_v0 }
 0x140   :  { %v4878_v34 = vadd.f32 %v369_v33, %v266_v63 }
 0x141   :  { %v371_v36 = vpop.f32.mrf.mxu0  ;;  %3949 = vmatmul.mubr.f32.vlgmr.msra.gmra.mxu1 %v464_v31 }
 0x142   :  { %3952 = vmatpush3.xpose.msra.mxu1 %v4878_v34  ;;  %3955 = vmatprep.mubr.msk.f32.mxu1 %vm4664_vm0, %v5740_v0  ;;  %v4912_v54 = vadd.f32 %v371_v36, %v4858_v13 }
 0x143   :  { %v375_v39 = vpop.f32.mrf.mxu0  ;;  %3953 = vmatprep.subr.mxu1 %v5740_v0 }
 0x144   :  { %v4903_v52 = vadd.f32 %v375_v39, %v266_v63 }
 0x145   :  { %v377_v42 = vpop.f32.mrf.mxu0 }
 0x146   :  { %v4887_v45 = vadd.f32 %v377_v42, %v4858_v13  ;;  %3954 = vmatpush3.xpose.msra.mxu1 %v4884_v40 }
 0x147   :  { %v381_v46 = vpop.f32.mrf.mxu0  ;;  %3965 = vmatprep.subr.mxu1 %v5740_v0 }
 0x148   :  { %v4894_v50 = vadd.f32 %v381_v46, %v266_v63 }
 0x149   :  { %3956 = vmatmul.mubr.f32.vlgmr.msra.gmra.mxu1 %v469_v43  ;;  %v383_v15 = vpop.f32.mrf.mxu0 }
 0x14a   :  { %3959 = vmatpush3.xpose.msra.mxu0 %v4894_v50  ;;  %3966 = vmatpush3.msra.mxu1 %v4892_v48 }
 0x14b   :  { %3967 = vmatprep.subr.mxu1 %v5740_v0  ;;  %3960 = vmatprep.subr.mxu0 %v5740_v0 }
 0x14c   :  { %3968 = vmatpush3.msra.mxu1 %v4897_v51  ;;  %3969 = vmatprep.mubr.msk.f32.mxu1 %vm4664_vm0, %v5740_v0 }
 0x14d   :  { %3972 = vmatprep.subr.mxu1 %v5740_v0 }
 0x14e   :  { %3961 = vmatpush3.xpose.msra.mxu0 %v4903_v52 }
 0x14f   :  { %3979 = vmatprep.subr.mxu0 %v5740_v0 }
 0x151   :  { %3963 = vmatmul.mubr.f32.vlgmr.msra.gmra.mxu0 %v474_v53 }
 0x152   :  { %3980 = vmatpush3.msra.mxu0 %v4912_v54  ;;  %3983 = vmatprep.mubr.msk.f32.mxu0 %vm4664_vm0, %v5740_v0 }
 0x153   :  { %3981 = vmatprep.subr.mxu0 %v5740_v0 }
 0x154   :  { %3982 = vmatpush3.msra.mxu0 %v4915_v55 }
 0x1f9   :  { %v543_v56 = vpop.f32.mrf.mxu1 }
 0x1fa   :  { %v757_v57 = vmul.f32 0.088388346, %v543_v56 }
 0x1fb   :  { %v3943_v60 = vpop.f32.mrf.mxu1 }
 0x1fc   :  { %v762_v61 = vsel %vm761_vm1, %v757_v57, -inf }
 0x1fd   :  { %763 = vmax.xlane.f32.xlu0 %v762_v61 }
 0x201   :  { %v613_v62 = vpop.f32.mrf.mxu1 }
 0x202   :  { %v758_v63 = vmul.f32 0.088388346, %v613_v62 }
 0x203   :  { %v3950_v1 = vpop.f32.mrf.mxu1 }
 0x204   :  { %v765_v2 = vsel %vm761_vm1, %v758_v63, -inf }
 0x205   :  { %766 = vmax.xlane.f32.xlu0 %v765_v2 }
 0x209   :  { %v683_v5 = vpop.f32.mrf.mxu1 }
 0x20a   :  { %v759_v6 = vmul.f32 0.088388346, %v683_v5 }
 0x20b   :  { %v3957_v8 = vpop.f32.mrf.mxu1 }
 0x20c   :  { %v768_v10 = vsel %vm761_vm1, %v759_v6, -inf }
 0x20d   :  { %769 = vmax.xlane.f32.xlu1 %v768_v10 }
 0x211   :  { %v753_v16 = vpop.f32.mrf.mxu0 }
 0x212   :  { %v760_v19 = vmul.f32 0.088388346, %v753_v16 }
 0x213   :  { %v3964_v22 = vpop.f32.mrf.mxu0 }
 0x214   :  { %v771_v25 = vsel %vm761_vm1, %v760_v19, -inf }
 0x215   :  { %772 = vmax.xlane.f32.xlu1 %v771_v25 }
 0x286   :  { %v764_v28 = vpop.xlane.xlu0 %763 }
 0x287   :  { %v774_v30 = vsub.f32 %v757_v57, %v764_v28 }
 0x289   :  { %v778_v31 = vmul.f32 1.442695, %v774_v30  ;;  %v4941_v30 = vadd.f32 %v383_v15, %v4858_v13  ;;  %v4953_v13 = vld [vmem:[#allocation8 + $0x68] sm:$0xff]  ;;  %v4957_v15 = vld [vmem:[#allocation8 + $0x60] sm:$0xff] }
 0x28b   :  { %4308 = vpow2.f32 %v778_v31 }
 0x28e   :  { %v767_v33 = vpop.xlane.xlu0 %766 }
 0x28f   :  { %v775_v36 = vsub.f32 %v758_v63, %v767_v33 }
 0x291   :  { %v780_v37 = vmul.f32 1.442695, %v775_v36 }
 0x293   :  { %4310 = vpow2.f32 %v780_v37  ;;  %v4949_v37 = vld [vmem:[#allocation8 + $0x70] sm:$0xff] }
 0x296   :  { %v770_v39 = vpop.xlane.xlu1 %769 }
 0x297   :  { %v776_v42 = vsub.f32 %v759_v6, %v770_v39  ;;  %v4930_v6 = vld [vmem:[#allocation8 + $0x78] sm:$0xff] }
 0x298   :  { %v4309_v43 = vpop.eup %4308  ;;  %3993 = vmatprep.subr.mxu0 %v4930_v6 }
 0x299   :  { %v782_v46 = vmul.f32 1.442695, %v776_v42  ;;  %v786_v53 = vsel %vm761_vm1, %v4309_v43, 0.0  ;;  %v4961_v42 = vld [vmem:[#allocation8 + $0x58] sm:$0xff] }
 0x29a   :  { %787 = vadd.xlane.f32.xlu0 %v786_v53  ;;  %v4970_v53 = vld [vmem:[#allocation8 + $0x48] sm:$0xff] }
 0x29b   :  { %4312 = vpow2.f32 %v782_v46  ;;  %v4965_v46 = vld [vmem:[#allocation8 + $0x50] sm:$0xff]  ;;  %5823 = vst [vmem:[#allocation20_spill] sm:$0xff] %v4970_v53 }
 0x29c   :  { %5822 = vst [vmem:[#allocation19_spill] sm:$0xff] %v4965_v46 }
 0x29e   :  { %v773_v56 = vpop.xlane.xlu1 %772 }
 0x29f   :  { %v777_v60 = vsub.f32 %v760_v19, %v773_v56  ;;  %v4975_v56 = vld [vmem:[#allocation8 + $0x40] sm:$0xff] }
 0x2a0   :  { %v4311_v61 = vpop.eup %4310  ;;  %5824 = vst [vmem:[#allocation21_spill] sm:$0xff] %v4975_v56 }
 0x2a1   :  { %v784_v62 = vmul.f32 1.442695, %v777_v60  ;;  %v789_v57 = vsel %vm761_vm1, %v4311_v61, 0.0  ;;  %v4979_v60 = vld [vmem:[#allocation8 + $0x38] sm:$0xff] }
 0x2a2   :  { %790 = vadd.xlane.f32.xlu1 %v789_v57  ;;  %5825 = vst [vmem:[#allocation22_spill] sm:$0xff] %v4979_v60  ;;  %v4991_v57 = vld [vmem:[#allocation8 + $0x20] sm:$0xff] }
 0x2a3   :  { %4314 = vpow2.f32 %v784_v62  ;;  %v4987_v62 = vld [vmem:[#allocation8 + $0x28] sm:$0xff]  ;;  %5828 = vst [vmem:[#allocation25_spill] sm:$0xff] %v4991_v57 }
 0x2a4   :  { %5827 = vst [vmem:[#allocation24_spill] sm:$0xff] %v4987_v62 }
 0x2a8   :  { %v4313_v1 = vpop.eup %4312 }
 0x2a9   :  { %v792_v63 = vsel %vm761_vm1, %v4313_v1, 0.0 }
 0x2aa   :  { %793 = vadd.xlane.f32.xlu0 %v792_v63  ;;  %v5001_v63 = vld [vmem:[#allocation8 + $0x10] sm:$0xff] }
 0x2ab   :  { %5830 = vst [vmem:[#allocation27_spill] sm:$0xff] %v5001_v63 }
 0x2b0   :  { %v4315_v2 = vpop.eup %4314 }
 0x2b1   :  { %v795_v5 = vsel %vm761_vm1, %v4315_v2, 0.0 }
 0x2b2   :  { %796 = vadd.xlane.f32.xlu1 %v795_v5  ;;  %v5007_v5 = vld [vmem:[#allocation8] sm:$0xff] }
 0x2b3   :  { %5832 = vst [vmem:[#allocation29_spill] sm:$0xff] %v5007_v5 }
 0x323   :  { %v788_v8 = vpop.xlane.xlu0 %787 }
 0x324   :  { %4316 = vrcp.f32 %v788_v8  ;;  %v5013_v8 = vld [vmem:[#allocation10 + $0xf8] sm:$0xff] }
 0x32b   :  { %v791_v10 = vpop.xlane.xlu1 %790 }
 0x32c   :  { %4318 = vrcp.f32 %v791_v10  ;;  %v5015_v10 = vld [vmem:[#allocation10 + $0xf0] sm:$0xff] }
 0x331   :  { %v4317_v16 = vpop.eup %4316 }
 0x332   :  { %v802_v19 = vmul.f32 %v4317_v16, %v4309_v43  ;;  %v5017_v16 = vld [vmem:[#allocation10 + $0xe8] sm:$0xff] }
 0x333   :  { %v794_v22 = vpop.xlane.xlu0 %793 }
 0x334   :  { %4320 = vrcp.f32 %v794_v22  ;;  %3970 = vmatmul.mubr.msk.f32.vlgmr.msra.gmra.mxu1 %vm761_vm1, %v802_v19  ;;  %v5020_v19 = vld [vmem:[#allocation10 + $0xe0] sm:$0xff]  ;;  %v5023_v22 = vld [vmem:[#allocation10 + $0xd8] sm:$0xff] }
 0x335   :  { %3973 = vmatpush3.msra.mxu1 %v4868_v24  ;;  %3976 = vmatprep.mubr.msk.f32.mxu1 %vm4664_vm0, %v5740_v0 }
 0x336   :  { %3974 = vmatprep.subr.mxu1 %v5740_v0 }
 0x337   :  { %3975 = vmatpush3.msra.mxu1 %v4861_v18 }
 0x338   :  { %3986 = vmatprep.subr.mxu1 %v5740_v0 }
 0x339   :  { %v4319_v25 = vpop.eup %4318 }
 0x33a   :  { %v803_v28 = vmul.f32 %v4319_v25, %v4311_v61  ;;  %v4983_v61 = vld [vmem:[#allocation8 + $0x30] sm:$0xff] }
 0x33b   :  { %v797_v31 = vpop.xlane.xlu1 %796  ;;  %5826 = vst [vmem:[#allocation23_spill] sm:$0xff] %v4983_v61  ;;  %v5026_v25 = vld [vmem:[#allocation10 + $0xd0] sm:$0xff] }
 0x33c   :  { %4322 = vrcp.f32 %v797_v31  ;;  %3977 = vmatmul.mubr.msk.f32.vlgmr.msra.gmra.mxu1 %vm761_vm1, %v803_v28  ;;  %v5029_v28 = vld [vmem:[#allocation10 + $0xc8] sm:$0xff]  ;;  %v5032_v31 = vld [vmem:[#allocation10 + $0xc0] sm:$0xff] }
 0x33d   :  { %3987 = vmatpush3.msra.mxu1 %v4941_v30  ;;  %3990 = vmatprep.mubr.msk.f32.mxu1 %vm4664_vm0, %v5740_v0 }
 0x33e   :  { %3988 = vmatprep.subr.mxu1 %v5740_v0 }
 0x33f   :  { %3989 = vmatpush3.msra.mxu1 %v4887_v45 }
 0x340   :  { %1200 = vmatprep.subr.mxu1 %v5013_v8 }
 0x341   :  { %v4321_v33 = vpop.eup %4320 }
 0x342   :  { %v804_v36 = vmul.f32 %v4321_v33, %v4313_v1  ;;  %v4997_v1 = vld [vmem:[#allocation8 + $0x18] sm:$0xff] }
 0x343   :  { %5829 = vst [vmem:[#allocation26_spill] sm:$0xff] %v4997_v1  ;;  %v5035_v33 = vld [vmem:[#allocation10 + $0xb8] sm:$0xff] }
 0x344   :  { %3984 = vmatmul.mubr.msk.f32.vlgmr.msra.gmra.mxu0 %vm761_vm1, %v804_v36  ;;  %v5038_v36 = vld [vmem:[#allocation10 + $0xb0] sm:$0xff] }
 0x345   :  { %3994 = vmatpush3.msra.mxu0 %v4930_v6 }
 0x346   :  { %3995 = vmatprep.subr.mxu0 %v4949_v37 }
 0x347   :  { %3996 = vmatpush3.msra.mxu0 %v4949_v37 }
 0x348   :  { %3997 = vmatprep.subr.mxu0 %v4953_v13 }
 0x349   :  { %v4323_v39 = vpop.eup %4322  ;;  %3998 = vmatpush3.msra.mxu0 %v4953_v13 }
 0x34a   :  { %v805_v43 = vmul.f32 %v4323_v39, %v4315_v2  ;;  %3999 = vmatprep.subr.mxu0 %v4957_v15  ;;  %v5003_v2 = vld [vmem:[#allocation8 + $0x8] sm:$0xff] }
 0x34b   :  { %4000 = vmatpush3.msra.mxu0 %v4957_v15  ;;  %5831 = vst [vmem:[#allocation28_spill] sm:$0xff] %v5003_v2  ;;  %v5041_v39 = vld [vmem:[#allocation10 + $0xa8] sm:$0xff] }
 0x34c   :  { %3991 = vmatmul.mubr.msk.f32.vlgmr.msra.gmra.mxu1 %vm761_vm1, %v805_v43  ;;  %4001 = vmatprep.subr.mxu0 %v4961_v42  ;;  %v5044_v43 = vld [vmem:[#allocation10 + $0xa0] sm:$0xff] }
 0x34d   :  { %4002 = vmatpush3.msra.mxu0 %v4961_v42  ;;  %1264 = vmatprep.mubr.f32.mxu1 %v5740_v0  ;;  %v5053_v0 = vld [vmem:[#allocation10 + $0x88] sm:$0xff] }
 0x34e   :  { %4003 = vmatprep.subr.mxu0 %v4965_v46  ;;  %1201 = vmatpush1.msra.mxu1 %v5015_v10  ;;  %5835 = vst [vmem:[#allocation32_spill] sm:$0xff] %v5053_v0 }
 0x34f   :  { %4004 = vmatpush3.msra.mxu0 %v4965_v46  ;;  %1202 = vmatprep.subr.mxu1 %v5017_v16 }
 0x350   :  { %4005 = vmatprep.subr.mxu0 %v4970_v53  ;;  %1203 = vmatpush1.msra.mxu1 %v5020_v19 }
 0x351   :  { %4006 = vmatpush3.msra.mxu0 %v4970_v53  ;;  %1204 = vmatprep.subr.mxu1 %v5023_v22 }
 0x352   :  { %4007 = vmatprep.subr.mxu0 %v4975_v56  ;;  %1205 = vmatpush1.msra.mxu1 %v5026_v25 }
 0x353   :  { %4008 = vmatpush3.msra.mxu0 %v4975_v56  ;;  %1206 = vmatprep.subr.mxu1 %v5029_v28  ;;  %v5080_v56 = vld [vmem:[#allocation10 + $0x40] sm:$0xff] }
 0x354   :  { %4009 = vmatprep.subr.mxu0 %v4979_v60  ;;  %1207 = vmatpush1.msra.mxu1 %v5032_v31  ;;  %5844 = vst [vmem:[#allocation41_spill] sm:$0xff] %v5080_v56 }
 0x355   :  { %4010 = vmatpush3.msra.mxu0 %v4979_v60  ;;  %1208 = vmatprep.subr.mxu1 %v5035_v33  ;;  %v5077_v60 = vld [vmem:[#allocation10 + $0x48] sm:$0xff] }
 0x356   :  { %4011 = vmatprep.subr.mxu0 %v4983_v61  ;;  %1209 = vmatpush1.msra.mxu1 %v5038_v36  ;;  %5843 = vst [vmem:[#allocation40_spill] sm:$0xff] %v5077_v60 }
 0x357   :  { %4012 = vmatpush3.msra.mxu0 %v4983_v61  ;;  %1210 = vmatprep.subr.mxu1 %v5041_v39  ;;  %v5074_v61 = vld [vmem:[#allocation10 + $0x50] sm:$0xff] }
 0x358   :  { %4013 = vmatprep.subr.mxu0 %v4987_v62  ;;  %1211 = vmatpush1.msra.mxu1 %v5044_v43  ;;  %5842 = vst [vmem:[#allocation39_spill] sm:$0xff] %v5074_v61 }
 0x359   :  { %4014 = vmatpush3.msra.mxu0 %v4987_v62  ;;  %1212 = vmatprep.subr.mxu1 %v5047_v3  ;;  %v5071_v62 = vld [vmem:[#allocation10 + $0x58] sm:$0xff] }
 0x35a   :  { %4015 = vmatprep.subr.mxu0 %v4991_v57  ;;  %1213 = vmatpush1.msra.mxu1 %v5050_v59  ;;  %5841 = vst [vmem:[#allocation38_spill] sm:$0xff] %v5071_v62  ;;  %v5094_v59 = vld [vmem:[#allocation10 + $0x20] sm:$0xff] }
 0x35b   :  { %4016 = vmatpush3.msra.mxu0 %v4991_v57  ;;  %1214 = vmatprep.subr.mxu1 %v5053_v0  ;;  %v5068_v57 = vld [vmem:[#allocation10 + $0x60] sm:$0xff]  ;;  %5848 = vst [vmem:[#allocation45_spill] sm:$0xff] %v5094_v59 }
 0x35c   :  { %4017 = vmatprep.subr.mxu0 %v4997_v1  ;;  %5840 = vst [vmem:[#allocation37_spill] sm:$0xff] %v5068_v57 }
 0x35d   :  { %4018 = vmatpush3.msra.mxu0 %v4997_v1  ;;  %v5065_v1 = vld [vmem:[#allocation10 + $0x68] sm:$0xff] }
 0x35e   :  { %4019 = vmatprep.subr.mxu0 %v5001_v63  ;;  %5839 = vst [vmem:[#allocation36_spill] sm:$0xff] %v5065_v1 }
 0x35f   :  { %4020 = vmatpush3.msra.mxu0 %v5001_v63  ;;  %v5062_v63 = vld [vmem:[#allocation10 + $0x70] sm:$0xff] }
 0x360   :  { %4021 = vmatprep.subr.mxu0 %v5003_v2  ;;  %5838 = vst [vmem:[#allocation35_spill] sm:$0xff] %v5062_v63 }
 0x361   :  { %4022 = vmatpush3.msra.mxu0 %v5003_v2  ;;  %v5059_v2 = vld [vmem:[#allocation10 + $0x78] sm:$0xff] }
 0x362   :  { %4023 = vmatprep.subr.mxu0 %v5007_v5  ;;  %5837 = vst [vmem:[#allocation34_spill] sm:$0xff] %v5059_v2 }
 0x363   :  { %4024 = vmatpush3.msra.mxu0 %v5007_v5  ;;  %v5056_v5 = vld [vmem:[#allocation10 + $0x80] sm:$0xff] }
 0x364   :  { %5836 = vst [vmem:[#allocation33_spill] sm:$0xff] %v5056_v5  ;;  %1215 = vmatpush1.msra.mxu1 %v5056_v5 }
 0x365   :  { %1216 = vmatprep.subr.mxu1 %v5059_v2  ;;  %v5083_v2 = vld [vmem:[#allocation10 + $0x38] sm:$0xff] }
 0x366   :  { %1217 = vmatpush1.msra.mxu1 %v5062_v63  ;;  %5845 = vst [vmem:[#allocation42_spill] sm:$0xff] %v5083_v2  ;;  %v5086_v63 = vld [vmem:[#allocation10 + $0x30] sm:$0xff] }
 0x367   :  { %1218 = vmatprep.subr.mxu1 %v5065_v1  ;;  %5846 = vst [vmem:[#allocation43_spill] sm:$0xff] %v5086_v63  ;;  %v5089_v1 = vld [vmem:[#allocation10 + $0x28] sm:$0xff] }
 0x368   :  { %1219 = vmatpush1.msra.mxu1 %v5068_v57  ;;  %5847 = vst [vmem:[#allocation44_spill] sm:$0xff] %v5089_v1 }
 0x369   :  { %1220 = vmatprep.subr.mxu1 %v5071_v62 }
 0x36a   :  { %1221 = vmatpush1.msra.mxu1 %v5074_v61 }
 0x36b   :  { %1222 = vmatprep.subr.mxu1 %v5077_v60 }
 0x36c   :  { %1223 = vmatpush1.msra.mxu1 %v5080_v56 }
 0x36d   :  { %1224 = vmatprep.subr.mxu1 %v5083_v2  ;;  %v5097_v2 = vld [vmem:[#allocation10 + $0x18] sm:$0xff] }
 0x36e   :  { %1225 = vmatpush1.msra.mxu1 %v5086_v63  ;;  %5849 = vst [vmem:[#allocation46_spill] sm:$0xff] %v5097_v2 }
 0x36f   :  { %1226 = vmatprep.subr.mxu1 %v5089_v1  ;;  %v5100_v1 = vld [vmem:[#allocation10 + $0x10] sm:$0xff] }
 0x370   :  { %1227 = vmatpush1.msra.mxu1 %v5094_v59  ;;  %5850 = vst [vmem:[#allocation47_spill] sm:$0xff] %v5100_v1 }
 0x371   :  { %1228 = vmatprep.subr.mxu1 %v5097_v2 }
 0x372   :  { %1229 = vmatpush1.msra.mxu1 %v5100_v1 }
 0x3f4   :  { %v875_v62 = vpop.f32.mrf.mxu1 }
 0x3f5   :  { %4025 = vmatprep.mubr.f32.mxu0 %v875_v62  ;;  %v5105_v62 = vld [vmem:[#allocation10] sm:$0xff] }
 0x3f6   :  { %v3971_v57 = vpop.f32.mrf.mxu1  ;;  %5852 = vst [vmem:[#allocation49_spill] sm:$0xff] %v5105_v62 }
 0x3f7   :  { %v5854_v57 = vmov 0.0  }
 0x3fc   :  { %v948_v61 = vpop.f32.mrf.mxu1 }
 0x3fd   :  { %4026 = vmatmul.mubr.f32.vlgmr.msra.gmra.mxu0 %v948_v61  ;;  %v5103_v61 = vld [vmem:[#allocation10 + $0x8] sm:$0xff] }
 0x3fe   :  { %v3978_v5 = vpop.f32.mrf.mxu1  ;;  %5851 = vst [vmem:[#allocation48_spill] sm:$0xff] %v5103_v61  ;;  %1230 = vmatprep.subr.mxu1 %v5103_v61 }
 0x3ff   :  { %1231 = vmatpush1.msra.mxu1 %v5105_v62 }
 0x400   :  { %4031 = vmatprep.subr.mxu1 %v4758_v7 }
 0x404   :  { %v1021_v0 = vpop.f32.mrf.mxu0 }
 0x405   :  { %4028 = vmatprep.mubr.f32.mxu0 %v1021_v0 }
 0x406   :  { %v3985_v60 = vpop.f32.mrf.mxu0 }
 0x40c   :  { %v1094_v53 = vpop.f32.mrf.mxu1 }
 0x40d   :  { %4029 = vmatmul.mubr.f32.gmra.mxu0 %v1094_v53  ;;  %v5113_v53 = vld [vmem:[%s5732_s6] ss:$0 sm:$0xff] }
 0x40e   :  { %v3992_v56 = vpop.f32.mrf.mxu1  ;;  %5853 = vst [vmem:[#allocation50_spill] sm:$0xff] %v5113_v53 }
 0x4bd   :  { %v4027_v0 = vpop.f32.mrf.mxu0 }
 0x4be   :  { %v1176_v5 = vadd.f32 %v4027_v0, %v5113_v53  ;;  %v5190_v0 = vld [vmem:[#allocation11 + $0xc8] sm:$0xff] }
 0x4bf   :  { %v1170_v56 = vpop.f32.mrf.mxu0  ;;  %5867 = vst [vmem:[#allocation63_spill] sm:$0xff] %v5190_v0 }
 0x4c0   :  { %v1171_v60 = vadd.f32 %v5113_v53, %v1170_v56  ;;  %v5193_v56 = vld [vmem:[#allocation11 + $0x48] sm:$0xff] }
 0x4c1   :  { %5868 = vst [vmem:[#allocation64_spill] sm:$0xff] %v5193_v56 }
 0x4c2   :  { %1265 = vmatmul.mubr.f32.vlgmr.msra.gmra.mxu1 %v1171_v60  ;;  %v5196_v60 = vld [vmem:[#allocation11 + $0xc0] sm:$0xff] }
 0x4c3   :  { %1270 = vmatprep.mubr.f32.mxu1 %v5854_v57  ;;  %4032 = vmatpush3.msra.mxu1 %v4758_v7  ;;  %5869 = vst [vmem:[#allocation65_spill] sm:$0xff] %v5196_v60 }
 0x4c4   :  { %4033 = vmatprep.subr.mxu1 %v4761_v9 }
 0x4c5   :  { %4034 = vmatpush3.msra.mxu1 %v4761_v9 }
 0x4c6   :  { %1271 = vmatmul.mubr.f32.gmra.mxu1 %v1176_v5  ;;  %4035 = vmatprep.subr.mxu1 %v4764_v11  ;;  %v5199_v5 = vld [vmem:[#allocation11 + $0x40] sm:$0xff] }
 0x4c7   :  { %1276 = vmatprep.mubr.f32.mxu1 %v5854_v57  ;;  %4036 = vmatpush3.msra.mxu1 %v4764_v11  ;;  %5870 = vst [vmem:[#allocation66_spill] sm:$0xff] %v5199_v5 }
 0x4c8   :  { %4037 = vmatprep.subr.mxu1 %v4768_v14 }
 0x4c9   :  { %4038 = vmatpush3.msra.mxu1 %v4768_v14 }
 0x4ca   :  { %4039 = vmatprep.subr.mxu1 %v4772_v17 }
 0x4cb   :  { %4040 = vmatpush3.msra.mxu1 %v4772_v17  ;;  %v5154_v17 = vld [vmem:[#allocation11 + $0xf8] sm:$0xff] }
 0x4cc   :  { %4041 = vmatprep.subr.mxu1 %v4776_v20  ;;  %5855 = vst [vmem:[#allocation51_spill] sm:$0xff] %v5154_v17  ;;  %3639 = vmatprep.subr.mxu0 %v5154_v17 }
 0x4cd   :  { %v4030_v7 = vpop.f32.mrf.mxu0  ;;  %4042 = vmatpush3.msra.mxu1 %v4776_v20  ;;  %v5157_v20 = vld [vmem:[#allocation11 + $0x78] sm:$0xff] }
 0x4ce   :  { %4043 = vmatprep.subr.mxu1 %v4780_v23  ;;  %v1186_v14 = vadd.f32 %v4030_v7, %v5113_v53  ;;  %5856 = vst [vmem:[#allocation52_spill] sm:$0xff] %v5157_v20  ;;  %3640 = vmatpush3.msra.mxu0 %v5157_v20  ;;  %v5202_v7 = vld [vmem:[#allocation11 + $0xb8] sm:$0xff] }
 0x4cf   :  { %v1180_v9 = vpop.f32.mrf.mxu0  ;;  %4044 = vmatpush3.msra.mxu1 %v4780_v23  ;;  %v5160_v23 = vld [vmem:[#allocation11 + $0xf0] sm:$0xff]  ;;  %5871 = vst [vmem:[#allocation67_spill] sm:$0xff] %v5202_v7 }
 0x4d0   :  { %v1181_v11 = vadd.f32 %v5113_v53, %v1180_v9  ;;  %4045 = vmatprep.subr.mxu1 %v4784_v26  ;;  %5857 = vst [vmem:[#allocation53_spill] sm:$0xff] %v5160_v23  ;;  %3641 = vmatprep.subr.mxu0 %v5160_v23  ;;  %v5205_v9 = vld [vmem:[#allocation11 + $0x38] sm:$0xff]  ;;  %v5214_v53 = vld [vmem:[#allocation11 + $0xa8] sm:$0xff] }
 0x4d1   :  { %4046 = vmatpush3.msra.mxu1 %v4784_v26  ;;  %v5163_v26 = vld [vmem:[#allocation11 + $0x70] sm:$0xff]  ;;  %5872 = vst [vmem:[#allocation68_spill] sm:$0xff] %v5205_v9  ;;  %5875 = vst [vmem:[#allocation71_spill] sm:$0xff] %v5214_v53 }
 0x4d2   :  { %1277 = vmatmul.mubr.f32.gmra.mxu1 %v1181_v11  ;;  %4047 = vmatprep.subr.mxu1 %v4788_v29  ;;  %5858 = vst [vmem:[#allocation54_spill] sm:$0xff] %v5163_v26  ;;  %v5208_v11 = vld [vmem:[#allocation11 + $0xb0] sm:$0xff] }
 0x4d3   :  { %1282 = vmatprep.mubr.f32.mxu1 %v5854_v57  ;;  %4048 = vmatpush3.msra.mxu1 %v4788_v29  ;;  %v5166_v29 = vld [vmem:[#allocation11 + $0xe8] sm:$0xff]  ;;  %5873 = vst [vmem:[#allocation69_spill] sm:$0xff] %v5208_v11 }
 0x4d4   :  { %4049 = vmatprep.subr.mxu1 %v4792_v32  ;;  %3642 = vmatpush3.msra.mxu0 %v5163_v26  ;;  %5859 = vst [vmem:[#allocation55_spill] sm:$0xff] %v5166_v29 }
 0x4d5   :  { %4050 = vmatpush3.msra.mxu1 %v4792_v32  ;;  %3643 = vmatprep.subr.mxu0 %v5166_v29  ;;  %v5169_v32 = vld [vmem:[#allocation11 + $0x68] sm:$0xff] }
 0x4d6   :  { %1283 = vmatmul.mubr.f32.gmra.mxu1 %v1186_v14  ;;  %4051 = vmatprep.subr.mxu1 %v4796_v35  ;;  %5860 = vst [vmem:[#allocation56_spill] sm:$0xff] %v5169_v32  ;;  %v5211_v14 = vld [vmem:[#allocation11 + $0x30] sm:$0xff] }
 0x4d7   :  { %4052 = vmatpush3.msra.mxu1 %v4796_v35  ;;  %3644 = vmatpush3.msra.mxu0 %v5169_v32  ;;  %v5172_v35 = vld [vmem:[#allocation11 + $0xe0] sm:$0xff]  ;;  %5874 = vst [vmem:[#allocation70_spill] sm:$0xff] %v5211_v14 }
 0x4d8   :  { %4053 = vmatprep.subr.mxu1 %v4800_v38  ;;  %5861 = vst [vmem:[#allocation57_spill] sm:$0xff] %v5172_v35  ;;  %3645 = vmatprep.subr.mxu0 %v5172_v35 }
 0x4d9   :  { %4054 = vmatpush3.msra.mxu1 %v4800_v38  ;;  %v5175_v38 = vld [vmem:[#allocation11 + $0x60] sm:$0xff] }
 0x4da   :  { %4055 = vmatprep.subr.mxu1 %v4804_v41  ;;  %5862 = vst [vmem:[#allocation58_spill] sm:$0xff] %v5175_v38  ;;  %3646 = vmatpush3.msra.mxu0 %v5175_v38 }
 0x4db   :  { %4056 = vmatpush3.msra.mxu1 %v4804_v41  ;;  %v5178_v41 = vld [vmem:[#allocation11 + $0xd8] sm:$0xff] }
 0x4dc   :  { %4057 = vmatprep.subr.mxu1 %v4808_v44  ;;  %5863 = vst [vmem:[#allocation59_spill] sm:$0xff] %v5178_v41  ;;  %3647 = vmatprep.subr.mxu0 %v5178_v41 }
 0x4dd   :  { %4058 = vmatpush3.msra.mxu1 %v4808_v44  ;;  %v5181_v44 = vld [vmem:[#allocation11 + $0x58] sm:$0xff] }
 0x4de   :  { %4059 = vmatprep.subr.mxu1 %v4812_v47  ;;  %5864 = vst [vmem:[#allocation60_spill] sm:$0xff] %v5181_v44  ;;  %3648 = vmatpush3.msra.mxu0 %v5181_v44 }
 0x4df   :  { %4060 = vmatpush3.msra.mxu1 %v4812_v47  ;;  %v5184_v47 = vld [vmem:[#allocation11 + $0xd0] sm:$0xff] }
 0x4e0   :  { %4061 = vmatprep.subr.mxu1 %v4816_v49  ;;  %5865 = vst [vmem:[#allocation61_spill] sm:$0xff] %v5184_v47  ;;  %3649 = vmatprep.subr.mxu0 %v5184_v47 }
 0x4e1   :  { %4062 = vmatpush3.msra.mxu1 %v4816_v49  ;;  %v5187_v49 = vld [vmem:[#allocation11 + $0x50] sm:$0xff] }
 0x4e2   :  { %4069 = vmatprep.subr.mxu1 %v5854_v57  ;;  %5866 = vst [vmem:[#allocation62_spill] sm:$0xff] %v5187_v49  ;;  %3650 = vmatpush3.msra.mxu0 %v5187_v49 }
 0x4e3   :  { %3651 = vmatprep.subr.mxu0 %v5190_v0 }
 0x4e4   :  { %3652 = vmatpush3.msra.mxu0 %v5193_v56 }
 0x4e5   :  { %3653 = vmatprep.subr.mxu0 %v5196_v60 }
 0x4e6   :  { %3654 = vmatpush3.msra.mxu0 %v5199_v5  ;;  %v5217_v5 = vld [vmem:[#allocation11 + $0x28] sm:$0xff] }
 0x4e7   :  { %3655 = vmatprep.subr.mxu0 %v5202_v7  ;;  %5876 = vst [vmem:[#allocation72_spill] sm:$0xff] %v5217_v5  ;;  %v5220_v7 = vld [vmem:[#allocation11 + $0xa0] sm:$0xff] }
 0x4e8   :  { %3656 = vmatpush3.msra.mxu0 %v5205_v9  ;;  %5877 = vst [vmem:[#allocation73_spill] sm:$0xff] %v5220_v7  ;;  %v5223_v9 = vld [vmem:[#allocation11 + $0x20] sm:$0xff] }
 0x4e9   :  { %3657 = vmatprep.subr.mxu0 %v5208_v11  ;;  %5878 = vst [vmem:[#allocation74_spill] sm:$0xff] %v5223_v9  ;;  %v5226_v11 = vld [vmem:[#allocation11 + $0x98] sm:$0xff] }
 0x4ea   :  { %3658 = vmatpush3.msra.mxu0 %v5211_v14  ;;  %5879 = vst [vmem:[#allocation75_spill] sm:$0xff] %v5226_v11  ;;  %v5229_v14 = vld [vmem:[#allocation11 + $0x18] sm:$0xff] }
 0x4eb   :  { %3659 = vmatprep.subr.mxu0 %v5214_v53  ;;  %5880 = vst [vmem:[#allocation76_spill] sm:$0xff] %v5229_v14  ;;  %v5232_v53 = vld [vmem:[#allocation11 + $0x90] sm:$0xff] }
 0x4ec   :  { %3660 = vmatpush3.msra.mxu0 %v5217_v5  ;;  %5881 = vst [vmem:[#allocation77_spill] sm:$0xff] %v5232_v53  ;;  %v5235_v5 = vld [vmem:[#allocation11 + $0x10] sm:$0xff] }
 0x4ed   :  { %3661 = vmatprep.subr.mxu0 %v5220_v7  ;;  %5882 = vst [vmem:[#allocation78_spill] sm:$0xff] %v5235_v5  ;;  %v5238_v7 = vld [vmem:[#allocation11 + $0x88] sm:$0xff] }
 0x4ee   :  { %3662 = vmatpush3.msra.mxu0 %v5223_v9  ;;  %5883 = vst [vmem:[#allocation79_spill] sm:$0xff] %v5238_v7  ;;  %v5241_v9 = vld [vmem:[#allocation11 + $0x8] sm:$0xff] }
 0x4ef   :  { %3663 = vmatprep.subr.mxu0 %v5226_v11  ;;  %5884 = vst [vmem:[#allocation80_spill] sm:$0xff] %v5241_v9  ;;  %v5244_v11 = vld [vmem:[#allocation11 + $0x80] sm:$0xff] }
 0x4f0   :  { %3664 = vmatpush3.msra.mxu0 %v5229_v14  ;;  %5885 = vst [vmem:[#allocation81_spill] sm:$0xff] %v5244_v11  ;;  %v5247_v14 = vld [vmem:[#allocation11] sm:$0xff] }
 0x4f1   :  { %3665 = vmatprep.subr.mxu0 %v5232_v53  ;;  %5886 = vst [vmem:[#allocation82_spill] sm:$0xff] %v5247_v14 }
 0x4f2   :  { %3666 = vmatpush3.msra.mxu0 %v5235_v5  ;;  %v252_v5 = vld [vmem:[%s5734_s8] sm:$0x3] }
 0x4f3   :  { %3667 = vmatprep.subr.mxu0 %v5238_v7  ;;  %v5887_v7 = vsub.s32 0, %v4838_v58 }
 0x4f4   :  { %3668 = vmatpush3.msra.mxu0 %v5241_v9  ;;  %v5889_v9 = vsub.s32 1, %v4838_v58 }
 0x4f5   :  { %3669 = vmatprep.subr.mxu0 %v5244_v11  ;;  %v5256_v53 = vrot.slane %v252_v5, %v5887_v7 }
 0x4f6   :  { %3670 = vmatpush3.msra.mxu0 %v5247_v14  ;;  %v5260_v60 = vrot.slane %v252_v5, %v5889_v9 }
 0x4f7   :  { %4090 = vmatprep.subr.mxu0 %v5854_v57  ;;  %5888 = vst [vmem:[#allocation83_spill] sm:$0xff] %v5256_v53 }
 0x4f8   :  { %5890 = vst [vmem:[#allocation84_spill] sm:$0xff] %v5260_v60 }
 0x582   :  { %v1266_v56 = vpop.f32.mrf.mxu1 }
 0x583   :  { %v5263_v11 = vadd.f32 %v1266_v56, %v5256_v53 }
 0x584   :  { %v1268_v0 = vpop.f32.mrf.mxu1 }
 0x585   :  { %v1289_v14 = vmul.f32 %v5263_v11, %v5263_v11  ;;  %v5268_v49 = vadd.f32 %v1268_v0, %v5260_v60 }
 0x586   :  { %v1272_v47 = vpop.f32.mrf.mxu1 }
 0x587   :  { %v1297_v44 = vmul.f32 %v1289_v14, %v5263_v11  ;;  %v1290_v7 = vmul.f32 %v5268_v49, %v5268_v49  ;;  %v5274_v58 = vadd.f32 %v1272_v47, %v5256_v53 }
 0x588   :  { %v1274_v5 = vpop.f32.mrf.mxu1 }
 0x589   :  { %v1305_v9 = vmul.f32 0.044715, %v1297_v44  ;;  %v1298_v56 = vmul.f32 %v1290_v7, %v5268_v49  ;;  %v1291_v41 = vmul.f32 %v5274_v58, %v5274_v58  ;;  %v5280_v38 = vadd.f32 %v1274_v5, %v5260_v60 }
 0x58b   :  { %v1313_v0 = vadd.f32 %v1305_v9, %v5263_v11  ;;  %v1306_v35 = vmul.f32 0.044715, %v1298_v56  ;;  %v1299_v14 = vmul.f32 %v1291_v41, %v5274_v58  ;;  %v1292_v32 = vmul.f32 %v5280_v38, %v5280_v38 }
 0x58d   :  { %v1321_v47 = vmul.f32 0.7978846, %v1313_v0  ;;  %v1314_v29 = vadd.f32 %v1306_v35, %v5268_v49  ;;  %v1307_v44 = vmul.f32 0.044715, %v1299_v14  ;;  %v1300_v7 = vmul.f32 %v1292_v32, %v5280_v38 }
 0x58f   :  { %4324 = vtanh.f32 %v1321_v47  ;;  %v1322_v26 = vmul.f32 0.7978846, %v1314_v29  ;;  %v1315_v23 = vadd.f32 %v1307_v44, %v5274_v58  ;;  %v1308_v5 = vmul.f32 0.044715, %v1300_v7 }
 0x591   :  { %4326 = vtanh.f32 %v1322_v26  ;;  %v1323_v20 = vmul.f32 0.7978846, %v1315_v23  ;;  %v1316_v9 = vadd.f32 %v1308_v5, %v5280_v38 }
 0x592   :  { %v1278_v56 = vpop.f32.mrf.mxu1 }
 0x593   :  { %4328 = vtanh.f32 %v1323_v20  ;;  %v1324_v41 = vmul.f32 0.7978846, %v1316_v9  ;;  %v5291_v17 = vadd.f32 %v1278_v56, %v5256_v53 }
 0x594   :  { %v1280_v0 = vpop.f32.mrf.mxu1 }
 0x595   :  { %4330 = vtanh.f32 %v1324_v41  ;;  %v1293_v32 = vmul.f32 %v5291_v17, %v5291_v17  ;;  %v1281_v29 = vadd.f32 %v1280_v0, %v5260_v60 }
 0x596   :  { %v1284_v35 = vpop.f32.mrf.mxu1 }
 0x597   :  { %v1301_v14 = vmul.f32 %v1293_v32, %v5291_v17  ;;  %v1294_v26 = vmul.f32 %v1281_v29, %v1281_v29  ;;  %v5298_v23 = vadd.f32 %v1284_v35, %v5256_v53 }
 0x598   :  { %v1286_v47 = vpop.f32.mrf.mxu1 }
 0x599   :  { %v1309_v20 = vmul.f32 0.044715, %v1301_v14  ;;  %v1302_v44 = vmul.f32 %v1294_v26, %v1281_v29  ;;  %v1295_v7 = vmul.f32 %v5298_v23, %v5298_v23  ;;  %v1287_v5 = vadd.f32 %v1286_v47, %v5260_v60 }
 0x59b   :  { %v1317_v9 = vadd.f32 %v1309_v20, %v5291_v17  ;;  %v1310_v56 = vmul.f32 0.044715, %v1302_v44  ;;  %v1303_v41 = vmul.f32 %v1295_v7, %v5298_v23  ;;  %v1296_v0 = vmul.f32 %v1287_v5, %v1287_v5 }
 0x59c   :  { %v4325_v62 = vpop.eup %4324 }
 0x59d   :  { %v1337_v32 = vadd.f32 1.0, %v4325_v62  ;;  %v1325_v61 = vmul.f32 0.7978846, %v1317_v9  ;;  %v1318_v1 = vadd.f32 %v1310_v56, %v1281_v29  ;;  %v1311_v35 = vmul.f32 0.044715, %v1303_v41 }
 0x59e   :  { %v4327_v53 = vpop.eup %4326  ;;  %v1304_v2 = vmul.f32 %v1296_v0, %v1287_v5 }
 0x59f   :  { %4332 = vtanh.f32 %v1325_v61  ;;  %v1326_v14 = vmul.f32 0.7978846, %v1318_v1  ;;  %v1319_v26 = vadd.f32 %v1311_v35, %v5298_v23  ;;  %v1338_v47 = vadd.f32 1.0, %v4327_v53 }
 0x5a0   :  { %v4329_v59 = vpop.eup %4328  ;;  %v1312_v63 = vmul.f32 0.044715, %v1304_v2  ;;  %v1345_v60 = vmul.f32 0.5, %v1337_v32 }
 0x5a1   :  { %4334 = vtanh.f32 %v1326_v14  ;;  %v1327_v20 = vmul.f32 0.7978846, %v1319_v26  ;;  %v1339_v44 = vadd.f32 1.0, %v4329_v59  ;;  %v1346_v46 = vmul.f32 0.5, %v1338_v47 }
 0x5a2   :  { %v4331_v7 = vpop.eup %4330  ;;  %v1320_v3 = vadd.f32 %v1312_v63, %v1287_v5  ;;  %v1353_v61 = vmul.f32 %v1345_v60, %v5263_v11 }
 0x5a3   :  { %4336 = vtanh.f32 %v1327_v20  ;;  %v1340_v62 = vadd.f32 1.0, %v4331_v7  ;;  %v1354_v56 = vmul.f32 %v1346_v46, %v5268_v49  ;;  %v1347_v41 = vmul.f32 0.5, %v1339_v44 }
 0x5a4   :  { %v1328_v9 = vmul.f32 0.7978846, %v1320_v3 }
 0x5a5   :  { %v1348_v1 = vmul.f32 0.5, %v1340_v62  ;;  %1431 = vmatprep.mubr.f32.mxu0 %v1354_v56  ;;  %v1355_v59 = vmul.f32 %v1347_v41, %v5274_v58 }
 0x5a6   :  { %4338 = vtanh.f32 %v1328_v9  ;;  %1432 = vmatmul.mubr.f32.vlgmr.msra.gmra.mxu0 %v1353_v61 }
 0x5a7   :  { %v1356_v2 = vmul.f32 %v1348_v1, %v5280_v38  ;;  %4091 = vmatpush3.xpose.msra.mxu0 %v4894_v50 }
 0x5a8   :  { %4092 = vmatprep.subr.mxu0 %v5854_v57 }
 0x5a9   :  { %1436 = vmatprep.mubr.f32.mxu0 %v1356_v2 }
 0x5aa   :  { %1437 = vmatmul.mubr.f32.gmra.mxu0 %v1355_v59 }
 0x5ab   :  { %4093 = vmatpush3.xpose.msra.mxu0 %v4903_v52 }
 0x5ac   :  { %v4333_v3 = vpop.eup %4332  ;;  %4111 = vmatprep.subr.mxu0 %v5854_v57 }
 0x5ad   :  { %v1341_v46 = vadd.f32 1.0, %v4333_v3 }
 0x5ae   :  { %v4335_v63 = vpop.eup %4334 }
 0x5af   :  { %v1342_v53 = vadd.f32 1.0, %v4335_v63  ;;  %v1349_v60 = vmul.f32 0.5, %v1341_v46 }
 0x5b0   :  { %v4337_v49 = vpop.eup %4336 }
 0x5b1   :  { %v1350_v11 = vmul.f32 0.5, %v1342_v53  ;;  %v1343_v38 = vadd.f32 1.0, %v4337_v49  ;;  %v1357_v35 = vmul.f32 %v1349_v60, %v5291_v17  ;;  %v5348_v60 = vld [vmem:[%s5728_s2] ss:$0 sm:$0xff] }
 0x5b3   :  { %v4339_v0 = vpop.eup %4338  ;;  %v1358_v32 = vmul.f32 %v1350_v11, %v1281_v29  ;;  %v1351_v58 = vmul.f32 0.5, %v1343_v38  ;;  %v5321_v29 = vld [vmem:[%s5736_s10] ss:$0 sm:$0xff] }
 0x5b4   :  { %v1344_v14 = vadd.f32 1.0, %v4339_v0 }
 0x5b5   :  { %1441 = vmatprep.mubr.f32.mxu0 %v1358_v32  ;;  %v1359_v20 = vmul.f32 %v1351_v58, %v5298_v23 }
 0x5b6   :  { %1442 = vmatmul.mubr.f32.gmra.mxu0 %v1357_v35  ;;  %v1352_v26 = vmul.f32 0.5, %v1344_v14 }
 0x5b8   :  { %v1360_v47 = vmul.f32 %v1352_v26, %v1287_v5 }
 0x5ba   :  { %1446 = vmatprep.mubr.f32.mxu0 %v1360_v47 }
 0x5bb   :  { %1447 = vmatmul.mubr.f32.gmra.mxu0 %v1359_v20 }
 0x5bc   :  { %4094 = vmatprep.mubr.msk.f32.mxu0 %vm4664_vm0, %v5854_v57 }
 0x666   :  { %v3671_v44 = vpop.f32.mrf.mxu0 }
 0x668   :  { %v3672_v17 = vpop.f32.mrf.mxu0 }
 0x669   :  { %v3673_v7 = vadd.f32 %v3672_v17, %v3671_v44 }
 0x66a   :  { %v3674_v62 = vpop.f32.mrf.mxu0 }
 0x66b   :  { %v5324_v9 = vadd.f32 %v3673_v7, %v5321_v29 }
 0x66c   :  { %v3675_v5 = vpop.f32.mrf.mxu0 }
 0x66d   :  { %v3676_v56 = vadd.f32 %v3675_v5, %v3674_v62  ;;  %4063 = vmatprep.mubr.f32.mxu1 %v5324_v9 }
 0x66f   :  { %v5328_v23 = vadd.f32 %v3676_v56, %v5321_v29 }
 0x671   :  { %4064 = vmatmul.mubr.f32.vlgmr.msra.gmra.mxu1 %v5328_v23 }
 0x672   :  { %4070 = vmatpush3.xpose.msra.mxu1 %v4847_v4 }
 0x673   :  { %4071 = vmatprep.subr.mxu1 %v5854_v57 }
 0x676   :  { %v3677_v61 = vpop.f32.mrf.mxu0  ;;  %4072 = vmatpush3.xpose.msra.mxu1 %v4854_v12 }
 0x677   :  { %4076 = vmatprep.subr.mxu1 %v5854_v57 }
 0x678   :  { %v3678_v1 = vpop.f32.mrf.mxu0 }
 0x679   :  { %v3679_v41 = vadd.f32 %v3678_v1, %v3677_v61 }
 0x67b   :  { %v5336_v2 = vadd.f32 %v3679_v41, %v5321_v29  ;;  %v3680_v59 = vpop.f32.mrf.mxu0 }
 0x67d   :  { %v3681_v3 = vpop.f32.mrf.mxu0  ;;  %4066 = vmatprep.mubr.f32.mxu1 %v5336_v2 }
 0x67e   :  { %v3682_v46 = vadd.f32 %v3681_v3, %v3680_v59 }
 0x680   :  { %v5340_v63 = vadd.f32 %v3682_v46, %v5321_v29 }
 0x682   :  { %4067 = vmatmul.mubr.f32.gmra.mxu1 %v5340_v63 }
 0x683   :  { %4073 = vmatprep.mubr.msk.f32.mxu1 %vm4664_vm0, %v5854_v57 }
 0x731   :  { %v4065_v53 = vpop.f32.mrf.mxu1 }
 0x732   :  { %v1528_v38 = vadd.f32 %v5348_v60, %v4065_v53 }
 0x733   :  { %v1522_v49 = vpop.f32.mrf.mxu1 }
 0x734   :  { %v1523_v11 = vadd.f32 %v5348_v60, %v1522_v49 }
 0x736   :  { %4074 = vmatmul.mubr.f32.vlgmr.msra.gmra.mxu1 %v1523_v11 }
 0x737   :  { %4077 = vmatpush3.xpose.msra.mxu1 %v4865_v21  ;;  %4080 = vmatprep.mubr.msk.f32.mxu1 %vm4664_vm0, %v5854_v57 }
 0x738   :  { %4078 = vmatprep.subr.mxu1 %v5854_v57 }
 0x73b   :  { %4079 = vmatpush3.xpose.msra.mxu1 %v4874_v27 }
 0x73c   :  { %4083 = vmatprep.subr.mxu1 %v5854_v57 }
 0x73e   :  { %4081 = vmatmul.mubr.f32.vlgmr.msra.gmra.mxu1 %v1528_v38 }
 0x73f   :  { %4084 = vmatpush3.xpose.msra.mxu1 %v4878_v34  ;;  %4087 = vmatprep.mubr.msk.f32.mxu1 %vm4664_vm0, %v5854_v57 }
 0x740   :  { %4085 = vmatprep.subr.mxu1 %v5854_v57 }
 0x742   :  { %v4068_v0 = vpop.f32.mrf.mxu1 }
 0x743   :  { %v1538_v32 = vadd.f32 %v5348_v60, %v4068_v0  ;;  %4086 = vmatpush3.xpose.msra.mxu1 %v4884_v40 }
 0x744   :  { %v1532_v35 = vpop.f32.mrf.mxu1  ;;  %4097 = vmatprep.subr.mxu1 %v5854_v57 }
 0x745   :  { %v1533_v14 = vadd.f32 %v5348_v60, %v1532_v35  ;;  %4095 = vmatmul.mubr.f32.vlgmr.msra.gmra.mxu0 %v1538_v32 }
 0x746   :  { %4112 = vmatpush3.msra.mxu0 %v4912_v54  ;;  %4115 = vmatprep.mubr.msk.f32.mxu0 %vm4664_vm0, %v5854_v57 }
 0x747   :  { %4113 = vmatprep.subr.mxu0 %v5854_v57  ;;  %4088 = vmatmul.mubr.f32.vlgmr.msra.gmra.mxu1 %v1533_v14 }
 0x748   :  { %4098 = vmatpush3.msra.mxu1 %v4892_v48  ;;  %4114 = vmatpush3.msra.mxu0 %v4915_v55 }
 0x749   :  { %4099 = vmatprep.subr.mxu1 %v5854_v57  ;;  %4101 = vmatprep.mubr.msk.f32.mxu1 %vm4664_vm0, %v5854_v57 }
 0x74a   :  { %4100 = vmatpush3.msra.mxu1 %v4897_v51  ;;  %4125 = vmatprep.subr.mxu0 %v4930_v6 }
 0x74b   :  { %4104 = vmatprep.subr.mxu1 %v5854_v57 }
 0x7f6   :  { %v1607_v58 = vpop.f32.mrf.mxu1 }
 0x7f7   :  { %v1821_v26 = vmul.f32 0.088388346, %v1607_v58 }
 0x7f8   :  { %v4075_v47 = vpop.f32.mrf.mxu1 }
 0x7f9   :  { %v1825_v20 = vsel %vm761_vm1, %v1821_v26, -inf }
 0x7fa   :  { %1826 = vmax.xlane.f32.xlu0 %v1825_v20 }
 0x7fe   :  { %v1677_v44 = vpop.f32.mrf.mxu1 }
 0x7ff   :  { %v1822_v17 = vmul.f32 0.088388346, %v1677_v44 }
 0x800   :  { %v4082_v7 = vpop.f32.mrf.mxu1 }
 0x801   :  { %v1828_v62 = vsel %vm761_vm1, %v1822_v17, -inf }
 0x802   :  { %1829 = vmax.xlane.f32.xlu1 %v1828_v62 }
 0x805   :  { %v1817_v5 = vpop.f32.mrf.mxu0 }
 0x806   :  { %v1824_v56 = vmul.f32 0.088388346, %v1817_v5 }
 0x807   :  { %v1747_v61 = vpop.f32.mrf.mxu1  ;;  %v4096_v1 = vpop.f32.mrf.mxu0 }
 0x808   :  { %v1823_v41 = vmul.f32 0.088388346, %v1747_v61  ;;  %v1834_v6 = vsel %vm761_vm1, %v1824_v56, -inf }
 0x809   :  { %1835 = vmax.xlane.f32.xlu1 %v1834_v6  ;;  %v4089_v59 = vpop.f32.mrf.mxu1 }
 0x80a   :  { %v1831_v3 = vsel %vm761_vm1, %v1823_v41, -inf }
 0x80b   :  { %1832 = vmax.xlane.f32.xlu0 %v1831_v3 }
 0x883   :  { %v1827_v46 = vpop.xlane.xlu0 %1826 }
 0x884   :  { %v1837_v53 = vsub.f32 %v1821_v26, %v1827_v46 }
 0x886   :  { %v1841_v49 = vmul.f32 1.442695, %v1837_v53 }
 0x888   :  { %4340 = vpow2.f32 %v1841_v49 }
 0x88b   :  { %v1830_v11 = vpop.xlane.xlu1 %1829 }
 0x88c   :  { %v1838_v38 = vsub.f32 %v1822_v17, %v1830_v11 }
 0x88e   :  { %v1843_v0 = vmul.f32 1.442695, %v1838_v38 }
 0x890   :  { %4342 = vpow2.f32 %v1843_v0 }
 0x892   :  { %v1836_v32 = vpop.xlane.xlu1 %1835 }
 0x893   :  { %v1840_v35 = vsub.f32 %v1824_v56, %v1836_v32 }
 0x894   :  { %v1833_v14 = vpop.xlane.xlu0 %1832 }
 0x895   :  { %v1847_v58 = vmul.f32 1.442695, %v1840_v35  ;;  %v1839_v47 = vsub.f32 %v1823_v41, %v1833_v14  ;;  %v4341_v20 = vpop.eup %4340  ;;  %v5405_v35 = vld [vmem:[#allocation8 + $0x78] sm:$0xff]  ;;  %v5907_v14 = vld [vmem:[#allocation40_spill] sm:$0xff] }
 0x896   :  { %v1849_v7 = vsel %vm761_vm1, %v4341_v20, 0.0 }
 0x897   :  { %4344 = vpow2.f32 %v1847_v58  ;;  %v1845_v44 = vmul.f32 1.442695, %v1839_v47  ;;  %1850 = vadd.xlane.f32.xlu0 %v1849_v7  ;;  %v5908_v58 = vld [vmem:[#allocation41_spill] sm:$0xff]  ;;  %v5912_v7 = vld [vmem:[#allocation26_spill] sm:$0xff] }
 0x898   :  { %v5909_v47 = vld [vmem:[#allocation25_spill] sm:$0xff] }
 0x899   :  { %4346 = vpow2.f32 %v1845_v44  ;;  %v5911_v44 = vld [vmem:[#allocation43_spill] sm:$0xff] }
 0x89d   :  { %v4343_v62 = vpop.eup %4342 }
 0x89e   :  { %v1852_v26 = vsel %vm761_vm1, %v4343_v62, 0.0 }
 0x89f   :  { %1853 = vadd.xlane.f32.xlu1 %v1852_v26  ;;  %v5914_v26 = vld [vmem:[#allocation45_spill] sm:$0xff] }
 0x8a4   :  { %v4345_v5 = vpop.eup %4344 }
 0x8a5   :  { %v1858_v17 = vsel %vm761_vm1, %v4345_v5, 0.0 }
 0x8a6   :  { %v4347_v61 = vpop.eup %4346  ;;  %1859 = vadd.xlane.f32.xlu1 %v1858_v17  ;;  %v5916_v17 = vld [vmem:[#allocation46_spill] sm:$0xff] }
 0x8a7   :  { %v1855_v56 = vsel %vm761_vm1, %v4347_v61, 0.0 }
 0x8a8   :  { %1856 = vadd.xlane.f32.xlu0 %v1855_v56  ;;  %v5918_v56 = vld [vmem:[#allocation28_spill] sm:$0xff] }
 0x920   :  { %v1851_v1 = vpop.xlane.xlu0 %1850 }
 0x921   :  { %4348 = vrcp.f32 %v1851_v1  ;;  %v5919_v1 = vld [vmem:[#allocation48_spill] sm:$0xff] }
 0x928   :  { %v1854_v41 = vpop.xlane.xlu1 %1853 }
 0x929   :  { %4350 = vrcp.f32 %v1854_v41  ;;  %v5920_v41 = vld [vmem:[#allocation49_spill] sm:$0xff] }
 0x92e   :  { %v4349_v6 = vpop.eup %4348 }
 0x92f   :  { %v1860_v59 = vpop.xlane.xlu1 %1859  ;;  %v1865_v3 = vmul.f32 %v4349_v6, %v4341_v20  ;;  %v5910_v20 = vld [vmem:[#allocation42_spill] sm:$0xff]  ;;  %v5921_v6 = vld [vmem:[#allocation29_spill] sm:$0xff] }
 0x930   :  { %4352 = vrcp.f32 %v1860_v59  ;;  %v4406_v59 = vld [vmem:[#allocation5 + $0x78] sm:$0xff] }
 0x931   :  { %v1857_v46 = vpop.xlane.xlu0 %1856  ;;  %4102 = vmatmul.mubr.msk.f32.vlgmr.msra.gmra.mxu1 %vm761_vm1, %v1865_v3  ;;  %v5922_v3 = vld [vmem:[#allocation51_spill] sm:$0xff] }
 0x932   :  { %4354 = vrcp.f32 %v1857_v46  ;;  %4105 = vmatpush3.msra.mxu1 %v4868_v24  ;;  %4108 = vmatprep.mubr.msk.f32.mxu1 %vm4664_vm0, %v5854_v57 }
 0x933   :  { %4106 = vmatprep.subr.mxu1 %v5854_v57 }
 0x934   :  { %4107 = vmatpush3.msra.mxu1 %v4861_v18 }
 0x935   :  { %4118 = vmatprep.subr.mxu1 %v5854_v57 }
 0x936   :  { %v4351_v53 = vpop.eup %4350 }
 0x937   :  { %v1866_v49 = vmul.f32 %v4351_v53, %v4343_v62  ;;  %v5913_v62 = vld [vmem:[#allocation44_spill] sm:$0xff] }
 0x939   :  { %4109 = vmatmul.mubr.msk.f32.vlgmr.msra.gmra.mxu1 %vm761_vm1, %v1866_v49 }
 0x93a   :  { %4119 = vmatpush3.msra.mxu1 %v4941_v30  ;;  %4122 = vmatprep.mubr.msk.f32.mxu1 %vm4664_vm0, %v5854_v57 }
 0x93b   :  { %4120 = vmatprep.subr.mxu1 %v5854_v57 }
 0x93c   :  { %4121 = vmatpush3.msra.mxu1 %v4887_v45 }
 0x93d   :  { %v4353_v11 = vpop.eup %4352  ;;  %2246 = vmatprep.subr.mxu1 %v5013_v8  ;;  %v5893_v8 = vld [vmem:[#allocation31_spill] sm:$0xff] }
 0x93e   :  { %v1868_v38 = vmul.f32 %v4353_v11, %v4345_v5  ;;  %v5915_v5 = vld [vmem:[#allocation27_spill] sm:$0xff] }
 0x93f   :  { %v4355_v0 = vpop.eup %4354 }
 0x940   :  { %4123 = vmatmul.mubr.msk.f32.vlgmr.msra.gmra.mxu1 %vm761_vm1, %v1868_v38  ;;  %v1867_v32 = vmul.f32 %v4355_v0, %v4347_v61  ;;  %v5917_v61 = vld [vmem:[#allocation47_spill] sm:$0xff]  ;;  %v5923_v38 = vld [vmem:[#allocation52_spill] sm:$0xff]  ;;  %v5924_v0 = vld [vmem:[#allocation53_spill] sm:$0xff] }
 0x941   :  { %2247 = vmatpush1.msra.mxu1 %v5015_v10  ;;  %2310 = vmatprep.mubr.f32.mxu1 %v5854_v57  ;;  %v5894_v10 = vld [vmem:[#allocation20_spill] sm:$0xff] }
 0x942   :  { %4116 = vmatmul.mubr.msk.f32.vlgmr.msra.gmra.mxu0 %vm761_vm1, %v1867_v32  ;;  %2248 = vmatprep.subr.mxu1 %v5017_v16  ;;  %v5896_v16 = vld [vmem:[#allocation33_spill] sm:$0xff]  ;;  %v5925_v32 = vld [vmem:[#allocation54_spill] sm:$0xff] }
 0x943   :  { %4126 = vmatpush3.msra.mxu0 %v5405_v35  ;;  %2249 = vmatpush1.msra.mxu1 %v5020_v19  ;;  %v5897_v19 = vld [vmem:[#allocation21_spill] sm:$0xff] }
 0x944   :  { %4127 = vmatprep.subr.mxu0 %v4949_v37  ;;  %2250 = vmatprep.subr.mxu1 %v5023_v22  ;;  %v5899_v22 = vld [vmem:[#allocation35_spill] sm:$0xff] }
 0x945   :  { %4128 = vmatpush3.msra.mxu0 %v4949_v37  ;;  %2251 = vmatpush1.msra.mxu1 %v5026_v25  ;;  %v5891_v37 = vld [vmem:[#allocation19_spill] sm:$0xff]  ;;  %v5900_v25 = vld [vmem:[#allocation22_spill] sm:$0xff] }
 0x946   :  { %4129 = vmatprep.subr.mxu0 %v4953_v13  ;;  %2252 = vmatprep.subr.mxu1 %v5029_v28  ;;  %v5901_v28 = vld [vmem:[#allocation36_spill] sm:$0xff] }
 0x947   :  { %4130 = vmatpush3.msra.mxu0 %v4953_v13  ;;  %2253 = vmatpush1.msra.mxu1 %v5032_v31  ;;  %v5892_v13 = vld [vmem:[#allocation30_spill] sm:$0xff]  ;;  %v5902_v31 = vld [vmem:[#allocation37_spill] sm:$0xff] }
 0x948   :  { %4131 = vmatprep.subr.mxu0 %v4957_v15  ;;  %2254 = vmatprep.subr.mxu1 %v5035_v33  ;;  %v5903_v33 = vld [vmem:[#allocation23_spill] sm:$0xff] }
 0x949   :  { %4132 = vmatpush3.msra.mxu0 %v4957_v15  ;;  %2255 = vmatpush1.msra.mxu1 %v5038_v36  ;;  %v5895_v15 = vld [vmem:[#allocation32_spill] sm:$0xff]  ;;  %v5904_v36 = vld [vmem:[#allocation38_spill] sm:$0xff] }
 0x94a   :  { %4133 = vmatprep.subr.mxu0 %v4961_v42  ;;  %2256 = vmatprep.subr.mxu1 %v5041_v39  ;;  %v5905_v39 = vld [vmem:[#allocation39_spill] sm:$0xff] }
 0x94b   :  { %4134 = vmatpush3.msra.mxu0 %v4961_v42  ;;  %2257 = vmatpush1.msra.mxu1 %v5044_v43  ;;  %v5898_v42 = vld [vmem:[#allocation34_spill] sm:$0xff]  ;;  %v5906_v43 = vld [vmem:[#allocation24_spill] sm:$0xff] }
 0x94c   :  { %4135 = vmatprep.subr.mxu0 %v5891_v37  ;;  %2258 = vmatprep.subr.mxu1 %v5892_v13 }
 0x94d   :  { %4136 = vmatpush3.msra.mxu0 %v5891_v37  ;;  %2259 = vmatpush1.msra.mxu1 %v5893_v8  ;;  %v5926_v37 = vld [vmem:[#allocation55_spill] sm:$0xff]  ;;  %v5927_v8 = vld [vmem:[#allocation56_spill] sm:$0xff] }
 0x94e   :  { %4137 = vmatprep.subr.mxu0 %v5894_v10  ;;  %2260 = vmatprep.subr.mxu1 %v5895_v15 }
 0x94f   :  { %4138 = vmatpush3.msra.mxu0 %v5894_v10  ;;  %2261 = vmatpush1.msra.mxu1 %v5896_v16  ;;  %v5928_v10 = vld [vmem:[#allocation57_spill] sm:$0xff] }
 0x950   :  { %4139 = vmatprep.subr.mxu0 %v5897_v19  ;;  %2262 = vmatprep.subr.mxu1 %v5898_v42  ;;  %v5930_v42 = vld [vmem:[#allocation59_spill] sm:$0xff] }
 0x951   :  { %4140 = vmatpush3.msra.mxu0 %v5897_v19  ;;  %2263 = vmatpush1.msra.mxu1 %v5899_v22  ;;  %v5929_v19 = vld [vmem:[#allocation58_spill] sm:$0xff] }
 0x952   :  { %4141 = vmatprep.subr.mxu0 %v5900_v25  ;;  %2264 = vmatprep.subr.mxu1 %v5901_v28  ;;  %v5932_v28 = vld [vmem:[#allocation61_spill] sm:$0xff] }
 0x953   :  { %4142 = vmatpush3.msra.mxu0 %v5900_v25  ;;  %2265 = vmatpush1.msra.mxu1 %v5902_v31  ;;  %v5931_v25 = vld [vmem:[#allocation60_spill] sm:$0xff]  ;;  %v5933_v31 = vld [vmem:[#allocation62_spill] sm:$0xff] }
 0x954   :  { %4143 = vmatprep.subr.mxu0 %v5903_v33  ;;  %2266 = vmatprep.subr.mxu1 %v5904_v36  ;;  %v5935_v36 = vld [vmem:[#allocation64_spill] sm:$0xff] }
 0x955   :  { %4144 = vmatpush3.msra.mxu0 %v5903_v33  ;;  %2267 = vmatpush1.msra.mxu1 %v5905_v39  ;;  %v5934_v33 = vld [vmem:[#allocation63_spill] sm:$0xff]  ;;  %v5936_v39 = vld [vmem:[#allocation65_spill] sm:$0xff] }
 0x956   :  { %4145 = vmatprep.subr.mxu0 %v5906_v43  ;;  %2268 = vmatprep.subr.mxu1 %v5907_v14  ;;  %v5938_v14 = vld [vmem:[#allocation67_spill] sm:$0xff] }
 0x957   :  { %4146 = vmatpush3.msra.mxu0 %v5906_v43  ;;  %2269 = vmatpush1.msra.mxu1 %v5908_v58  ;;  %v5937_v43 = vld [vmem:[#allocation66_spill] sm:$0xff]  ;;  %v5939_v58 = vld [vmem:[#allocation68_spill] sm:$0xff] }
 0x958   :  { %4147 = vmatprep.subr.mxu0 %v5909_v47  ;;  %2270 = vmatprep.subr.mxu1 %v5910_v20  ;;  %v5941_v20 = vld [vmem:[#allocation70_spill] sm:$0xff] }
 0x959   :  { %4148 = vmatpush3.msra.mxu0 %v5909_v47  ;;  %2271 = vmatpush1.msra.mxu1 %v5911_v44  ;;  %v5940_v47 = vld [vmem:[#allocation69_spill] sm:$0xff]  ;;  %v5942_v44 = vld [vmem:[#allocation71_spill] sm:$0xff] }
 0x95a   :  { %4149 = vmatprep.subr.mxu0 %v5912_v7  ;;  %2272 = vmatprep.subr.mxu1 %v5913_v62  ;;  %v5944_v62 = vld [vmem:[#allocation73_spill] sm:$0xff] }
 0x95b   :  { %4150 = vmatpush3.msra.mxu0 %v5912_v7  ;;  %2273 = vmatpush1.msra.mxu1 %v5914_v26  ;;  %v5943_v7 = vld [vmem:[#allocation72_spill] sm:$0xff]  ;;  %v5945_v26 = vld [vmem:[#allocation74_spill] sm:$0xff] }
 0x95c   :  { %4151 = vmatprep.subr.mxu0 %v5915_v5  ;;  %2274 = vmatprep.subr.mxu1 %v5916_v17  ;;  %v5947_v17 = vld [vmem:[#allocation76_spill] sm:$0xff] }
 0x95d   :  { %4152 = vmatpush3.msra.mxu0 %v5915_v5  ;;  %2275 = vmatpush1.msra.mxu1 %v5917_v61  ;;  %v5946_v5 = vld [vmem:[#allocation75_spill] sm:$0xff]  ;;  %v5948_v61 = vld [vmem:[#allocation77_spill] sm:$0xff] }
 0x95e   :  { %4153 = vmatprep.subr.mxu0 %v5918_v56  ;;  %2276 = vmatprep.subr.mxu1 %v5919_v1  ;;  %v5950_v1 = vld [vmem:[#allocation79_spill] sm:$0xff] }
 0x95f   :  { %4154 = vmatpush3.msra.mxu0 %v5918_v56  ;;  %2277 = vmatpush1.msra.mxu1 %v5920_v41  ;;  %v5949_v56 = vld [vmem:[#allocation78_spill] sm:$0xff]  ;;  %v5951_v41 = vld [vmem:[#allocation80_spill] sm:$0xff] }
 0x960   :  { %4155 = vmatprep.subr.mxu0 %v5921_v6  ;;  %4163 = vmatprep.subr.mxu1 %v4406_v59 }
 0x961   :  { %4156 = vmatpush3.msra.mxu0 %v5921_v6  ;;  %v5952_v6 = vld [vmem:[#allocation81_spill] sm:$0xff] }
 0x962   :  { %3747 = vmatprep.subr.mxu0 %v5922_v3  ;;  %v5953_v3 = vld [vmem:[#allocation82_spill] sm:$0xff] }
 0x9f1   :  { %v1938_v46 = vpop.f32.mrf.mxu1 }
 0x9f2   :  { %4157 = vmatprep.mubr.f32.mxu0 %v1938_v46 }
 0x9f3   :  { %v4103_v53 = vpop.f32.mrf.mxu1 }
 0x9f9   :  { %v2011_v49 = vpop.f32.mrf.mxu1 }
 0x9fa   :  { %4158 = vmatmul.mubr.f32.vlgmr.msra.gmra.mxu0 %v2011_v49  ;;  %v5954_v49 = vld [vmem:[#allocation50_spill] sm:$0xff] }
 0x9fb   :  { %v4110_v11 = vpop.f32.mrf.mxu1  ;;  %3748 = vmatpush3.msra.mxu0 %v5923_v38 }
 0x9fc   :  { %3749 = vmatprep.subr.mxu0 %v5924_v0  ;;  %v4407_v0 = vld [vmem:[#allocation5 + $0x70] sm:$0xff] }
 0x9fd   :  { %3750 = vmatpush3.msra.mxu0 %v5925_v32 }
 0x9fe   :  { %3751 = vmatprep.subr.mxu0 %v5926_v37  ;;  %v4408_v37 = vld [vmem:[#allocation5 + $0x68] sm:$0xff] }
 0x9ff   :  { %3752 = vmatpush3.msra.mxu0 %v5927_v8  ;;  %v4409_v8 = vld [vmem:[#allocation5 + $0x60] sm:$0xff] }
 0xa00   :  { %v2157_v13 = vpop.f32.mrf.mxu1  ;;  %3753 = vmatprep.subr.mxu0 %v5928_v10 }
 0xa01   :  { %3754 = vmatpush3.msra.mxu0 %v5929_v19  ;;  %v4412_v19 = vld [vmem:[#allocation5 + $0x48] sm:$0xff] }
 0xa02   :  { %v2084_v15 = vpop.f32.mrf.mxu0  ;;  %v4124_v16 = vpop.f32.mrf.mxu1  ;;  %3755 = vmatprep.subr.mxu0 %v5930_v42  ;;  %v4413_v42 = vld [vmem:[#allocation5 + $0x40] sm:$0xff] }
 0xa03   :  { %4160 = vmatprep.mubr.f32.mxu0 %v2084_v15  ;;  %3756 = vmatpush3.msra.mxu0 %v5931_v25  ;;  %v4410_v15 = vld [vmem:[#allocation5 + $0x58] sm:$0xff]  ;;  %v4411_v16 = vld [vmem:[#allocation5 + $0x50] sm:$0xff] }
 0xa04   :  { %v4117_v22 = vpop.f32.mrf.mxu0  ;;  %4161 = vmatmul.mubr.f32.gmra.mxu0 %v2157_v13  ;;  %3757 = vmatprep.subr.mxu0 %v5932_v28  ;;  %v4415_v25 = vld [vmem:[#allocation5 + $0x30] sm:$0xff]  ;;  %v4416_v28 = vld [vmem:[#allocation5 + $0x28] sm:$0xff] }
 0xa05   :  { %3758 = vmatpush3.msra.mxu0 %v5933_v31  ;;  %v4414_v22 = vld [vmem:[#allocation5 + $0x38] sm:$0xff]  ;;  %v4417_v31 = vld [vmem:[#allocation5 + $0x20] sm:$0xff] }
 0xa06   :  { %3759 = vmatprep.subr.mxu0 %v5934_v33  ;;  %v4418_v33 = vld [vmem:[#allocation5 + $0x18] sm:$0xff] }
 0xa07   :  { %3760 = vmatpush3.msra.mxu0 %v5935_v36  ;;  %v4419_v36 = vld [vmem:[#allocation5 + $0x10] sm:$0xff] }
 0xa08   :  { %3761 = vmatprep.subr.mxu0 %v5936_v39  ;;  %v4420_v39 = vld [vmem:[#allocation5 + $0x8] sm:$0xff] }
 0xa09   :  { %3762 = vmatpush3.msra.mxu0 %v5937_v43  ;;  %v4421_v43 = vld [vmem:[#allocation5] sm:$0xff] }
 0xa0a   :  { %3763 = vmatprep.subr.mxu0 %v5938_v14 }
 0xa0b   :  { %3764 = vmatpush3.msra.mxu0 %v5939_v58  ;;  %v5955_v58 = vld [vmem:[#allocation83_spill] sm:$0xff] }
 0xa0c   :  { %3765 = vmatprep.subr.mxu0 %v5940_v47 }
 0xa0d   :  { %3766 = vmatpush3.msra.mxu0 %v5941_v20 }
 0xa0e   :  { %3767 = vmatprep.subr.mxu0 %v5942_v44 }
 0xa0f   :  { %3768 = vmatpush3.msra.mxu0 %v5943_v7  ;;  %v5956_v7 = vld [vmem:[#allocation84_spill] sm:$0xff] }
 0xa10   :  { %3769 = vmatprep.subr.mxu0 %v5944_v62 }
 0xa11   :  { %3770 = vmatpush3.msra.mxu0 %v5945_v26 }
 0xa12   :  { %3771 = vmatprep.subr.mxu0 %v5946_v5 }
 0xa13   :  { %3772 = vmatpush3.msra.mxu0 %v5947_v17 }
 0xa14   :  { %3773 = vmatprep.subr.mxu0 %v5948_v61 }
 0xa15   :  { %3774 = vmatpush3.msra.mxu0 %v5949_v56 }
 0xa16   :  { %3775 = vmatprep.subr.mxu0 %v5950_v1 }
 0xa17   :  { %3776 = vmatpush3.msra.mxu0 %v5951_v41 }
 0xa18   :  { %3777 = vmatprep.subr.mxu0 %v5952_v6 }
 0xa19   :  { %3778 = vmatpush3.msra.mxu0 %v5953_v3 }
 0xa1a   :  { %4222 = vmatprep.subr.mxu0 %v5854_v57 }
 0xaba   :  { %v4159_v46 = vpop.f32.mrf.mxu0 }
 0xabb   :  { %v2233_v38 = vadd.f32 %v4159_v46, %v5954_v49 }
 0xabc   :  { %v2227_v53 = vpop.f32.mrf.mxu0 }
 0xabd   :  { %v2228_v11 = vadd.f32 %v5954_v49, %v2227_v53 }
 0xabf   :  { %2311 = vmatmul.mubr.f32.vlgmr.msra.gmra.mxu1 %v2228_v11 }
 0xac0   :  { %2316 = vmatprep.mubr.f32.mxu1 %v5854_v57  ;;  %4164 = vmatpush3.msra.mxu1 %v4406_v59 }
 0xac1   :  { %4165 = vmatprep.subr.mxu1 %v4407_v0 }
 0xac2   :  { %4166 = vmatpush3.msra.mxu1 %v4407_v0 }
 0xac3   :  { %2317 = vmatmul.mubr.f32.gmra.mxu1 %v2233_v38  ;;  %4167 = vmatprep.subr.mxu1 %v4408_v37 }
 0xac4   :  { %v4162_v32 = vpop.f32.mrf.mxu0  ;;  %2322 = vmatprep.mubr.f32.mxu1 %v5854_v57  ;;  %4168 = vmatpush3.msra.mxu1 %v4408_v37 }
 0xac5   :  { %4169 = vmatprep.subr.mxu1 %v4409_v8  ;;  %v2243_v59 = vadd.f32 %v4162_v32, %v5954_v49 }
 0xac6   :  { %v2237_v13 = vpop.f32.mrf.mxu0  ;;  %4170 = vmatpush3.msra.mxu1 %v4409_v8 }
 0xac7   :  { %v2238_v10 = vadd.f32 %v5954_v49, %v2237_v13  ;;  %4171 = vmatprep.subr.mxu1 %v4410_v15 }
 0xac8   :  { %4172 = vmatpush3.msra.mxu1 %v4410_v15 }
 0xac9   :  { %2323 = vmatmul.mubr.f32.gmra.mxu1 %v2238_v10  ;;  %4173 = vmatprep.subr.mxu1 %v4411_v16 }
 0xaca   :  { %2328 = vmatprep.mubr.f32.mxu1 %v5854_v57  ;;  %4174 = vmatpush3.msra.mxu1 %v4411_v16 }
 0xacb   :  { %4175 = vmatprep.subr.mxu1 %v4412_v19 }
 0xacc   :  { %4176 = vmatpush3.msra.mxu1 %v4412_v19 }
 0xacd   :  { %2329 = vmatmul.mubr.f32.gmra.mxu1 %v2243_v59  ;;  %4177 = vmatprep.subr.mxu1 %v4413_v42 }
 0xace   :  { %4178 = vmatpush3.msra.mxu1 %v4413_v42 }
 0xacf   :  { %4179 = vmatprep.subr.mxu1 %v4414_v22 }
 0xad0   :  { %4180 = vmatpush3.msra.mxu1 %v4414_v22 }
 0xad1   :  { %4181 = vmatprep.subr.mxu1 %v4415_v25 }
 0xad2   :  { %4182 = vmatpush3.msra.mxu1 %v4415_v25 }
 0xad3   :  { %4183 = vmatprep.subr.mxu1 %v4416_v28 }
 0xad4   :  { %4184 = vmatpush3.msra.mxu1 %v4416_v28 }
 0xad5   :  { %4185 = vmatprep.subr.mxu1 %v4417_v31 }
 0xad6   :  { %4186 = vmatpush3.msra.mxu1 %v4417_v31 }
 0xad7   :  { %4187 = vmatprep.subr.mxu1 %v4418_v33 }
 0xad8   :  { %4188 = vmatpush3.msra.mxu1 %v4418_v33 }
 0xad9   :  { %4189 = vmatprep.subr.mxu1 %v4419_v36 }
 0xada   :  { %4190 = vmatpush3.msra.mxu1 %v4419_v36 }
 0xadb   :  { %4191 = vmatprep.subr.mxu1 %v4420_v39 }
 0xadc   :  { %4192 = vmatpush3.msra.mxu1 %v4420_v39 }
 0xadd   :  { %4193 = vmatprep.subr.mxu1 %v4421_v43 }
 0xade   :  { %4194 = vmatpush3.msra.mxu1 %v4421_v43 }
 0xadf   :  { %4201 = vmatprep.subr.mxu1 %v5854_v57 }
 0xb7f   :  { %v2312_v14 = vpop.f32.mrf.mxu1 }
 0xb80   :  { %v5509_v47 = vadd.f32 %v2312_v14, %v5955_v58 }
 0xb81   :  { %v2314_v20 = vpop.f32.mrf.mxu1 }
 0xb82   :  { %v2335_v44 = vmul.f32 %v5509_v47, %v5509_v47  ;;  %v5514_v62 = vadd.f32 %v2314_v20, %v5956_v7 }
 0xb83   :  { %v2318_v26 = vpop.f32.mrf.mxu1 }
 0xb84   :  { %v2343_v5 = vmul.f32 %v2335_v44, %v5509_v47  ;;  %v2336_v17 = vmul.f32 %v5514_v62, %v5514_v62  ;;  %v5520_v61 = vadd.f32 %v2318_v26, %v5955_v58 }
 0xb85   :  { %v2320_v56 = vpop.f32.mrf.mxu1 }
 0xb86   :  { %v2351_v1 = vmul.f32 0.044715, %v2343_v5  ;;  %v2344_v41 = vmul.f32 %v2336_v17, %v5514_v62  ;;  %v2337_v6 = vmul.f32 %v5520_v61, %v5520_v61  ;;  %v5526_v3 = vadd.f32 %v2320_v56, %v5956_v7 }
 0xb88   :  { %v2359_v46 = vadd.f32 %v2351_v1, %v5509_v47  ;;  %v2352_v53 = vmul.f32 0.044715, %v2344_v41  ;;  %v2345_v49 = vmul.f32 %v2337_v6, %v5520_v61  ;;  %v2338_v11 = vmul.f32 %v5526_v3, %v5526_v3 }
 0xb89   :  { %v2324_v38 = vpop.f32.mrf.mxu1 }
 0xb8a   :  { %v5533_v0 = vadd.f32 %v2324_v38, %v5955_v58  ;;  %v2367_v32 = vmul.f32 0.7978846, %v2359_v46  ;;  %v2360_v37 = vadd.f32 %v2352_v53, %v5514_v62  ;;  %v2353_v13 = vmul.f32 0.044715, %v2345_v49 }
 0xb8b   :  { %v2346_v8 = vmul.f32 %v2338_v11, %v5526_v3  ;;  %v2326_v10 = vpop.f32.mrf.mxu1 }
 0xb8c   :  { %v2339_v15 = vmul.f32 %v5533_v0, %v5533_v0  ;;  %v5540_v59 = vadd.f32 %v2326_v10, %v5956_v7  ;;  %4356 = vtanh.f32 %v2367_v32  ;;  %v2368_v16 = vmul.f32 0.7978846, %v2360_v37 }
 0xb8d   :  { %v2361_v19 = vadd.f32 %v2353_v13, %v5520_v61  ;;  %v2354_v42 = vmul.f32 0.044715, %v2346_v8  ;;  %v2330_v22 = vpop.f32.mrf.mxu1 }
 0xb8e   :  { %v2347_v25 = vmul.f32 %v2339_v15, %v5533_v0  ;;  %v2340_v28 = vmul.f32 %v5540_v59, %v5540_v59  ;;  %v5547_v31 = vadd.f32 %v2330_v22, %v5955_v58  ;;  %4358 = vtanh.f32 %v2368_v16 }
 0xb8f   :  { %v2369_v33 = vmul.f32 0.7978846, %v2361_v19  ;;  %v2362_v36 = vadd.f32 %v2354_v42, %v5526_v3  ;;  %v2332_v39 = vpop.f32.mrf.mxu1 }
 0xb90   :  { %v2355_v43 = vmul.f32 0.044715, %v2347_v25  ;;  %v2348_v14 = vmul.f32 %v2340_v28, %v5540_v59  ;;  %v2341_v20 = vmul.f32 %v5547_v31, %v5547_v31  ;;  %v2333_v44 = vadd.f32 %v2332_v39, %v5956_v7 }
 0xb91   :  { %4360 = vtanh.f32 %v2369_v33  ;;  %v2370_v26 = vmul.f32 0.7978846, %v2362_v36 }
 0xb92   :  { %v2363_v5 = vadd.f32 %v2355_v43, %v5533_v0  ;;  %v2356_v17 = vmul.f32 0.044715, %v2348_v14  ;;  %v2349_v56 = vmul.f32 %v2341_v20, %v5547_v31  ;;  %v2342_v1 = vmul.f32 %v2333_v44, %v2333_v44 }
 0xb93   :  { %4362 = vtanh.f32 %v2370_v26 }
 0xb94   :  { %v2371_v41 = vmul.f32 0.7978846, %v2363_v5  ;;  %v2364_v6 = vadd.f32 %v2356_v17, %v5540_v59  ;;  %v2357_v46 = vmul.f32 0.044715, %v2349_v56  ;;  %v2350_v53 = vmul.f32 %v2342_v1, %v2333_v44 }
 0xb96   :  { %4364 = vtanh.f32 %v2371_v41  ;;  %v2372_v49 = vmul.f32 0.7978846, %v2364_v6  ;;  %v2365_v11 = vadd.f32 %v2357_v46, %v5547_v31  ;;  %v2358_v38 = vmul.f32 0.044715, %v2350_v53 }
 0xb98   :  { %4366 = vtanh.f32 %v2372_v49  ;;  %v2373_v32 = vmul.f32 0.7978846, %v2365_v11  ;;  %v2366_v37 = vadd.f32 %v2358_v38, %v2333_v44 }
 0xb99   :  { %v4357_v13 = vpop.eup %4356 }
 0xb9a   :  { %4368 = vtanh.f32 %v2373_v32  ;;  %v2374_v8 = vmul.f32 0.7978846, %v2366_v37  ;;  %v2383_v10 = vadd.f32 1.0, %v4357_v13 }
 0xb9b   :  { %v4359_v15 = vpop.eup %4358 }
 0xb9c   :  { %4370 = vtanh.f32 %v2374_v8  ;;  %v2384_v16 = vadd.f32 1.0, %v4359_v15  ;;  %v2391_v42 = vmul.f32 0.5, %v2383_v10 }
 0xb9e   :  { %v4361_v19 = vpop.eup %4360  ;;  %v2392_v22 = vmul.f32 0.5, %v2384_v16  ;;  %v2399_v39 = vmul.f32 %v2391_v42, %v5509_v47 }
 0xb9f   :  { %v2385_v25 = vadd.f32 1.0, %v4361_v19 }
 0xba0   :  { %v4363_v28 = vpop.eup %4362  ;;  %v2400_v33 = vmul.f32 %v2392_v22, %v5514_v62 }
 0xba1   :  { %v2386_v36 = vadd.f32 1.0, %v4363_v28  ;;  %v2393_v43 = vmul.f32 0.5, %v2385_v25 }
 0xba2   :  { %2471 = vmatprep.mubr.f32.mxu0 %v2400_v33 }
 0xba3   :  { %v4365_v14 = vpop.eup %4364  ;;  %v2394_v20 = vmul.f32 0.5, %v2386_v36  ;;  %2472 = vmatmul.mubr.f32.vlgmr.msra.gmra.mxu0 %v2399_v39  ;;  %v2401_v56 = vmul.f32 %v2393_v43, %v5520_v61 }
 0xba4   :  { %v2387_v26 = vadd.f32 1.0, %v4365_v14  ;;  %4223 = vmatpush3.xpose.msra.mxu0 %v4894_v50 }
 0xba5   :  { %v4367_v5 = vpop.eup %4366  ;;  %v2402_v17 = vmul.f32 %v2394_v20, %v5526_v3  ;;  %4224 = vmatprep.subr.mxu0 %v5854_v57 }
 0xba6   :  { %v2388_v1 = vadd.f32 1.0, %v4367_v5  ;;  %v2395_v41 = vmul.f32 0.5, %v2387_v26 }
 0xba7   :  { %v4369_v62 = vpop.eup %4368  ;;  %2476 = vmatprep.mubr.f32.mxu0 %v2402_v17 }
 0xba8   :  { %2477 = vmatmul.mubr.f32.gmra.mxu0 %v2401_v56  ;;  %v2396_v47 = vmul.f32 0.5, %v2388_v1  ;;  %v2389_v6 = vadd.f32 1.0, %v4369_v62  ;;  %v2403_v50 = vmul.f32 %v2395_v41, %v5533_v0 }
 0xba9   :  { %v4371_v46 = vpop.eup %4370  ;;  %4225 = vmatpush3.xpose.msra.mxu0 %v4903_v52 }
 0xbaa   :  { %v2404_v53 = vmul.f32 %v2396_v47, %v5540_v59  ;;  %v2390_v49 = vadd.f32 1.0, %v4371_v46  ;;  %4243 = vmatprep.subr.mxu0 %v5854_v57  ;;  %v2397_v3 = vmul.f32 0.5, %v2389_v6 }
 0xbac   :  { %2481 = vmatprep.mubr.f32.mxu0 %v2404_v53  ;;  %v2398_v61 = vmul.f32 0.5, %v2390_v49  ;;  %v2405_v38 = vmul.f32 %v2397_v3, %v5547_v31 }
 0xbad   :  { %2482 = vmatmul.mubr.f32.gmra.mxu0 %v2403_v50 }
 0xbae   :  { %v2406_v11 = vmul.f32 %v2398_v61, %v2333_v44 }
 0xbb0   :  { %2486 = vmatprep.mubr.f32.mxu0 %v2406_v11 }
 0xbb1   :  { %2487 = vmatmul.mubr.f32.gmra.mxu0 %v2405_v38 }
 0xbb2   :  { %4226 = vmatprep.mubr.msk.f32.mxu0 %vm4664_vm0, %v5854_v57 }
 0xc63   :  { %v3779_v52 = vpop.f32.mrf.mxu0 }
 0xc65   :  { %v3780_v32 = vpop.f32.mrf.mxu0 }
 0xc66   :  { %v3781_v59 = vadd.f32 %v3780_v32, %v3779_v52 }
 0xc68   :  { %v3782_v37 = vpop.f32.mrf.mxu0  ;;  %v2474_v13 = vadd.f32 %v3781_v59, %v5321_v29 }
 0xc6a   :  { %v3783_v8 = vpop.f32.mrf.mxu0  ;;  %v5573_v10 = vadd.f32 %v2474_v13, %v5324_v9 }
 0xc6b   :  { %v3784_v0 = vadd.f32 %v3783_v8, %v3782_v37 }
 0xc6c   :  { %4195 = vmatprep.mubr.f32.mxu1 %v5573_v10 }
 0xc6d   :  { %v2479_v44 = vadd.f32 %v3784_v0, %v5321_v29  ;;  %v3785_v31 = vpop.f32.mrf.mxu0 }
 0xc6f   :  { %v5578_v15 = vadd.f32 %v2479_v44, %v5328_v23  ;;  %v3786_v16 = vpop.f32.mrf.mxu0 }
 0xc70   :  { %v3787_v19 = vadd.f32 %v3786_v16, %v3785_v31 }
 0xc71   :  { %4196 = vmatmul.mubr.f32.vlgmr.msra.gmra.mxu1 %v5578_v15  ;;  %v3788_v42 = vpop.f32.mrf.mxu0 }
 0xc72   :  { %v2484_v22 = vadd.f32 %v3787_v19, %v5321_v29  ;;  %4202 = vmatpush3.xpose.msra.mxu1 %v4847_v4 }
 0xc73   :  { %v3789_v25 = vpop.f32.mrf.mxu0  ;;  %4203 = vmatprep.subr.mxu1 %v5854_v57 }
 0xc74   :  { %v3790_v9 = vadd.f32 %v3789_v25, %v3788_v42  ;;  %v5585_v28 = vadd.f32 %v2484_v22, %v5336_v2 }
 0xc76   :  { %v2489_v33 = vadd.f32 %v3790_v9, %v5321_v29  ;;  %4204 = vmatpush3.xpose.msra.mxu1 %v4854_v12  ;;  %4198 = vmatprep.mubr.f32.mxu1 %v5585_v28 }
 0xc77   :  { %4208 = vmatprep.subr.mxu1 %v5854_v57 }
 0xc78   :  { %v5592_v23 = vadd.f32 %v2489_v33, %v5340_v63 }
 0xc7a   :  { %4199 = vmatmul.mubr.f32.gmra.mxu1 %v5592_v23 }
 0xc7b   :  { %4205 = vmatprep.mubr.msk.f32.mxu1 %vm4664_vm0, %v5854_v57 }
 0xd31   :  { %v4197_v4 = vpop.f32.mrf.mxu1 }
 0xd32   :  { %v2568_v63 = vadd.f32 %v5348_v60, %v4197_v4 }
 0xd33   :  { %v2562_v36 = vpop.f32.mrf.mxu1 }
 0xd34   :  { %v2563_v2 = vadd.f32 %v5348_v60, %v2562_v36 }
 0xd36   :  { %4206 = vmatmul.mubr.f32.vlgmr.msra.gmra.mxu1 %v2563_v2  ;;  %v4423_v2 = vld [vmem:[#allocation10 + $0xf0] sm:$0xff] }
 0xd37   :  { %4209 = vmatpush3.xpose.msra.mxu1 %v4865_v21  ;;  %4212 = vmatprep.mubr.msk.f32.mxu1 %vm4664_vm0, %v5854_v57 }
 0xd38   :  { %4210 = vmatprep.subr.mxu1 %v5854_v57 }
 0xd3a   :  { %v4200_v12 = vpop.f32.mrf.mxu1 }
 0xd3b   :  { %4211 = vmatpush3.xpose.msra.mxu1 %v4874_v27  ;;  %v2578_v29 = vadd.f32 %v5348_v60, %v4200_v12 }
 0xd3c   :  { %4215 = vmatprep.subr.mxu1 %v5854_v57  ;;  %v2572_v21 = vpop.f32.mrf.mxu1 }
 0xd3d   :  { %4227 = vmatmul.mubr.f32.vlgmr.msra.gmra.mxu0 %v2578_v29  ;;  %v2573_v27 = vadd.f32 %v5348_v60, %v2572_v21  ;;  %v4424_v29 = vld [vmem:[#allocation10 + $0xe8] sm:$0xff]  ;;  %v4428_v21 = vld [vmem:[#allocation8 + $0x70] sm:$0xff] }
 0xd3e   :  { %4213 = vmatmul.mubr.f32.vlgmr.msra.gmra.mxu1 %v2568_v63  ;;  %4244 = vmatpush3.msra.mxu0 %v4912_v54  ;;  %v4426_v63 = vld [vmem:[#allocation10 + $0xd8] sm:$0xff] }
 0xd3f   :  { %4216 = vmatpush3.xpose.msra.mxu1 %v4878_v34  ;;  %4245 = vmatprep.subr.mxu0 %v5854_v57 }
 0xd40   :  { %4246 = vmatpush3.msra.mxu0 %v4915_v55  ;;  %4217 = vmatprep.subr.mxu1 %v5854_v57 }
 0xd41   :  { %4219 = vmatprep.mubr.msk.f32.mxu1 %vm4664_vm0, %v5854_v57  ;;  %4247 = vmatprep.mubr.msk.f32.mxu0 %vm4664_vm0, %v5854_v57 }
 0xd42   :  { %4257 = vmatprep.subr.mxu0 %v5405_v35 }
 0xd43   :  { %4218 = vmatpush3.xpose.msra.mxu1 %v4884_v40 }
 0xd44   :  { %4229 = vmatprep.subr.mxu1 %v5854_v57 }
 0xd46   :  { %4220 = vmatmul.mubr.f32.vlgmr.msra.gmra.mxu1 %v2573_v27  ;;  %v4429_v27 = vld [vmem:[#allocation10 + $0xc8] sm:$0xff] }
 0xd47   :  { %4230 = vmatpush3.msra.mxu1 %v4892_v48  ;;  %4233 = vmatprep.mubr.msk.f32.mxu1 %vm4664_vm0, %v5854_v57 }
 0xd48   :  { %4231 = vmatprep.subr.mxu1 %v5854_v57 }
 0xd49   :  { %4232 = vmatpush3.msra.mxu1 %v4897_v51 }
 0xd4a   :  { %4236 = vmatprep.subr.mxu1 %v5854_v57 }
 0xdf6   :  { %v2647_v34 = vpop.f32.mrf.mxu1 }
 0xdf7   :  { %v2861_v54 = vmul.f32 0.088388346, %v2647_v34  ;;  %v4430_v34 = vld [vmem:[#allocation10 + $0xc0] sm:$0xff] }
 0xdf8   :  { %v4207_v55 = vpop.f32.mrf.mxu1 }
 0xdf9   :  { %v2865_v40 = vsel %vm761_vm1, %v2861_v54, -inf  ;;  %v4432_v55 = vld [vmem:[#allocation10 + $0xb8] sm:$0xff] }
 0xdfa   :  { %2866 = vmax.xlane.f32.xlu0 %v2865_v40  ;;  %v4433_v40 = vld [vmem:[#allocation10 + $0xb0] sm:$0xff] }
 0xdfd   :  { %v2857_v60 = vpop.f32.mrf.mxu0 }
 0xdfe   :  { %v2717_v39 = vpop.f32.mrf.mxu1  ;;  %v2864_v20 = vmul.f32 0.088388346, %v2857_v60  ;;  %v4434_v60 = vld [vmem:[#allocation8 + $0x60] sm:$0xff] }
 0xdff   :  { %v2862_v43 = vmul.f32 0.088388346, %v2717_v39  ;;  %v4228_v14 = vpop.f32.mrf.mxu0  ;;  %v4435_v39 = vld [vmem:[#allocation10 + $0xa8] sm:$0xff] }
 0xe00   :  { %v4214_v48 = vpop.f32.mrf.mxu1  ;;  %v2874_v5 = vsel %vm761_vm1, %v2864_v20, -inf  ;;  %v4438_v14 = vld [vmem:[#allocation10 + $0x98] sm:$0xff] }
 0xe01   :  { %v2868_v26 = vsel %vm761_vm1, %v2862_v43, -inf  ;;  %v4439_v48 = vld [vmem:[#allocation10 + $0x90] sm:$0xff] }
 0xe02   :  { %2869 = vmax.xlane.f32.xlu1 %v2868_v26  ;;  %v4441_v26 = vld [vmem:[#allocation10 + $0x88] sm:$0xff] }
 0xe06   :  { %2875 = vmax.xlane.f32.xlu1 %v2874_v5  ;;  %v2787_v51 = vpop.f32.mrf.mxu1  ;;  %v4442_v5 = vld [vmem:[#allocation10 + $0x80] sm:$0xff] }
 0xe07   :  { %v2863_v17 = vmul.f32 0.088388346, %v2787_v51  ;;  %v4443_v51 = vld [vmem:[#allocation8 + $0x48] sm:$0xff] }
 0xe08   :  { %v4221_v56 = vpop.f32.mrf.mxu1 }
 0xe09   :  { %v2871_v1 = vsel %vm761_vm1, %v2863_v17, -inf  ;;  %v4445_v56 = vld [vmem:[#allocation10 + $0x70] sm:$0xff] }
 0xe0a   :  { %2872 = vmax.xlane.f32.xlu0 %v2871_v1  ;;  %v4446_v1 = vld [vmem:[#allocation8 + $0x40] sm:$0xff] }
 0xe83   :  { %v2867_v62 = vpop.xlane.xlu0 %2866 }
 0xe84   :  { %v2877_v41 = vsub.f32 %v2861_v54, %v2867_v62  ;;  %v4431_v54 = vld [vmem:[#allocation8 + $0x68] sm:$0xff] }
 0xe85   :  { %v4447_v62 = vld [vmem:[#allocation10 + $0x68] sm:$0xff] }
 0xe86   :  { %v2881_v47 = vmul.f32 1.442695, %v2877_v41  ;;  %v4448_v41 = vld [vmem:[#allocation10 + $0x60] sm:$0xff] }
 0xe88   :  { %4372 = vpow2.f32 %v2881_v47  ;;  %v4449_v47 = vld [vmem:[#allocation8 + $0x38] sm:$0xff] }
 0xe8b   :  { %v2870_v6 = vpop.xlane.xlu1 %2869 }
 0xe8c   :  { %v2878_v46 = vsub.f32 %v2862_v43, %v2870_v6  ;;  %v4437_v43 = vld [vmem:[#allocation8 + $0x58] sm:$0xff] }
 0xe8d   :  { %v4450_v6 = vld [vmem:[#allocation10 + $0x58] sm:$0xff] }
 0xe8e   :  { %v2883_v53 = vmul.f32 1.442695, %v2878_v46  ;;  %v4451_v46 = vld [vmem:[#allocation10 + $0x50] sm:$0xff] }
 0xe8f   :  { %v2876_v49 = vpop.xlane.xlu1 %2875 }
 0xe90   :  { %4374 = vpow2.f32 %v2883_v53  ;;  %v2880_v50 = vsub.f32 %v2864_v20, %v2876_v49  ;;  %v4440_v20 = vld [vmem:[#allocation8 + $0x50] sm:$0xff]  ;;  %v4453_v49 = vld [vmem:[#allocation10 + $0x48] sm:$0xff] }
 0xe91   :  { %v4452_v53 = vld [vmem:[#allocation8 + $0x30] sm:$0xff] }
 0xe92   :  { %v2887_v3 = vmul.f32 1.442695, %v2880_v50  ;;  %v4454_v50 = vld [vmem:[#allocation10 + $0x40] sm:$0xff] }
 0xe93   :  { %v2873_v61 = vpop.xlane.xlu0 %2872 }
 0xe94   :  { %4376 = vpow2.f32 %v2887_v3  ;;  %v2879_v11 = vsub.f32 %v2863_v17, %v2873_v61  ;;  %v4444_v17 = vld [vmem:[#allocation10 + $0x78] sm:$0xff]  ;;  %v4455_v3 = vld [vmem:[#allocation8 + $0x28] sm:$0xff] }
 0xe95   :  { %v4373_v38 = vpop.eup %4372  ;;  %v4456_v61 = vld [vmem:[#allocation10 + $0x38] sm:$0xff] }
 0xe96   :  { %v2885_v52 = vmul.f32 1.442695, %v2879_v11  ;;  %v2889_v32 = vsel %vm761_vm1, %v4373_v38, 0.0  ;;  %v4457_v11 = vld [vmem:[#allocation10 + $0x30] sm:$0xff] }
 0xe97   :  { %2890 = vadd.xlane.f32.xlu0 %v2889_v32  ;;  %v4460_v32 = vld [vmem:[#allocation10 + $0x20] sm:$0xff] }
 0xe98   :  { %4378 = vpow2.f32 %v2885_v52  ;;  %v4459_v52 = vld [vmem:[#allocation10 + $0x28] sm:$0xff] }
 0xe9d   :  { %v4375_v59 = vpop.eup %4374 }
 0xe9e   :  { %v2892_v37 = vsel %vm761_vm1, %v4375_v59, 0.0 }
 0xe9f   :  { %2893 = vadd.xlane.f32.xlu1 %v2892_v37  ;;  %v4462_v37 = vld [vmem:[#allocation10 + $0x18] sm:$0xff] }
 0xea1   :  { %v4377_v13 = vpop.eup %4376 }
 0xea2   :  { %v2898_v8 = vsel %vm761_vm1, %v4377_v13, 0.0 }
 0xea3   :  { %2899 = vadd.xlane.f32.xlu1 %v2898_v8  ;;  %v4464_v8 = vld [vmem:[#allocation8 + $0x10] sm:$0xff] }
 0xea5   :  { %v4379_v0 = vpop.eup %4378 }
 0xea6   :  { %v2895_v44 = vsel %vm761_vm1, %v4379_v0, 0.0 }
 0xea7   :  { %2896 = vadd.xlane.f32.xlu0 %v2895_v44  ;;  %v4466_v44 = vld [vmem:[#allocation10] sm:$0xff] }
 0xf20   :  { %v2891_v31 = vpop.xlane.xlu0 %2890 }
 0xf21   :  { %4380 = vrcp.f32 %v2891_v31  ;;  %v4467_v31 = vld [vmem:[#allocation8 + $0x8] sm:$0xff] }
 0xf28   :  { %v2894_v16 = vpop.xlane.xlu1 %2893 }
 0xf29   :  { %4382 = vrcp.f32 %v2894_v16  ;;  %v4468_v16 = vld [vmem:[#allocation8] sm:$0xff] }
 0xf2c   :  { %v2900_v19 = vpop.xlane.xlu1 %2899 }
 0xf2d   :  { %4384 = vrcp.f32 %v2900_v19  ;;  %v4469_v19 = vld [vmem:[#allocation11 + $0xf8] sm:$0xff] }
 0xf2e   :  { %v4381_v42 = vpop.eup %4380 }
 0xf2f   :  { %v2905_v22 = vmul.f32 %v4381_v42, %v4373_v38  ;;  %v4458_v38 = vld [vmem:[#allocation8 + $0x20] sm:$0xff] }
 0xf30   :  { %v2897_v25 = vpop.xlane.xlu0 %2896 }
 0xf31   :  { %4386 = vrcp.f32 %v2897_v25  ;;  %4234 = vmatmul.mubr.msk.f32.vlgmr.msra.gmra.mxu1 %vm761_vm1, %v2905_v22 }
 0xf32   :  { %4237 = vmatpush3.msra.mxu1 %v4868_v24  ;;  %4240 = vmatprep.mubr.msk.f32.mxu1 %vm4664_vm0, %v5854_v57 }
 0xf33   :  { %4238 = vmatprep.subr.mxu1 %v5854_v57 }
 0xf34   :  { %4239 = vmatpush3.msra.mxu1 %v4861_v18  ;;  %v4422_v18 = vld [vmem:[#allocation10 + $0xf8] sm:$0xff] }
 0xf35   :  { %4250 = vmatprep.subr.mxu1 %v5854_v57 }
 0xf36   :  { %v4383_v9 = vpop.eup %4382 }
 0xf37   :  { %v2906_v33 = vmul.f32 %v4383_v9, %v4375_v59  ;;  %v4461_v59 = vld [vmem:[#allocation8 + $0x18] sm:$0xff] }
 0xf39   :  { %4241 = vmatmul.mubr.msk.f32.vlgmr.msra.gmra.mxu1 %vm761_vm1, %v2906_v33  ;;  %v4470_v33 = vld [vmem:[#allocation11 + $0x78] sm:$0xff] }
 0xf3a   :  { %v4385_v4 = vpop.eup %4384  ;;  %4251 = vmatpush3.msra.mxu1 %v4941_v30  ;;  %4254 = vmatprep.mubr.msk.f32.mxu1 %vm4664_vm0, %v5854_v57  ;;  %v4425_v30 = vld [vmem:[#allocation10 + $0xe0] sm:$0xff] }
 0xf3b   :  { %4252 = vmatprep.subr.mxu1 %v5854_v57  ;;  %v2908_v24 = vmul.f32 %v4385_v4, %v4377_v13  ;;  %v4463_v13 = vld [vmem:[#allocation10 + $0x10] sm:$0xff] }
 0xf3c   :  { %4253 = vmatpush3.msra.mxu1 %v4887_v45  ;;  %v4427_v45 = vld [vmem:[#allocation10 + $0xd0] sm:$0xff] }
 0xf3d   :  { %4255 = vmatmul.mubr.msk.f32.vlgmr.msra.gmra.mxu1 %vm761_vm1, %v2908_v24  ;;  %3286 = vmatprep.subr.mxu1 %v4422_v18  ;;  %v4471_v4 = vld [vmem:[#allocation11 + $0xf0] sm:$0xff] }
 0xf3e   :  { %v4387_v36 = vpop.eup %4386  ;;  %3287 = vmatpush1.msra.mxu1 %v4423_v2  ;;  %3350 = vmatprep.mubr.f32.mxu1 %v5854_v57  ;;  %v4472_v18 = vld [vmem:[#allocation11 + $0x70] sm:$0xff] }
 0xf3f   :  { %v2907_v12 = vmul.f32 %v4387_v36, %v4379_v0  ;;  %3288 = vmatprep.subr.mxu1 %v4424_v29  ;;  %v4465_v0 = vld [vmem:[#allocation10 + $0x8] sm:$0xff]  ;;  %v4475_v29 = vld [vmem:[#allocation11 + $0xe0] sm:$0xff] }
 0xf40   :  { %3289 = vmatpush1.msra.mxu1 %v4425_v30  ;;  %v4473_v36 = vld [vmem:[#allocation11 + $0xe8] sm:$0xff] }
 0xf41   :  { %4248 = vmatmul.mubr.msk.f32.vlgmr.msra.gmra.mxu0 %vm761_vm1, %v2907_v12  ;;  %3290 = vmatprep.subr.mxu1 %v4426_v63  ;;  %v4474_v12 = vld [vmem:[#allocation11 + $0x68] sm:$0xff]  ;;  %v4476_v63 = vld [vmem:[#allocation11 + $0x60] sm:$0xff] }
 0xf42   :  { %4258 = vmatpush3.msra.mxu0 %v5405_v35  ;;  %3291 = vmatpush1.msra.mxu1 %v4427_v45  ;;  %v4436_v35 = vld [vmem:[#allocation10 + $0xa0] sm:$0xff]  ;;  %v4477_v45 = vld [vmem:[#allocation11 + $0xd8] sm:$0xff] }
 0xf43   :  { %4259 = vmatprep.subr.mxu0 %v4428_v21  ;;  %3292 = vmatprep.subr.mxu1 %v4429_v27  ;;  %v4478_v27 = vld [vmem:[#allocation11 + $0x58] sm:$0xff] }
 0xf44   :  { %4260 = vmatpush3.msra.mxu0 %v4428_v21  ;;  %3293 = vmatpush1.msra.mxu1 %v4430_v34  ;;  %v4479_v34 = vld [vmem:[#allocation11 + $0xd0] sm:$0xff] }
 0xf45   :  { %4261 = vmatprep.subr.mxu0 %v4431_v54  ;;  %3294 = vmatprep.subr.mxu1 %v4432_v55  ;;  %v4481_v55 = vld [vmem:[#allocation11 + $0xc8] sm:$0xff] }
 0xf46   :  { %4262 = vmatpush3.msra.mxu0 %v4431_v54  ;;  %3295 = vmatpush1.msra.mxu1 %v4433_v40  ;;  %v4480_v54 = vld [vmem:[#allocation11 + $0x50] sm:$0xff]  ;;  %v4482_v40 = vld [vmem:[#allocation11 + $0x48] sm:$0xff] }
 0xf47   :  { %4263 = vmatprep.subr.mxu0 %v4434_v60  ;;  %3296 = vmatprep.subr.mxu1 %v4435_v39  ;;  %v4484_v39 = vld [vmem:[#allocation11 + $0x40] sm:$0xff] }
 0xf48   :  { %4264 = vmatpush3.msra.mxu0 %v4434_v60  ;;  %3297 = vmatpush1.msra.mxu1 %v4436_v35  ;;  %v4483_v60 = vld [vmem:[#allocation11 + $0xc0] sm:$0xff]  ;;  %v4485_v35 = vld [vmem:[#allocation11 + $0xb8] sm:$0xff] }
 0xf49   :  { %4265 = vmatprep.subr.mxu0 %v4437_v43  ;;  %3298 = vmatprep.subr.mxu1 %v4438_v14  ;;  %v4487_v14 = vld [vmem:[#allocation11 + $0xb0] sm:$0xff] }
 0xf4a   :  { %4266 = vmatpush3.msra.mxu0 %v4437_v43  ;;  %3299 = vmatpush1.msra.mxu1 %v4439_v48  ;;  %v4486_v43 = vld [vmem:[#allocation11 + $0x38] sm:$0xff]  ;;  %v4488_v48 = vld [vmem:[#allocation11 + $0x30] sm:$0xff] }
 0xf4b   :  { %4267 = vmatprep.subr.mxu0 %v4440_v20  ;;  %3300 = vmatprep.subr.mxu1 %v4441_v26  ;;  %v4490_v26 = vld [vmem:[#allocation11 + $0x28] sm:$0xff] }
 0xf4c   :  { %4268 = vmatpush3.msra.mxu0 %v4440_v20  ;;  %3301 = vmatpush1.msra.mxu1 %v4442_v5  ;;  %v4489_v20 = vld [vmem:[#allocation11 + $0xa8] sm:$0xff]  ;;  %v4491_v5 = vld [vmem:[#allocation11 + $0xa0] sm:$0xff] }
 0xf4d   :  { %4269 = vmatprep.subr.mxu0 %v4443_v51  ;;  %3302 = vmatprep.subr.mxu1 %v4444_v17  ;;  %v4493_v17 = vld [vmem:[#allocation11 + $0x98] sm:$0xff] }
 0xf4e   :  { %4270 = vmatpush3.msra.mxu0 %v4443_v51  ;;  %3303 = vmatpush1.msra.mxu1 %v4445_v56  ;;  %v4492_v51 = vld [vmem:[#allocation11 + $0x20] sm:$0xff]  ;;  %v4494_v56 = vld [vmem:[#allocation11 + $0x18] sm:$0xff] }
 0xf4f   :  { %4271 = vmatprep.subr.mxu0 %v4446_v1  ;;  %3304 = vmatprep.subr.mxu1 %v4447_v62  ;;  %v4496_v62 = vld [vmem:[#allocation11 + $0x10] sm:$0xff] }
 0xf50   :  { %4272 = vmatpush3.msra.mxu0 %v4446_v1  ;;  %3305 = vmatpush1.msra.mxu1 %v4448_v41  ;;  %v4495_v1 = vld [vmem:[#allocation11 + $0x90] sm:$0xff]  ;;  %v4497_v41 = vld [vmem:[#allocation11 + $0x88] sm:$0xff] }
 0xf51   :  { %4273 = vmatprep.subr.mxu0 %v4449_v47  ;;  %3306 = vmatprep.subr.mxu1 %v4450_v6  ;;  %v4499_v6 = vld [vmem:[#allocation11 + $0x80] sm:$0xff] }
 0xf52   :  { %4274 = vmatpush3.msra.mxu0 %v4449_v47  ;;  %3307 = vmatpush1.msra.mxu1 %v4451_v46  ;;  %v4498_v47 = vld [vmem:[#allocation11 + $0x8] sm:$0xff]  ;;  %v4500_v46 = vld [vmem:[#allocation11] sm:$0xff] }
 0xf53   :  { %4275 = vmatprep.subr.mxu0 %v4452_v53  ;;  %3308 = vmatprep.subr.mxu1 %v4453_v49 }
 0xf54   :  { %4276 = vmatpush3.msra.mxu0 %v4452_v53  ;;  %3309 = vmatpush1.msra.mxu1 %v4454_v50  ;;  %v4501_v50 = vld [vmem:[%s5732_s6] ss:$0 sm:$0xff] }
 0xf55   :  { %4277 = vmatprep.subr.mxu0 %v4455_v3  ;;  %3310 = vmatprep.subr.mxu1 %v4456_v61 }
 0xf56   :  { %4278 = vmatpush3.msra.mxu0 %v4455_v3  ;;  %3311 = vmatpush1.msra.mxu1 %v4457_v11 }
 0xf57   :  { %4279 = vmatprep.subr.mxu0 %v4458_v38  ;;  %3312 = vmatprep.subr.mxu1 %v4459_v52 }
 0xf58   :  { %4280 = vmatpush3.msra.mxu0 %v4458_v38  ;;  %3313 = vmatpush1.msra.mxu1 %v4460_v32 }
 0xf59   :  { %4281 = vmatprep.subr.mxu0 %v4461_v59  ;;  %3314 = vmatprep.subr.mxu1 %v4462_v37 }
 0xf5a   :  { %4282 = vmatpush3.msra.mxu0 %v4461_v59  ;;  %3315 = vmatpush1.msra.mxu1 %v4463_v13 }
 0xf5b   :  { %4283 = vmatprep.subr.mxu0 %v4464_v8  ;;  %3316 = vmatprep.subr.mxu1 %v4465_v0 }
 0xf5c   :  { %4284 = vmatpush3.msra.mxu0 %v4464_v8  ;;  %3317 = vmatpush1.msra.mxu1 %v4466_v44 }
 0xf5d   :  { %4285 = vmatprep.subr.mxu0 %v4467_v31 }
 0xf5e   :  { %4286 = vmatpush3.msra.mxu0 %v4467_v31 }
 0xf5f   :  { %4287 = vmatprep.subr.mxu0 %v4468_v16 }
 0xf60   :  { %4288 = vmatpush3.msra.mxu0 %v4468_v16 }
 0xf61   :  { %3855 = vmatprep.subr.mxu0 %v4469_v19 }
 0xff1   :  { %v2978_v42 = vpop.f32.mrf.mxu1 }
 0xff2   :  { %4289 = vmatprep.mubr.f32.mxu0 %v2978_v42 }
 0xff3   :  { %v4235_v22 = vpop.f32.mrf.mxu1 }
 0xff9   :  { %v3051_v25 = vpop.f32.mrf.mxu1 }
 0xffa   :  { %4290 = vmatmul.mubr.f32.vlgmr.msra.gmra.mxu0 %v3051_v25 }
 0xffb   :  { %v4242_v9 = vpop.f32.mrf.mxu1  ;;  %3856 = vmatpush3.msra.mxu0 %v4470_v33 }
 0xffc   :  { %3857 = vmatprep.subr.mxu0 %v4471_v4 }
 0xffd   :  { %v3197_v24 = vpop.f32.mrf.mxu1  ;;  %3858 = vmatpush3.msra.mxu0 %v4472_v18 }
 0xffe   :  { %3859 = vmatprep.subr.mxu0 %v4473_v36 }
 0xfff   :  { %v4256_v2 = vpop.f32.mrf.mxu1  ;;  %3860 = vmatpush3.msra.mxu0 %v4474_v12 }
0x1000   :  { %3861 = vmatprep.subr.mxu0 %v4475_v29 }
0x1001   :  { %v3124_v30 = vpop.f32.mrf.mxu0  ;;  %3862 = vmatpush3.msra.mxu0 %v4476_v63 }
0x1002   :  { %4292 = vmatprep.mubr.f32.mxu0 %v3124_v30  ;;  %3863 = vmatprep.subr.mxu0 %v4477_v45 }
0x1003   :  { %v4249_v21 = vpop.f32.mrf.mxu0  ;;  %4293 = vmatmul.mubr.f32.gmra.mxu0 %v3197_v24 }
0x1004   :  { %3864 = vmatpush3.msra.mxu0 %v4478_v27 }
0x1005   :  { %3865 = vmatprep.subr.mxu0 %v4479_v34 }
0x1006   :  { %3866 = vmatpush3.msra.mxu0 %v4480_v54 }
0x1007   :  { %3867 = vmatprep.subr.mxu0 %v4481_v55 }
0x1008   :  { %3868 = vmatpush3.msra.mxu0 %v4482_v40 }
0x1009   :  { %3869 = vmatprep.subr.mxu0 %v4483_v60 }
0x100a   :  { %3870 = vmatpush3.msra.mxu0 %v4484_v39 }
0x100b   :  { %3871 = vmatprep.subr.mxu0 %v4485_v35 }
0x100c   :  { %3872 = vmatpush3.msra.mxu0 %v4486_v43 }
0x100d   :  { %3873 = vmatprep.subr.mxu0 %v4487_v14 }
0x100e   :  { %3874 = vmatpush3.msra.mxu0 %v4488_v48 }
0x100f   :  { %3875 = vmatprep.subr.mxu0 %v4489_v20 }
0x1010   :  { %3876 = vmatpush3.msra.mxu0 %v4490_v26 }
0x1011   :  { %3877 = vmatprep.subr.mxu0 %v4491_v5 }
0x1012   :  { %3878 = vmatpush3.msra.mxu0 %v4492_v51 }
0x1013   :  { %3879 = vmatprep.subr.mxu0 %v4493_v17 }
0x1014   :  { %3880 = vmatpush3.msra.mxu0 %v4494_v56 }
0x1015   :  { %3881 = vmatprep.subr.mxu0 %v4495_v1 }
0x1016   :  { %3882 = vmatpush3.msra.mxu0 %v4496_v62 }
0x1017   :  { %3883 = vmatprep.subr.mxu0 %v4497_v41 }
0x1018   :  { %3884 = vmatpush3.msra.mxu0 %v4498_v47 }
0x1019   :  { %3885 = vmatprep.subr.mxu0 %v4499_v6 }
0x101a   :  { %3886 = vmatpush3.msra.mxu0 %v4500_v46 }
0x10ba   :  { %v4291_v53 = vpop.f32.mrf.mxu0 }
0x10bb   :  { %v3273_v61 = vadd.f32 %v4501_v50, %v4291_v53 }
0x10bc   :  { %v3267_v49 = vpop.f32.mrf.mxu0 }
0x10bd   :  { %v3268_v3 = vadd.f32 %v4501_v50, %v3267_v49 }
0x10bf   :  { %3351 = vmatmul.mubr.f32.vlgmr.msra.gmra.mxu1 %v3268_v3 }
0x10c0   :  { %3356 = vmatprep.mubr.f32.mxu1 %v5854_v57 }
0x10c3   :  { %v4294_v11 = vpop.f32.mrf.mxu0  ;;  %3357 = vmatmul.mubr.f32.gmra.mxu1 %v3273_v61 }
0x10c4   :  { %3362 = vmatprep.mubr.f32.mxu1 %v5854_v57  ;;  %v3283_v32 = vadd.f32 %v4501_v50, %v4294_v11 }
0x10c5   :  { %v3277_v38 = vpop.f32.mrf.mxu0 }
0x10c6   :  { %v3278_v52 = vadd.f32 %v4501_v50, %v3277_v38 }
0x10c8   :  { %3363 = vmatmul.mubr.f32.gmra.mxu1 %v3278_v52 }
0x10c9   :  { %3368 = vmatprep.mubr.f32.mxu1 %v5854_v57 }
0x10cc   :  { %3369 = vmatmul.mubr.f32.gmra.mxu1 %v3283_v32 }
0x117f   :  { %v3352_v59 = vpop.f32.mrf.mxu1 }
0x1180   :  { %v5657_v37 = vadd.f32 %v3352_v59, %v5955_v58 }
0x1181   :  { %v3354_v13 = vpop.f32.mrf.mxu1 }
0x1182   :  { %v3375_v8 = vmul.f32 %v5657_v37, %v5657_v37  ;;  %v5662_v0 = vadd.f32 %v3354_v13, %v5956_v7 }
0x1183   :  { %v3358_v44 = vpop.f32.mrf.mxu1 }
0x1184   :  { %v3383_v31 = vmul.f32 %v3375_v8, %v5657_v37  ;;  %v3376_v16 = vmul.f32 %v5662_v0, %v5662_v0  ;;  %v5668_v57 = vadd.f32 %v3358_v44, %v5955_v58 }
0x1185   :  { %v3360_v19 = vpop.f32.mrf.mxu1 }
0x1186   :  { %v3391_v42 = vmul.f32 0.044715, %v3383_v31  ;;  %v3384_v22 = vmul.f32 %v3376_v16, %v5662_v0  ;;  %v3377_v25 = vmul.f32 %v5668_v57, %v5668_v57  ;;  %v5674_v9 = vadd.f32 %v3360_v19, %v5956_v7 }
0x1188   :  { %v3399_v33 = vadd.f32 %v3391_v42, %v5657_v37  ;;  %v3392_v4 = vmul.f32 0.044715, %v3384_v22  ;;  %v3385_v24 = vmul.f32 %v3377_v25, %v5668_v57  ;;  %v3378_v18 = vmul.f32 %v5674_v9, %v5674_v9  ;;  %v3364_v36 = vpop.f32.mrf.mxu1 }
0x1189   :  { %v5681_v2 = vadd.f32 %v3364_v36, %v5955_v58 }
0x118a   :  { %v3407_v12 = vmul.f32 0.7978846, %v3399_v33  ;;  %v3400_v29 = vadd.f32 %v3392_v4, %v5662_v0  ;;  %v3393_v30 = vmul.f32 0.044715, %v3385_v24  ;;  %v3386_v63 = vmul.f32 %v3378_v18, %v5674_v9  ;;  %v3366_v45 = vpop.f32.mrf.mxu1 }
0x118b   :  { %v3379_v21 = vmul.f32 %v5681_v2, %v5681_v2  ;;  %v5688_v27 = vadd.f32 %v3366_v45, %v5956_v7 }
0x118c   :  { %4388 = vtanh.f32 %v3407_v12  ;;  %v3408_v34 = vmul.f32 0.7978846, %v3400_v29  ;;  %v3401_v54 = vadd.f32 %v3393_v30, %v5668_v57  ;;  %v3394_v55 = vmul.f32 0.044715, %v3386_v63  ;;  %v3370_v40 = vpop.f32.mrf.mxu1 }
0x118d   :  { %v3387_v60 = vmul.f32 %v3379_v21, %v5681_v2  ;;  %v3380_v39 = vmul.f32 %v5688_v27, %v5688_v27  ;;  %v5695_v35 = vadd.f32 %v3370_v40, %v5955_v58 }
0x118e   :  { %4390 = vtanh.f32 %v3408_v34  ;;  %v3409_v43 = vmul.f32 0.7978846, %v3401_v54  ;;  %v3402_v14 = vadd.f32 %v3394_v55, %v5674_v9  ;;  %v3372_v48 = vpop.f32.mrf.mxu1 }
0x118f   :  { %v3395_v20 = vmul.f32 0.044715, %v3387_v60  ;;  %v3388_v26 = vmul.f32 %v3380_v39, %v5688_v27  ;;  %v3381_v5 = vmul.f32 %v5695_v35, %v5695_v35  ;;  %v3373_v51 = vadd.f32 %v3372_v48, %v5956_v7 }
0x1190   :  { %4392 = vtanh.f32 %v3409_v43  ;;  %v3410_v17 = vmul.f32 0.7978846, %v3402_v14 }
0x1191   :  { %v3403_v56 = vadd.f32 %v3395_v20, %v5681_v2  ;;  %v3396_v1 = vmul.f32 0.044715, %v3388_v26  ;;  %v3389_v58 = vmul.f32 %v3381_v5, %v5695_v35  ;;  %v3382_v62 = vmul.f32 %v3373_v51, %v3373_v51 }
0x1192   :  { %4394 = vtanh.f32 %v3410_v17 }
0x1193   :  { %v3411_v41 = vmul.f32 0.7978846, %v3403_v56  ;;  %v3404_v47 = vadd.f32 %v3396_v1, %v5688_v27  ;;  %v3397_v6 = vmul.f32 0.044715, %v3389_v58  ;;  %v3390_v46 = vmul.f32 %v3382_v62, %v3373_v51 }
0x1195   :  { %4396 = vtanh.f32 %v3411_v41  ;;  %v3412_v53 = vmul.f32 0.7978846, %v3404_v47  ;;  %v3405_v49 = vadd.f32 %v3397_v6, %v5695_v35  ;;  %v3398_v50 = vmul.f32 0.044715, %v3390_v46 }
0x1197   :  { %4398 = vtanh.f32 %v3412_v53  ;;  %v3413_v7 = vmul.f32 0.7978846, %v3405_v49  ;;  %v3406_v3 = vadd.f32 %v3398_v50, %v3373_v51 }
0x1199   :  { %v4389_v61 = vpop.eup %4388  ;;  %4400 = vtanh.f32 %v3413_v7  ;;  %v3414_v11 = vmul.f32 0.7978846, %v3406_v3 }
0x119a   :  { %v3423_v38 = vadd.f32 1.0, %v4389_v61 }
0x119b   :  { %v4391_v52 = vpop.eup %4390  ;;  %4402 = vtanh.f32 %v3414_v11 }
0x119c   :  { %v3424_v32 = vadd.f32 1.0, %v4391_v52  ;;  %v3431_v13 = vmul.f32 0.5, %v3423_v38 }
0x119d   :  { %v4393_v59 = vpop.eup %4392 }
0x119e   :  { %v3432_v8 = vmul.f32 0.5, %v3424_v32  ;;  %v3425_v44 = vadd.f32 1.0, %v4393_v59  ;;  %v3439_v42 = vmul.f32 %v3431_v13, %v5657_v37 }
0x119f   :  { %v4395_v31 = vpop.eup %4394 }
0x11a0   :  { %v3440_v16 = vmul.f32 %v3432_v8, %v5662_v0  ;;  %v3426_v19 = vadd.f32 1.0, %v4395_v31  ;;  %v3433_v22 = vmul.f32 0.5, %v3425_v44 }
0x11a2   :  { %v4397_v25 = vpop.eup %4396  ;;  %3511 = vmatprep.mubr.f32.mxu0 %v3440_v16  ;;  %v3434_v33 = vmul.f32 0.5, %v3426_v19  ;;  %v3441_v36 = vmul.f32 %v3433_v22, %v5668_v57 }
0x11a3   :  { %3512 = vmatmul.mubr.f32.vlgmr.msra.gmra.mxu0 %v3439_v42  ;;  %v3427_v4 = vadd.f32 1.0, %v4397_v25 }
0x11a4   :  { %v4399_v24 = vpop.eup %4398  ;;  %v3442_v18 = vmul.f32 %v3434_v33, %v5674_v9 }
0x11a5   :  { %v3428_v12 = vadd.f32 1.0, %v4399_v24  ;;  %v3435_v30 = vmul.f32 0.5, %v3427_v4 }
0x11a6   :  { %v4401_v29 = vpop.eup %4400  ;;  %3516 = vmatprep.mubr.f32.mxu0 %v3442_v18 }
0x11a7   :  { %3517 = vmatmul.mubr.f32.gmra.mxu0 %v3441_v36  ;;  %v3436_v0 = vmul.f32 0.5, %v3428_v12  ;;  %v3429_v63 = vadd.f32 1.0, %v4401_v29  ;;  %v3443_v34 = vmul.f32 %v3435_v30, %v5681_v2 }
0x11a8   :  { %v4403_v45 = vpop.eup %4402 }
0x11a9   :  { %v3444_v37 = vmul.f32 %v3436_v0, %v5688_v27  ;;  %v3430_v21 = vadd.f32 1.0, %v4403_v45  ;;  %v3437_v54 = vmul.f32 0.5, %v3429_v63  ;;  %v4502_v27 = vld [vmem:[%s5736_s10] ss:$0 sm:$0xff]  ;;  %s4665_s10 = smov [#allocation13]  }
0x11aa   :  { %s3545_s19 = sshll.u32 %s4665_s10, 4  ;;  %s3546_s19 = int_to_ptr.vmem [resolvable:$true] %s3545_s19 }
0x11ab   :  { %3521 = vmatprep.mubr.f32.mxu0 %v3444_v37  ;;  %v3438_v55 = vmul.f32 0.5, %v3430_v21  ;;  %v3445_v57 = vmul.f32 %v3437_v54, %v5695_v35  ;;  %s4623_s20 = scalar_lea.vmem %s3546_s19, 512  ;;  %p4628_p3 = scmp.lt.s32.totalorder %s3546_s19, %s3546_s19 }
0x11ac   :  { %3522 = vmatmul.mubr.f32.gmra.mxu0 %v3443_v34  ;;  %p4624_p2 = scmp.ne.s32.totalorder %s3546_s19, %s4623_s20  ;;  %p4629_p4 = scmp.lt.s32.totalorder %s4623_s20, %s4623_s20 }
0x11ad   :  { %v3446_v9 = vmul.f32 %v3438_v55, %v3373_v51 }
0x11ae   :  { %p4630_p5 = por %p4629_p4, %p4628_p3 }
0x11af   :  { %3526 = vmatprep.mubr.f32.mxu0 %v3446_v9 }
0x11b0   :  { %3527 = vmatmul.mubr.f32.gmra.mxu0 %v3445_v57  ;;  %p4631_p6 = pnand %p4630_p5, %p4624_p2 }
0x1263   :  { %v3887_v40 = vpop.f32.mrf.mxu0 }
0x1265   :  { %v3888_v60 = vpop.f32.mrf.mxu0 }
0x1266   :  { %v3889_v39 = vadd.f32 %v3888_v60, %v3887_v40 }
0x1267   :  { %v3890_v43 = vpop.f32.mrf.mxu0 }
0x1268   :  { %v3514_v14 = vadd.f32 %v4502_v27, %v3889_v39 }
0x1269   :  { %v3891_v48 = vpop.f32.mrf.mxu0 }
0x126a   :  { %v3532_v2 = vadd.f32 %v3514_v14, %v5573_v10  ;;  %v3892_v20 = vadd.f32 %v3891_v48, %v3890_v43 }
0x126c   :  { %3536 = vst [vmem:[#allocation13] sm:$0xff] %v3532_v2  ;;  %v3519_v26 = vadd.f32 %v4502_v27, %v3892_v20  ;;  %v3893_v5 = vpop.f32.mrf.mxu0 }
0x126e   :  { %v3533_v35 = vadd.f32 %v3519_v26, %v5578_v15  ;;  %v3894_v51 = vpop.f32.mrf.mxu0 }
0x126f   :  { %v3895_v17 = vadd.f32 %v3894_v51, %v3893_v5 }
0x1270   :  { %3537 = vst [vmem:[#allocation13 + $0x8] sm:$0xff] %v3533_v35  ;;  %v3896_v56 = vpop.f32.mrf.mxu0 }
0x1271   :  { %v3524_v1 = vadd.f32 %v4502_v27, %v3895_v17 }
0x1272   :  { %v3897_v58 = vpop.f32.mrf.mxu0 }
0x1273   :  { %v3534_v62 = vadd.f32 %v3524_v1, %v5585_v28  ;;  %v3898_v41 = vadd.f32 %v3897_v58, %v3896_v56 }
0x1275   :  { %3538 = vst [vmem:[#allocation13 + $0x10] sm:$0xff] %v3534_v62  ;;  %v3529_v47 = vadd.f32 %v4502_v27, %v3898_v41 }
0x1277   :  { %v3535_v10 = vadd.f32 %v3529_v47, %v5592_v23 }
0x1279   :  { %3539 = vst [vmem:[#allocation13 + $0x18] sm:$0xff] %v3535_v10 }
0x127a   :  { %4634 = shalt.err (!%p4631_p6)
}
0x127b   :  { %3551 = dma.vmem_to_hbm [thread:$0]  %s3546_s19, 512, %s5737_s11, [#allocation4], %s4655_s22, %s4655_s22, %s4656_s23  }
0x127c   :  { %4651 = dma.done.wait [#allocation4], 512  }
0x127d   :  { %4652 = vsyncadd [#allocation4], 4294966784 }
0x127e   :  { %3555 = vsyncpa [#allocation3], 1 }
0x127f   :  { %3556 = vsyncpa [#allocation6], 1 }
0x1280   :  { %3557 = vsyncpa [#allocation9], 1 }
0x1281   :  { %3558 = vsyncpa [#allocation12], 1 }
0x1282   :  { %3559 = vsyncpa [#allocation4], 1 }

</bundles_post_ra>
